<compile_context>
chip_gen: v6e
topology: v6e:2x2x1
jax: 0.10.0
libtpu: 0.0.40
codegen_flags: <defaults>
</compile_context>

<pallas_src>
import functools

import jax
import jax.numpy as jnp
from jax.experimental import pallas as pl
from jax.experimental.pallas import tpu as pltpu


_CHANNELS = [1, 16, 32, 64, 128, 64, 32, 16, 2]   # encoder then decoder
_NLAYERS = len(_CHANNELS) - 1
_CPAD = 128                                       # uniform padded channel width


def _fused_unet_kernel(x_ref, w_ref, b_ref, o_ref, *, B, L, SEG):
    """Fused 8-layer Conv1d(k=3, pad=1)+ReLU stack, activations resident in VMEM.

    x_ref : (B*SEG, 128)   input slab; per-batch layout [halo0 | L rows | zeros]
    w_ref : (8, 384, 128)  per-layer weights, taps stacked along K (rows t*128..)
    b_ref : (8, 128)       per-layer biases (zero-padded)
    o_ref : (B*SEG, 128)   lane-dense output slab (interior rows / chans 0..1 real)
    """
    C = _CPAD
    R = B * SEG

    h = x_ref[...]                                  # (R, C) f32; halo rows are zero

    # Interior-row mask: True on real activation rows, False on halo/pad rows.
    row = jax.lax.broadcasted_iota(jnp.int32, (R, C), 0)
    interior = jnp.zeros((R, C), jnp.bool_)
    for b in range(B):
        lo = b * SEG + 1
        interior = jnp.logical_or(
            interior, jnp.logical_and(row >= lo, row <= lo + L - 1))

    zero_row = jnp.zeros((1, C), jnp.float32)

    for layer in range(_NLAYERS):
        w_l = w_ref[layer]                          # (3*C, C) in VMEM

        # Shifted views over the whole slab:  h_prev[p] = h[p-1], h_next[p] = h[p+1].
        # Halo rows are zero, and rows whose windows cross a batch boundary are
        # masked back to zero below, so 'same' padding is exact per batch.
        h_prev = jnp.concatenate([zero_row, h[:-1, :]], axis=0)
        h_next = jnp.concatenate([h[1:, :], zero_row], axis=0)

        # Three MXU matmuls (one per tap), f32 accumulation.
        y = jnp.dot(h_prev, w_l[0 * C:1 * C, :], preferred_element_type=jnp.float32)
        y = y + jnp.dot(h, w_l[1 * C:2 * C, :], preferred_element_type=jnp.float32)
        y = y + jnp.dot(h_next, w_l[2 * C:3 * C, :], preferred_element_type=jnp.float32)
        y = y + b_ref[layer:layer + 1, :]

        # ReLU + re-zero the halo/pad rows so they stay inert for the next layer.
        h = jnp.where(interior, jnp.maximum(y, 0.0), 0.0)

    o_ref[...] = h.astype(o_ref.dtype)


def unet_pallas(x_slab, w_all, b_all, *, B, L, SEG):
    """x_slab: (B*SEG, 128) haloed channels-last input. Returns (B*SEG, 128)."""
    C = _CPAD
    R = B * SEG
    kernel = functools.partial(_fused_unet_kernel, B=B, L=L, SEG=SEG)
    return pl.pallas_call(
        kernel,
        out_shape=jax.ShapeDtypeStruct((R, C), jnp.float32),
        grid_spec=pltpu.PrefetchScalarGridSpec(
            num_scalar_prefetch=0,
            grid=(1,),
            in_specs=[
                pl.BlockSpec((R, C), lambda i: (0, 0)),
                pl.BlockSpec((_NLAYERS, 3 * C, C), lambda i: (0, 0, 0)),
                pl.BlockSpec((_NLAYERS, C), lambda i: (0, 0)),
            ],
            out_specs=pl.BlockSpec((R, C), lambda i: (0, 0)),
        ),
        compiler_params=pltpu.CompilerParams(
            dimension_semantics=("arbitrary",),
            vmem_limit_bytes=32 * 1024 * 1024,   # explicit; works v5e/v6e/v7x
        ),
    )(x_slab, w_all, b_all)


# ----------------------------------------------------------------------------
# Parameter setup (deterministic, PyTorch-style uniform fan-in init).
# ----------------------------------------------------------------------------
def init_params(key):
    params = []
    for i in range(_NLAYERS):
        cin, cout = _CHANNELS[i], _CHANNELS[i + 1]
        key, kw, kb = jax.random.split(key, 3)
        bound = 1.0 / jnp.sqrt(cin * 3.0)
        # PyTorch Conv1d weight is (Cout, Cin, K); we store as (K, Cin, Cout).
        w = jax.random.uniform(kw, (3, cin, cout), jnp.float32, -bound, bound)
        b = jax.random.uniform(kb, (cout,), jnp.float32, -bound, bound)
        params.append((w, b))
    return params


def pack_params(params):
    """Pack true-shape params into channel-padded fused-tap arrays (host-side, once)."""
    C = _CPAD
    w_all = jnp.zeros((_NLAYERS, 3 * C, C), jnp.float32)
    b_all = jnp.zeros((_NLAYERS, C), jnp.float32)
    for i, (w, b) in enumerate(params):
        cin, cout = w.shape[1], w.shape[2]
        for t in range(3):
            w_all = w_all.at[i, t * C:t * C + cin, :cout].set(w[t])
        b_all = b_all.at[i, :cout].set(b)
    return w_all, b_all


@jax.jit
def unet_forward(x_ncl, w_all, b_all):
    """x_ncl: (B, 1, L) in PyTorch NCL layout. Returns (B, 2, L)."""
    B, cin, L = x_ncl.shape
    C = _CPAD
    SEG = ((L + 2 + 7) // 8) * 8                         # halo + L + pad, 8-aligned
    h = jnp.transpose(x_ncl, (0, 2, 1))                  # (B, L, cin) channels-last
    h = jnp.pad(h, ((0, 0), (0, 0), (0, C - cin)))       # (B, L, 128)
    slab = jnp.zeros((B, SEG, C), jnp.float32).at[:, 1:L + 1, :].set(h)
    out_slab = unet_pallas(slab.reshape(B * SEG, C), w_all, b_all, B=B, L=L, SEG=SEG)
    out = out_slab.reshape(B, SEG, C)[:, 1:L + 1, :_CHANNELS[-1]]   # (B, L, 2)
    return jnp.transpose(out, (0, 2, 1))                 # back to NCL (B, 2, L)


# Pure-JAX reference (no Pallas) for a correctness sanity check.
def unet_reference(x_ncl, params):
    h = jnp.transpose(x_ncl, (0, 2, 1))  # (B, L, C)
    for w, b in params:
        hp = jnp.pad(h, ((0, 0), (1, 1), (0, 0)))
        L = h.shape[1]
        acc = (jnp.einsum('blc,cd->bld', hp[:, 0:L], w[0])
               + jnp.einsum('blc,cd->bld', hp[:, 1:L + 1], w[1])
               + jnp.einsum('blc,cd->bld', hp[:, 2:L + 2], w[2]))
        h = jnp.maximum(acc + b[None, None, :], 0.0)
    return jnp.transpose(h, (0, 2, 1))


if __name__ == "__main__":
    key = jax.random.PRNGKey(0)
    kx, kp = jax.random.split(key)

    B, L = 2, 64
    x = jax.random.normal(kx, (B, 1, L), jnp.float32)  # (B, Cin=1, L), PyTorch NCL

    params = init_params(kp)
    w_all, b_all = pack_params(params)

    out = unet_forward(x, w_all, b_all)
    out = jax.block_until_ready(out)
    assert out.shape == (B, 2, L), out.shape

    ref = unet_reference(x, params)
    if not jnp.allclose(out, ref, atol=1e-4, rtol=1e-4):
        raise AssertionError("Pallas UNet output mismatch vs reference")

    print("KERNEL_OK")
</pallas_src>

<mosaic_0001>
module attributes {stable_mosaic.version = 11 : i64} {
  func.func @_fused_unet_kernel(%arg0: i32, %arg1: memref<144x128xf32, #tpu.memory_space<vmem>>, %arg2: memref<8x384x128xf32, #tpu.memory_space<vmem>>, %arg3: memref<8x128xf32, #tpu.memory_space<vmem>>, %arg4: memref<144x128xf32, #tpu.memory_space<vmem>>) attributes {dimension_semantics = [#tpu.dimension_semantics<arbitrary>], iteration_bounds = array<i64: 1>, scalar_prefetch = 0 : i64, scratch_operands = 0 : i64, tpu.core_type = #tpu.core_type<tc>, window_params = [{pipeline_mode = #tpu.pipeline_mode<synchronous>, transform_indices = @transform_0, window_bounds = array<i64: 144, 128>}, {pipeline_mode = #tpu.pipeline_mode<synchronous>, transform_indices = @transform_1, window_bounds = array<i64: 8, 384, 128>}, {pipeline_mode = #tpu.pipeline_mode<synchronous>, transform_indices = @transform_2, window_bounds = array<i64: 8, 128>}, {pipeline_mode = #tpu.pipeline_mode<synchronous>, transform_indices = @transform_3, window_bounds = array<i64: 144, 128>}]} {
    %c0 = arith.constant 0 : index
    %c0_0 = arith.constant 0 : index
    %0 = vector.load %arg1[%c0, %c0_0] : memref<144x128xf32, #tpu.memory_space<vmem>>, vector<144x128xf32>
    %1 = tpu.iota {dimensions = array<i32: 0>} : vector<144x128xi32>
    %false = arith.constant false
    %2 = vector.broadcast %false : i1 to vector<144x128xi1>
    %c1_i32 = arith.constant 1 : i32
    %3 = vector.broadcast %c1_i32 : i32 to vector<144x128xi32>
    %4 = arith.cmpi sge, %1, %3 : vector<144x128xi32>
    %c64_i32 = arith.constant 64 : i32
    %5 = vector.broadcast %c64_i32 : i32 to vector<144x128xi32>
    %6 = arith.cmpi sle, %1, %5 : vector<144x128xi32>
    %7 = arith.andi %4, %6 : vector<144x128xi1>
    %8 = arith.ori %2, %7 : vector<144x128xi1>
    %c73_i32 = arith.constant 73 : i32
    %9 = vector.broadcast %c73_i32 : i32 to vector<144x128xi32>
    %10 = arith.cmpi sge, %1, %9 : vector<144x128xi32>
    %c136_i32 = arith.constant 136 : i32
    %11 = vector.broadcast %c136_i32 : i32 to vector<144x128xi32>
    %12 = arith.cmpi sle, %1, %11 : vector<144x128xi32>
    %13 = arith.andi %10, %12 : vector<144x128xi1>
    %14 = arith.ori %8, %13 : vector<144x128xi1>
    %cst = arith.constant 0.000000e+00 : f32
    %15 = vector.broadcast %cst : f32 to vector<1x128xf32>
    %c0_1 = arith.constant 0 : index
    %c0_2 = arith.constant 0 : index
    %c0_3 = arith.constant 0 : index
    %16 = vector.load %arg2[%c0_1, %c0_2, %c0_3] : memref<8x384x128xf32, #tpu.memory_space<vmem>>, vector<1x384x128xf32>
    %17 = vector.shape_cast %16 : vector<1x384x128xf32> to vector<384x128xf32>
    %18 = vector.extract_strided_slice %0 {offsets = [0, 0], sizes = [143, 128], strides = [1, 1]} : vector<144x128xf32> to vector<143x128xf32>
    %19 = tpu.concatenate %15, %18 in 0 : vector<1x128xf32>, vector<143x128xf32> -> vector<144x128xf32>
    %20 = vector.extract_strided_slice %0 {offsets = [1, 0], sizes = [143, 128], strides = [1, 1]} : vector<144x128xf32> to vector<143x128xf32>
    %21 = tpu.concatenate %20, %15 in 0 : vector<143x128xf32>, vector<1x128xf32> -> vector<144x128xf32>
    %22 = vector.extract_strided_slice %17 {offsets = [0, 0], sizes = [128, 128], strides = [1, 1]} : vector<384x128xf32> to vector<128x128xf32>
    %cst_4 = arith.constant dense<0.000000e+00> : vector<144x128xf32>
    %23 = tpu.matmul %19, %22, %cst_4 {dimension_numbers = #tpu.dot_dimension_numbers<[1], [0], [0], [1], [0, 0, 1, 1], [], []>} : vector<144x128xf32>, vector<128x128xf32>, vector<144x128xf32> -> vector<144x128xf32>
    %24 = vector.extract_strided_slice %17 {offsets = [128, 0], sizes = [128, 128], strides = [1, 1]} : vector<384x128xf32> to vector<128x128xf32>
    %cst_5 = arith.constant dense<0.000000e+00> : vector<144x128xf32>
    %25 = tpu.matmul %0, %24, %cst_5 {dimension_numbers = #tpu.dot_dimension_numbers<[1], [0], [0], [1], [0, 0, 1, 1], [], []>} : vector<144x128xf32>, vector<128x128xf32>, vector<144x128xf32> -> vector<144x128xf32>
    %26 = arith.addf %23, %25 : vector<144x128xf32>
    %27 = vector.extract_strided_slice %17 {offsets = [256, 0], sizes = [128, 128], strides = [1, 1]} : vector<384x128xf32> to vector<128x128xf32>
    %cst_6 = arith.constant dense<0.000000e+00> : vector<144x128xf32>
    %28 = tpu.matmul %21, %27, %cst_6 {dimension_numbers = #tpu.dot_dimension_numbers<[1], [0], [0], [1], [0, 0, 1, 1], [], []>} : vector<144x128xf32>, vector<128x128xf32>, vector<144x128xf32> -> vector<144x128xf32>
    %29 = arith.addf %26, %28 : vector<144x128xf32>
    %c0_7 = arith.constant 0 : index
    %c0_8 = arith.constant 0 : index
    %30 = vector.load %arg3[%c0_7, %c0_8] : memref<8x128xf32, #tpu.memory_space<vmem>>, vector<1x128xf32>
    %31 = vector.broadcast %30 : vector<1x128xf32> to vector<144x128xf32>
    %32 = arith.addf %29, %31 : vector<144x128xf32>
    %cst_9 = arith.constant 0.000000e+00 : f32
    %33 = vector.broadcast %cst_9 : f32 to vector<144x128xf32>
    %34 = arith.maximumf %32, %33 : vector<144x128xf32>
    %cst_10 = arith.constant 0.000000e+00 : f32
    %35 = vector.broadcast %cst_10 : f32 to vector<144x128xf32>
    %36 = arith.select %14, %34, %35 : vector<144x128xi1>, vector<144x128xf32>
    %c1 = arith.constant 1 : index
    %c0_11 = arith.constant 0 : index
    %c0_12 = arith.constant 0 : index
    %37 = vector.load %arg2[%c1, %c0_11, %c0_12] : memref<8x384x128xf32, #tpu.memory_space<vmem>>, vector<1x384x128xf32>
    %38 = vector.shape_cast %37 : vector<1x384x128xf32> to vector<384x128xf32>
    %39 = vector.extract_strided_slice %36 {offsets = [0, 0], sizes = [143, 128], strides = [1, 1]} : vector<144x128xf32> to vector<143x128xf32>
    %40 = tpu.concatenate %15, %39 in 0 : vector<1x128xf32>, vector<143x128xf32> -> vector<144x128xf32>
    %41 = vector.extract_strided_slice %36 {offsets = [1, 0], sizes = [143, 128], strides = [1, 1]} : vector<144x128xf32> to vector<143x128xf32>
    %42 = tpu.concatenate %41, %15 in 0 : vector<143x128xf32>, vector<1x128xf32> -> vector<144x128xf32>
    %43 = vector.extract_strided_slice %38 {offsets = [0, 0], sizes = [128, 128], strides = [1, 1]} : vector<384x128xf32> to vector<128x128xf32>
    %cst_13 = arith.constant dense<0.000000e+00> : vector<144x128xf32>
    %44 = tpu.matmul %40, %43, %cst_13 {dimension_numbers = #tpu.dot_dimension_numbers<[1], [0], [0], [1], [0, 0, 1, 1], [], []>} : vector<144x128xf32>, vector<128x128xf32>, vector<144x128xf32> -> vector<144x128xf32>
    %45 = vector.extract_strided_slice %38 {offsets = [128, 0], sizes = [128, 128], strides = [1, 1]} : vector<384x128xf32> to vector<128x128xf32>
    %cst_14 = arith.constant dense<0.000000e+00> : vector<144x128xf32>
    %46 = tpu.matmul %36, %45, %cst_14 {dimension_numbers = #tpu.dot_dimension_numbers<[1], [0], [0], [1], [0, 0, 1, 1], [], []>} : vector<144x128xf32>, vector<128x128xf32>, vector<144x128xf32> -> vector<144x128xf32>
    %47 = arith.addf %44, %46 : vector<144x128xf32>
    %48 = vector.extract_strided_slice %38 {offsets = [256, 0], sizes = [128, 128], strides = [1, 1]} : vector<384x128xf32> to vector<128x128xf32>
    %cst_15 = arith.constant dense<0.000000e+00> : vector<144x128xf32>
    %49 = tpu.matmul %42, %48, %cst_15 {dimension_numbers = #tpu.dot_dimension_numbers<[1], [0], [0], [1], [0, 0, 1, 1], [], []>} : vector<144x128xf32>, vector<128x128xf32>, vector<144x128xf32> -> vector<144x128xf32>
    %50 = arith.addf %47, %49 : vector<144x128xf32>
    %c1_16 = arith.constant 1 : index
    %c0_17 = arith.constant 0 : index
    %51 = vector.load %arg3[%c1_16, %c0_17] : memref<8x128xf32, #tpu.memory_space<vmem>>, vector<1x128xf32>
    %52 = vector.broadcast %51 : vector<1x128xf32> to vector<144x128xf32>
    %53 = arith.addf %50, %52 : vector<144x128xf32>
    %cst_18 = arith.constant 0.000000e+00 : f32
    %54 = vector.broadcast %cst_18 : f32 to vector<144x128xf32>
    %55 = arith.maximumf %53, %54 : vector<144x128xf32>
    %cst_19 = arith.constant 0.000000e+00 : f32
    %56 = vector.broadcast %cst_19 : f32 to vector<144x128xf32>
    %57 = arith.select %14, %55, %56 : vector<144x128xi1>, vector<144x128xf32>
    %c2 = arith.constant 2 : index
    %c0_20 = arith.constant 0 : index
    %c0_21 = arith.constant 0 : index
    %58 = vector.load %arg2[%c2, %c0_20, %c0_21] : memref<8x384x128xf32, #tpu.memory_space<vmem>>, vector<1x384x128xf32>
    %59 = vector.shape_cast %58 : vector<1x384x128xf32> to vector<384x128xf32>
    %60 = vector.extract_strided_slice %57 {offsets = [0, 0], sizes = [143, 128], strides = [1, 1]} : vector<144x128xf32> to vector<143x128xf32>
    %61 = tpu.concatenate %15, %60 in 0 : vector<1x128xf32>, vector<143x128xf32> -> vector<144x128xf32>
    %62 = vector.extract_strided_slice %57 {offsets = [1, 0], sizes = [143, 128], strides = [1, 1]} : vector<144x128xf32> to vector<143x128xf32>
    %63 = tpu.concatenate %62, %15 in 0 : vector<143x128xf32>, vector<1x128xf32> -> vector<144x128xf32>
    %64 = vector.extract_strided_slice %59 {offsets = [0, 0], sizes = [128, 128], strides = [1, 1]} : vector<384x128xf32> to vector<128x128xf32>
    %cst_22 = arith.constant dense<0.000000e+00> : vector<144x128xf32>
    %65 = tpu.matmul %61, %64, %cst_22 {dimension_numbers = #tpu.dot_dimension_numbers<[1], [0], [0], [1], [0, 0, 1, 1], [], []>} : vector<144x128xf32>, vector<128x128xf32>, vector<144x128xf32> -> vector<144x128xf32>
    %66 = vector.extract_strided_slice %59 {offsets = [128, 0], sizes = [128, 128], strides = [1, 1]} : vector<384x128xf32> to vector<128x128xf32>
    %cst_23 = arith.constant dense<0.000000e+00> : vector<144x128xf32>
    %67 = tpu.matmul %57, %66, %cst_23 {dimension_numbers = #tpu.dot_dimension_numbers<[1], [0], [0], [1], [0, 0, 1, 1], [], []>} : vector<144x128xf32>, vector<128x128xf32>, vector<144x128xf32> -> vector<144x128xf32>
    %68 = arith.addf %65, %67 : vector<144x128xf32>
    %69 = vector.extract_strided_slice %59 {offsets = [256, 0], sizes = [128, 128], strides = [1, 1]} : vector<384x128xf32> to vector<128x128xf32>
    %cst_24 = arith.constant dense<0.000000e+00> : vector<144x128xf32>
    %70 = tpu.matmul %63, %69, %cst_24 {dimension_numbers = #tpu.dot_dimension_numbers<[1], [0], [0], [1], [0, 0, 1, 1], [], []>} : vector<144x128xf32>, vector<128x128xf32>, vector<144x128xf32> -> vector<144x128xf32>
    %71 = arith.addf %68, %70 : vector<144x128xf32>
    %c2_25 = arith.constant 2 : index
    %c0_26 = arith.constant 0 : index
    %72 = vector.load %arg3[%c2_25, %c0_26] : memref<8x128xf32, #tpu.memory_space<vmem>>, vector<1x128xf32>
    %73 = vector.broadcast %72 : vector<1x128xf32> to vector<144x128xf32>
    %74 = arith.addf %71, %73 : vector<144x128xf32>
    %cst_27 = arith.constant 0.000000e+00 : f32
    %75 = vector.broadcast %cst_27 : f32 to vector<144x128xf32>
    %76 = arith.maximumf %74, %75 : vector<144x128xf32>
    %cst_28 = arith.constant 0.000000e+00 : f32
    %77 = vector.broadcast %cst_28 : f32 to vector<144x128xf32>
    %78 = arith.select %14, %76, %77 : vector<144x128xi1>, vector<144x128xf32>
    %c3 = arith.constant 3 : index
    %c0_29 = arith.constant 0 : index
    %c0_30 = arith.constant 0 : index
    %79 = vector.load %arg2[%c3, %c0_29, %c0_30] : memref<8x384x128xf32, #tpu.memory_space<vmem>>, vector<1x384x128xf32>
    %80 = vector.shape_cast %79 : vector<1x384x128xf32> to vector<384x128xf32>
    %81 = vector.extract_strided_slice %78 {offsets = [0, 0], sizes = [143, 128], strides = [1, 1]} : vector<144x128xf32> to vector<143x128xf32>
    %82 = tpu.concatenate %15, %81 in 0 : vector<1x128xf32>, vector<143x128xf32> -> vector<144x128xf32>
    %83 = vector.extract_strided_slice %78 {offsets = [1, 0], sizes = [143, 128], strides = [1, 1]} : vector<144x128xf32> to vector<143x128xf32>
    %84 = tpu.concatenate %83, %15 in 0 : vector<143x128xf32>, vector<1x128xf32> -> vector<144x128xf32>
    %85 = vector.extract_strided_slice %80 {offsets = [0, 0], sizes = [128, 128], strides = [1, 1]} : vector<384x128xf32> to vector<128x128xf32>
    %cst_31 = arith.constant dense<0.000000e+00> : vector<144x128xf32>
    %86 = tpu.matmul %82, %85, %cst_31 {dimension_numbers = #tpu.dot_dimension_numbers<[1], [0], [0], [1], [0, 0, 1, 1], [], []>} : vector<144x128xf32>, vector<128x128xf32>, vector<144x128xf32> -> vector<144x128xf32>
    %87 = vector.extract_strided_slice %80 {offsets = [128, 0], sizes = [128, 128], strides = [1, 1]} : vector<384x128xf32> to vector<128x128xf32>
    %cst_32 = arith.constant dense<0.000000e+00> : vector<144x128xf32>
    %88 = tpu.matmul %78, %87, %cst_32 {dimension_numbers = #tpu.dot_dimension_numbers<[1], [0], [0], [1], [0, 0, 1, 1], [], []>} : vector<144x128xf32>, vector<128x128xf32>, vector<144x128xf32> -> vector<144x128xf32>
    %89 = arith.addf %86, %88 : vector<144x128xf32>
    %90 = vector.extract_strided_slice %80 {offsets = [256, 0], sizes = [128, 128], strides = [1, 1]} : vector<384x128xf32> to vector<128x128xf32>
    %cst_33 = arith.constant dense<0.000000e+00> : vector<144x128xf32>
    %91 = tpu.matmul %84, %90, %cst_33 {dimension_numbers = #tpu.dot_dimension_numbers<[1], [0], [0], [1], [0, 0, 1, 1], [], []>} : vector<144x128xf32>, vector<128x128xf32>, vector<144x128xf32> -> vector<144x128xf32>
    %92 = arith.addf %89, %91 : vector<144x128xf32>
    %c3_34 = arith.constant 3 : index
    %c0_35 = arith.constant 0 : index
    %93 = vector.load %arg3[%c3_34, %c0_35] : memref<8x128xf32, #tpu.memory_space<vmem>>, vector<1x128xf32>
    %94 = vector.broadcast %93 : vector<1x128xf32> to vector<144x128xf32>
    %95 = arith.addf %92, %94 : vector<144x128xf32>
    %cst_36 = arith.constant 0.000000e+00 : f32
    %96 = vector.broadcast %cst_36 : f32 to vector<144x128xf32>
    %97 = arith.maximumf %95, %96 : vector<144x128xf32>
    %cst_37 = arith.constant 0.000000e+00 : f32
    %98 = vector.broadcast %cst_37 : f32 to vector<144x128xf32>
    %99 = arith.select %14, %97, %98 : vector<144x128xi1>, vector<144x128xf32>
    %c4 = arith.constant 4 : index
    %c0_38 = arith.constant 0 : index
    %c0_39 = arith.constant 0 : index
    %100 = vector.load %arg2[%c4, %c0_38, %c0_39] : memref<8x384x128xf32, #tpu.memory_space<vmem>>, vector<1x384x128xf32>
    %101 = vector.shape_cast %100 : vector<1x384x128xf32> to vector<384x128xf32>
    %102 = vector.extract_strided_slice %99 {offsets = [0, 0], sizes = [143, 128], strides = [1, 1]} : vector<144x128xf32> to vector<143x128xf32>
    %103 = tpu.concatenate %15, %102 in 0 : vector<1x128xf32>, vector<143x128xf32> -> vector<144x128xf32>
    %104 = vector.extract_strided_slice %99 {offsets = [1, 0], sizes = [143, 128], strides = [1, 1]} : vector<144x128xf32> to vector<143x128xf32>
    %105 = tpu.concatenate %104, %15 in 0 : vector<143x128xf32>, vector<1x128xf32> -> vector<144x128xf32>
    %106 = vector.extract_strided_slice %101 {offsets = [0, 0], sizes = [128, 128], strides = [1, 1]} : vector<384x128xf32> to vector<128x128xf32>
    %cst_40 = arith.constant dense<0.000000e+00> : vector<144x128xf32>
    %107 = tpu.matmul %103, %106, %cst_40 {dimension_numbers = #tpu.dot_dimension_numbers<[1], [0], [0], [1], [0, 0, 1, 1], [], []>} : vector<144x128xf32>, vector<128x128xf32>, vector<144x128xf32> -> vector<144x128xf32>
    %108 = vector.extract_strided_slice %101 {offsets = [128, 0], sizes = [128, 128], strides = [1, 1]} : vector<384x128xf32> to vector<128x128xf32>
    %cst_41 = arith.constant dense<0.000000e+00> : vector<144x128xf32>
    %109 = tpu.matmul %99, %108, %cst_41 {dimension_numbers = #tpu.dot_dimension_numbers<[1], [0], [0], [1], [0, 0, 1, 1], [], []>} : vector<144x128xf32>, vector<128x128xf32>, vector<144x128xf32> -> vector<144x128xf32>
    %110 = arith.addf %107, %109 : vector<144x128xf32>
    %111 = vector.extract_strided_slice %101 {offsets = [256, 0], sizes = [128, 128], strides = [1, 1]} : vector<384x128xf32> to vector<128x128xf32>
    %cst_42 = arith.constant dense<0.000000e+00> : vector<144x128xf32>
    %112 = tpu.matmul %105, %111, %cst_42 {dimension_numbers = #tpu.dot_dimension_numbers<[1], [0], [0], [1], [0, 0, 1, 1], [], []>} : vector<144x128xf32>, vector<128x128xf32>, vector<144x128xf32> -> vector<144x128xf32>
    %113 = arith.addf %110, %112 : vector<144x128xf32>
    %c4_43 = arith.constant 4 : index
    %c0_44 = arith.constant 0 : index
    %114 = vector.load %arg3[%c4_43, %c0_44] : memref<8x128xf32, #tpu.memory_space<vmem>>, vector<1x128xf32>
    %115 = vector.broadcast %114 : vector<1x128xf32> to vector<144x128xf32>
    %116 = arith.addf %113, %115 : vector<144x128xf32>
    %cst_45 = arith.constant 0.000000e+00 : f32
    %117 = vector.broadcast %cst_45 : f32 to vector<144x128xf32>
    %118 = arith.maximumf %116, %117 : vector<144x128xf32>
    %cst_46 = arith.constant 0.000000e+00 : f32
    %119 = vector.broadcast %cst_46 : f32 to vector<144x128xf32>
    %120 = arith.select %14, %118, %119 : vector<144x128xi1>, vector<144x128xf32>
    %c5 = arith.constant 5 : index
    %c0_47 = arith.constant 0 : index
    %c0_48 = arith.constant 0 : index
    %121 = vector.load %arg2[%c5, %c0_47, %c0_48] : memref<8x384x128xf32, #tpu.memory_space<vmem>>, vector<1x384x128xf32>
    %122 = vector.shape_cast %121 : vector<1x384x128xf32> to vector<384x128xf32>
    %123 = vector.extract_strided_slice %120 {offsets = [0, 0], sizes = [143, 128], strides = [1, 1]} : vector<144x128xf32> to vector<143x128xf32>
    %124 = tpu.concatenate %15, %123 in 0 : vector<1x128xf32>, vector<143x128xf32> -> vector<144x128xf32>
    %125 = vector.extract_strided_slice %120 {offsets = [1, 0], sizes = [143, 128], strides = [1, 1]} : vector<144x128xf32> to vector<143x128xf32>
    %126 = tpu.concatenate %125, %15 in 0 : vector<143x128xf32>, vector<1x128xf32> -> vector<144x128xf32>
    %127 = vector.extract_strided_slice %122 {offsets = [0, 0], sizes = [128, 128], strides = [1, 1]} : vector<384x128xf32> to vector<128x128xf32>
    %cst_49 = arith.constant dense<0.000000e+00> : vector<144x128xf32>
    %128 = tpu.matmul %124, %127, %cst_49 {dimension_numbers = #tpu.dot_dimension_numbers<[1], [0], [0], [1], [0, 0, 1, 1], [], []>} : vector<144x128xf32>, vector<128x128xf32>, vector<144x128xf32> -> vector<144x128xf32>
    %129 = vector.extract_strided_slice %122 {offsets = [128, 0], sizes = [128, 128], strides = [1, 1]} : vector<384x128xf32> to vector<128x128xf32>
    %cst_50 = arith.constant dense<0.000000e+00> : vector<144x128xf32>
    %130 = tpu.matmul %120, %129, %cst_50 {dimension_numbers = #tpu.dot_dimension_numbers<[1], [0], [0], [1], [0, 0, 1, 1], [], []>} : vector<144x128xf32>, vector<128x128xf32>, vector<144x128xf32> -> vector<144x128xf32>
    %131 = arith.addf %128, %130 : vector<144x128xf32>
    %132 = vector.extract_strided_slice %122 {offsets = [256, 0], sizes = [128, 128], strides = [1, 1]} : vector<384x128xf32> to vector<128x128xf32>
    %cst_51 = arith.constant dense<0.000000e+00> : vector<144x128xf32>
    %133 = tpu.matmul %126, %132, %cst_51 {dimension_numbers = #tpu.dot_dimension_numbers<[1], [0], [0], [1], [0, 0, 1, 1], [], []>} : vector<144x128xf32>, vector<128x128xf32>, vector<144x128xf32> -> vector<144x128xf32>
    %134 = arith.addf %131, %133 : vector<144x128xf32>
    %c5_52 = arith.constant 5 : index
    %c0_53 = arith.constant 0 : index
    %135 = vector.load %arg3[%c5_52, %c0_53] : memref<8x128xf32, #tpu.memory_space<vmem>>, vector<1x128xf32>
    %136 = vector.broadcast %135 : vector<1x128xf32> to vector<144x128xf32>
    %137 = arith.addf %134, %136 : vector<144x128xf32>
    %cst_54 = arith.constant 0.000000e+00 : f32
    %138 = vector.broadcast %cst_54 : f32 to vector<144x128xf32>
    %139 = arith.maximumf %137, %138 : vector<144x128xf32>
    %cst_55 = arith.constant 0.000000e+00 : f32
    %140 = vector.broadcast %cst_55 : f32 to vector<144x128xf32>
    %141 = arith.select %14, %139, %140 : vector<144x128xi1>, vector<144x128xf32>
    %c6 = arith.constant 6 : index
    %c0_56 = arith.constant 0 : index
    %c0_57 = arith.constant 0 : index
    %142 = vector.load %arg2[%c6, %c0_56, %c0_57] : memref<8x384x128xf32, #tpu.memory_space<vmem>>, vector<1x384x128xf32>
    %143 = vector.shape_cast %142 : vector<1x384x128xf32> to vector<384x128xf32>
    %144 = vector.extract_strided_slice %141 {offsets = [0, 0], sizes = [143, 128], strides = [1, 1]} : vector<144x128xf32> to vector<143x128xf32>
    %145 = tpu.concatenate %15, %144 in 0 : vector<1x128xf32>, vector<143x128xf32> -> vector<144x128xf32>
    %146 = vector.extract_strided_slice %141 {offsets = [1, 0], sizes = [143, 128], strides = [1, 1]} : vector<144x128xf32> to vector<143x128xf32>
    %147 = tpu.concatenate %146, %15 in 0 : vector<143x128xf32>, vector<1x128xf32> -> vector<144x128xf32>
    %148 = vector.extract_strided_slice %143 {offsets = [0, 0], sizes = [128, 128], strides = [1, 1]} : vector<384x128xf32> to vector<128x128xf32>
    %cst_58 = arith.constant dense<0.000000e+00> : vector<144x128xf32>
    %149 = tpu.matmul %145, %148, %cst_58 {dimension_numbers = #tpu.dot_dimension_numbers<[1], [0], [0], [1], [0, 0, 1, 1], [], []>} : vector<144x128xf32>, vector<128x128xf32>, vector<144x128xf32> -> vector<144x128xf32>
    %150 = vector.extract_strided_slice %143 {offsets = [128, 0], sizes = [128, 128], strides = [1, 1]} : vector<384x128xf32> to vector<128x128xf32>
    %cst_59 = arith.constant dense<0.000000e+00> : vector<144x128xf32>
    %151 = tpu.matmul %141, %150, %cst_59 {dimension_numbers = #tpu.dot_dimension_numbers<[1], [0], [0], [1], [0, 0, 1, 1], [], []>} : vector<144x128xf32>, vector<128x128xf32>, vector<144x128xf32> -> vector<144x128xf32>
    %152 = arith.addf %149, %151 : vector<144x128xf32>
    %153 = vector.extract_strided_slice %143 {offsets = [256, 0], sizes = [128, 128], strides = [1, 1]} : vector<384x128xf32> to vector<128x128xf32>
    %cst_60 = arith.constant dense<0.000000e+00> : vector<144x128xf32>
    %154 = tpu.matmul %147, %153, %cst_60 {dimension_numbers = #tpu.dot_dimension_numbers<[1], [0], [0], [1], [0, 0, 1, 1], [], []>} : vector<144x128xf32>, vector<128x128xf32>, vector<144x128xf32> -> vector<144x128xf32>
    %155 = arith.addf %152, %154 : vector<144x128xf32>
    %c6_61 = arith.constant 6 : index
    %c0_62 = arith.constant 0 : index
    %156 = vector.load %arg3[%c6_61, %c0_62] : memref<8x128xf32, #tpu.memory_space<vmem>>, vector<1x128xf32>
    %157 = vector.broadcast %156 : vector<1x128xf32> to vector<144x128xf32>
    %158 = arith.addf %155, %157 : vector<144x128xf32>
    %cst_63 = arith.constant 0.000000e+00 : f32
    %159 = vector.broadcast %cst_63 : f32 to vector<144x128xf32>
    %160 = arith.maximumf %158, %159 : vector<144x128xf32>
    %cst_64 = arith.constant 0.000000e+00 : f32
    %161 = vector.broadcast %cst_64 : f32 to vector<144x128xf32>
    %162 = arith.select %14, %160, %161 : vector<144x128xi1>, vector<144x128xf32>
    %c7 = arith.constant 7 : index
    %c0_65 = arith.constant 0 : index
    %c0_66 = arith.constant 0 : index
    %163 = vector.load %arg2[%c7, %c0_65, %c0_66] : memref<8x384x128xf32, #tpu.memory_space<vmem>>, vector<1x384x128xf32>
    %164 = vector.shape_cast %163 : vector<1x384x128xf32> to vector<384x128xf32>
    %165 = vector.extract_strided_slice %162 {offsets = [0, 0], sizes = [143, 128], strides = [1, 1]} : vector<144x128xf32> to vector<143x128xf32>
    %166 = tpu.concatenate %15, %165 in 0 : vector<1x128xf32>, vector<143x128xf32> -> vector<144x128xf32>
    %167 = vector.extract_strided_slice %162 {offsets = [1, 0], sizes = [143, 128], strides = [1, 1]} : vector<144x128xf32> to vector<143x128xf32>
    %168 = tpu.concatenate %167, %15 in 0 : vector<143x128xf32>, vector<1x128xf32> -> vector<144x128xf32>
    %169 = vector.extract_strided_slice %164 {offsets = [0, 0], sizes = [128, 128], strides = [1, 1]} : vector<384x128xf32> to vector<128x128xf32>
    %cst_67 = arith.constant dense<0.000000e+00> : vector<144x128xf32>
    %170 = tpu.matmul %166, %169, %cst_67 {dimension_numbers = #tpu.dot_dimension_numbers<[1], [0], [0], [1], [0, 0, 1, 1], [], []>} : vector<144x128xf32>, vector<128x128xf32>, vector<144x128xf32> -> vector<144x128xf32>
    %171 = vector.extract_strided_slice %164 {offsets = [128, 0], sizes = [128, 128], strides = [1, 1]} : vector<384x128xf32> to vector<128x128xf32>
    %cst_68 = arith.constant dense<0.000000e+00> : vector<144x128xf32>
    %172 = tpu.matmul %162, %171, %cst_68 {dimension_numbers = #tpu.dot_dimension_numbers<[1], [0], [0], [1], [0, 0, 1, 1], [], []>} : vector<144x128xf32>, vector<128x128xf32>, vector<144x128xf32> -> vector<144x128xf32>
    %173 = arith.addf %170, %172 : vector<144x128xf32>
    %174 = vector.extract_strided_slice %164 {offsets = [256, 0], sizes = [128, 128], strides = [1, 1]} : vector<384x128xf32> to vector<128x128xf32>
    %cst_69 = arith.constant dense<0.000000e+00> : vector<144x128xf32>
    %175 = tpu.matmul %168, %174, %cst_69 {dimension_numbers = #tpu.dot_dimension_numbers<[1], [0], [0], [1], [0, 0, 1, 1], [], []>} : vector<144x128xf32>, vector<128x128xf32>, vector<144x128xf32> -> vector<144x128xf32>
    %176 = arith.addf %173, %175 : vector<144x128xf32>
    %c7_70 = arith.constant 7 : index
    %c0_71 = arith.constant 0 : index
    %177 = vector.load %arg3[%c7_70, %c0_71] : memref<8x128xf32, #tpu.memory_space<vmem>>, vector<1x128xf32>
    %178 = vector.broadcast %177 : vector<1x128xf32> to vector<144x128xf32>
    %179 = arith.addf %176, %178 : vector<144x128xf32>
    %cst_72 = arith.constant 0.000000e+00 : f32
    %180 = vector.broadcast %cst_72 : f32 to vector<144x128xf32>
    %181 = arith.maximumf %179, %180 : vector<144x128xf32>
    %cst_73 = arith.constant 0.000000e+00 : f32
    %182 = vector.broadcast %cst_73 : f32 to vector<144x128xf32>
    %183 = arith.select %14, %181, %182 : vector<144x128xi1>, vector<144x128xf32>
    %c0_74 = arith.constant 0 : index
    %c0_75 = arith.constant 0 : index
    %184 = vector.load %arg4[%c0_74, %c0_75] : memref<144x128xf32, #tpu.memory_space<vmem>>, vector<144x128xf32>
    tpu.vector_store %arg4[%c0_74, %c0_75], %183 {strides = array<i32>} : memref<144x128xf32, #tpu.memory_space<vmem>>, vector<144x128xf32>,
    return
  }
  func.func @transform_0(%arg0: i32) -> (i32, i32) {
    %c0_i32 = arith.constant 0 : i32
    %c0_i32_0 = arith.constant 0 : i32
    %c0_i32_1 = arith.constant 0 : i32
    return %c0_i32, %c0_i32_0 : i32, i32
  }
  func.func @transform_1(%arg0: i32) -> (i32, i32, i32) {
    %c0_i32 = arith.constant 0 : i32
    %c0_i32_0 = arith.constant 0 : i32
    %c0_i32_1 = arith.constant 0 : i32
    %c0_i32_2 = arith.constant 0 : i32
    return %c0_i32, %c0_i32_0, %c0_i32_1 : i32, i32, i32
  }
  func.func @transform_2(%arg0: i32) -> (i32, i32) {
    %c0_i32 = arith.constant 0 : i32
    %c0_i32_0 = arith.constant 0 : i32
    %c0_i32_1 = arith.constant 0 : i32
    return %c0_i32, %c0_i32_0 : i32, i32
  }
  func.func @transform_3(%arg0: i32) -> (i32, i32) {
    %c0_i32 = arith.constant 0 : i32
    %c0_i32_0 = arith.constant 0 : i32
    %c0_i32_1 = arith.constant 0 : i32
    return %c0_i32, %c0_i32_0 : i32, i32
  }
}

</mosaic_0001>

<bundles_post_ra>
// kernel: unet_forward.1
= control target key start
LH: loop header
LB: loop body
LE: loop exit
PB: predicated region body
PF: predicated region fallthrough
CT: control target
= control target key end

     0   :  { %8 = vsyncpa [#allocation3], 0  ;;  %s10103_s0 = inlined_call_operand.vmem [shape: f32[144,128], index: 0, kind: input, shape index: {}]   ;;  %s10104_s1 = inlined_call_operand.hbm [shape: f32[8,384,128], index: 1, kind: input, shape index: {}]   ;;  %s10105_s2 = inlined_call_operand.hbm [shape: f32[8,128], index: 2, kind: input, shape index: {}]   ;;  %s10106_s3 = inlined_call_operand.vmem [shape: f32[144,128], index: 3, kind: output, shape index: {}]  }
   0x1   :  { %9 = vsyncpa [#allocation5], 0  ;;  %s8304_s12 = smov [#allocation2]  }
   0x2   :  { %s17_s13 = sshll.u32 %s8304_s12, 4  ;;  %s18_s13 = int_to_ptr.vmem [resolvable:$true] %s17_s13 }
   0x3   :  { %s8268_s14 = scalar_lea.vmem %s18_s13, 49152  ;;  %p8273_p1 = scmp.lt.s32.totalorder %s18_s13, %s18_s13 }
   0x4   :  { %p8269_p0 = scmp.ne.s32.totalorder %s18_s13, %s8268_s14  ;;  %p8274_p2 = scmp.lt.s32.totalorder %s8268_s14, %s8268_s14 }
   0x6   :  { %p8275_p3 = por %p8274_p2, %p8273_p1 }
   0x8   :  { %p8276_p4 = pnand %p8275_p3, %p8269_p0 }
   0xa   :  { %8279 = shalt.err (!%p8276_p4)
}
   0xb   :  { %s8305_s15 = smov 128   ;;  %s8306_s16 = smov 8  }
   0xc   :  { %23 = dma.hbm_to_vmem [thread:$0]  %s10104_s1, 49152, %s18_s13, [#allocation3], %s8305_s15, %s8305_s15, %s8306_s16  }
   0xd   :  { %s8307_s19 = smov [#allocation4]  }
   0xe   :  { %s30_s20 = sshll.u32 %s8307_s19, 4  ;;  %s31_s20 = int_to_ptr.vmem [resolvable:$true] %s30_s20 }
   0xf   :  { %s8288_s21 = scalar_lea.vmem %s31_s20, 128  ;;  %p8293_p6 = scmp.lt.s32.totalorder %s31_s20, %s31_s20 }
  0x10   :  { %p8289_p5 = scmp.ne.s32.totalorder %s31_s20, %s8288_s21  ;;  %p8294_p7 = scmp.lt.s32.totalorder %s8288_s21, %s8288_s21 }
  0x12   :  { %p8295_p8 = por %p8294_p7, %p8293_p6 }
  0x14   :  { %p8296_p9 = pnand %p8295_p8, %p8289_p5 }
  0x16   :  { %8299 = shalt.err (!%p8296_p9)
}
  0x17   :  { %33 = dma.hbm_to_vmem [thread:$0]  %s10105_s2, 128, %s31_s20, [#allocation5]  }
  0x18   :  { %8300 = dma.done.wait [#allocation3], 49152  }
  0x19   :  { %8301 = vsyncadd [#allocation3], 4294918144 }
  0x1a   :  { %8302 = dma.done.wait [#allocation5], 128  }
  0x1b   :  { %8303 = vsyncadd [#allocation5], 4294967168  ;;  %v234_v0 = vld [vmem:[#allocation2 + $0xf8] sm:$0xff]  ;;  %v233_v2 = vld [vmem:[#allocation2 + $0xf0] sm:$0xff]  ;;  %vm269_vm0 = vcmask 1040384   ;;  %vm324_vm2 = vcmask 1046528  }
  0x1c   :  { %v218_v1 = vld [vmem:[#allocation2 + $0x78] sm:$0xff]  ;;  %6840 = vmatprep.subr.mxu0 %v234_v0  ;;  %v217_v3 = vld [vmem:[#allocation2 + $0x70] sm:$0xff]  ;;  %v232_v4 = vld [vmem:[#allocation2 + $0xe8] sm:$0xff] }
  0x1d   :  { %6899 = vmatprep.subr.mxu1 %v218_v1  ;;  %6841 = vmatpush3.msra.mxu0 %v234_v0  ;;  %v216_v5 = vld [vmem:[#allocation2 + $0x68] sm:$0xff]  ;;  %v231_v6 = vld [vmem:[#allocation2 + $0xe0] sm:$0xff]  ;;  %v230_v8 = vld [vmem:[#allocation2 + $0xd8] sm:$0xff] }
  0x1e   :  { %6900 = vmatpush3.msra.mxu1 %v218_v1  ;;  %6842 = vmatprep.subr.mxu0 %v233_v2  ;;  %v215_v7 = vld [vmem:[#allocation2 + $0x60] sm:$0xff]  ;;  %v214_v9 = vld [vmem:[#allocation2 + $0x58] sm:$0xff]  ;;  %v229_v10 = vld [vmem:[#allocation2 + $0xd0] sm:$0xff] }
  0x1f   :  { %6901 = vmatprep.subr.mxu1 %v217_v3  ;;  %6843 = vmatpush3.msra.mxu0 %v233_v2  ;;  %v213_v11 = vld [vmem:[#allocation2 + $0x50] sm:$0xff]  ;;  %v228_v12 = vld [vmem:[#allocation2 + $0xc8] sm:$0xff]  ;;  %v227_v14 = vld [vmem:[#allocation2 + $0xc0] sm:$0xff] }
  0x20   :  { %6902 = vmatpush3.msra.mxu1 %v217_v3  ;;  %6844 = vmatprep.subr.mxu0 %v232_v4  ;;  %v212_v13 = vld [vmem:[#allocation2 + $0x48] sm:$0xff]  ;;  %v211_v15 = vld [vmem:[#allocation2 + $0x40] sm:$0xff]  ;;  %v226_v16 = vld [vmem:[#allocation2 + $0xb8] sm:$0xff] }
  0x21   :  { %6903 = vmatprep.subr.mxu1 %v216_v5  ;;  %6845 = vmatpush3.msra.mxu0 %v232_v4  ;;  %v210_v17 = vld [vmem:[#allocation2 + $0x38] sm:$0xff]  ;;  %v225_v18 = vld [vmem:[#allocation2 + $0xb0] sm:$0xff]  ;;  %v224_v20 = vld [vmem:[#allocation2 + $0xa8] sm:$0xff] }
  0x22   :  { %6904 = vmatpush3.msra.mxu1 %v216_v5  ;;  %6846 = vmatprep.subr.mxu0 %v231_v6  ;;  %v209_v19 = vld [vmem:[#allocation2 + $0x30] sm:$0xff]  ;;  %v208_v21 = vld [vmem:[#allocation2 + $0x28] sm:$0xff]  ;;  %v223_v22 = vld [vmem:[#allocation2 + $0xa0] sm:$0xff] }
  0x23   :  { %6905 = vmatprep.subr.mxu1 %v215_v7  ;;  %6847 = vmatpush3.msra.mxu0 %v231_v6  ;;  %v207_v23 = vld [vmem:[#allocation2 + $0x20] sm:$0xff]  ;;  %v222_v24 = vld [vmem:[#allocation2 + $0x98] sm:$0xff]  ;;  %v221_v26 = vld [vmem:[#allocation2 + $0x90] sm:$0xff] }
  0x24   :  { %6906 = vmatpush3.msra.mxu1 %v215_v7  ;;  %6848 = vmatprep.subr.mxu0 %v230_v8  ;;  %v206_v25 = vld [vmem:[#allocation2 + $0x18] sm:$0xff]  ;;  %v205_v27 = vld [vmem:[#allocation2 + $0x10] sm:$0xff]  ;;  %v8337_v28 = vld [vmem:[%s10103_s0] sm:$0xff] }
  0x25   :  { %6907 = vmatprep.subr.mxu1 %v214_v9  ;;  %6849 = vmatpush3.msra.mxu0 %v230_v8  ;;  %v8342_v29 = vld [vmem:[%s10103_s0 + $0x8] sm:$0xff]  ;;  %v8347_v32 = vld [vmem:[%s10103_s0 + $0x10] sm:$0xff]  ;;  %v270_v33 = vrot.slane %v8337_v28, 7  ;;  %v219_v35 = vld [vmem:[#allocation2 + $0x80] sm:$0xff] }
  0x26   :  { %6908 = vmatpush3.msra.mxu1 %v214_v9  ;;  %6850 = vmatprep.subr.mxu0 %v229_v10  ;;  %v220_v30 = vld [vmem:[#allocation2 + $0x88] sm:$0xff]  ;;  %v271_v34 = vrot.slane %v8342_v29, 7  ;;  %v203_v36 = vld [vmem:[#allocation2] sm:$0xff]  ;;  %v8354_v37 = vld [vmem:[%s10103_s0 + $0x18] sm:$0xff]  ;;  %v273_v38 = vrot.slane %v8347_v32, 7 }
  0x27   :  { %6909 = vmatprep.subr.mxu1 %v213_v11  ;;  %6851 = vmatpush3.msra.mxu0 %v229_v10  ;;  %v204_v31 = vld [vmem:[#allocation2 + $0x8] sm:$0xff]  ;;  %vm8358_vm1 = vmneg %vm269_vm0  ;;  %v8365_v40 = vld [vmem:[%s10103_s0 + $0x20] sm:$0xff]  ;;  %v275_v42 = vrot.slane %v8354_v37, 7 }
  0x28   :  { %6910 = vmatpush3.msra.mxu1 %v213_v11  ;;  %6852 = vmatprep.subr.mxu0 %v228_v12  ;;  %v272_v41 = vsel %vm269_vm0, %v270_v33, %v271_v34  ;;  %v250_v43 = vld [vmem:[#allocation2 + $0x178] sm:$0xff]  ;;  %v274_v44 = vsel %vm269_vm0, %v271_v34, %v273_v38  ;;  %v277_v45 = vrot.slane %v8365_v40, 7  ;;  %v8377_v46 = vld [vmem:[%s10103_s0 + $0x28] sm:$0xff]  ;;  %v249_v47 = vld [vmem:[#allocation2 + $0x170] sm:$0xff] }
  0x29   :  { %6911 = vmatprep.subr.mxu1 %v212_v13  ;;  %6853 = vmatpush3.msra.mxu0 %v228_v12  ;;  %v276_v48 = vsel %vm269_vm0, %v273_v38, %v275_v42  ;;  %v8385_v49 = vld [vmem:[%s10103_s0 + $0x30] sm:$0xff]  ;;  %v279_v50 = vrot.slane %v8377_v46, 7  ;;  %v248_v51 = vld [vmem:[#allocation2 + $0x168] sm:$0xff]  ;;  %v8392_v53 = vld [vmem:[%s10103_s0 + $0x38] sm:$0xff]  ;;  %v326_v38 = vrot.slane %v8342_v29, 1 }
  0x2a   :  { %6912 = vmatpush3.msra.mxu1 %v212_v13  ;;  %6854 = vmatprep.subr.mxu0 %v227_v14  ;;  %v278_v52 = vsel %vm269_vm0, %v275_v42, %v277_v45  ;;  %v281_v54 = vrot.slane %v8385_v49, 7  ;;  %v247_v55 = vld [vmem:[#allocation2 + $0x160] sm:$0xff]  ;;  %v283_v58 = vrot.slane %v8392_v53, 7  ;;  %v246_v59 = vld [vmem:[#allocation2 + $0x158] sm:$0xff]  ;;  %v8407_v60 = vld [vmem:[%s10103_s0 + $0x48] sm:$0xff] }
  0x2b   :  { %6913 = vmatprep.subr.mxu1 %v211_v15  ;;  %6855 = vmatpush3.msra.mxu0 %v227_v14  ;;  %v8400_v56 = vld [vmem:[%s10103_s0 + $0x40] sm:$0xff]  ;;  %v280_v57 = vsel %vm269_vm0, %v277_v45, %v279_v50  ;;  %v245_v63 = vld [vmem:[#allocation2 + $0x150] sm:$0xff]  ;;  %v287_v2 = vrot.slane %v8407_v60, 7  ;;  %v244_v3 = vld [vmem:[#allocation2 + $0x148] sm:$0xff]  ;;  %v330_v45 = vrot.slane %v8354_v37, 1 }
  0x2c   :  { %6914 = vmatpush3.msra.mxu1 %v211_v15  ;;  %6856 = vmatprep.subr.mxu0 %v226_v16  ;;  %v282_v61 = vsel %vm269_vm0, %v279_v50, %v281_v54  ;;  %v285_v62 = vrot.slane %v8400_v56, 7  ;;  %v8415_v0 = vld [vmem:[%s10103_s0 + $0x50] sm:$0xff]  ;;  %v284_v1 = vsel %vm269_vm0, %v281_v54, %v283_v58  ;;  %v8423_v4 = vld [vmem:[%s10103_s0 + $0x58] sm:$0xff]  ;;  %v8431_v7 = vld [vmem:[%s10103_s0 + $0x60] sm:$0xff]  ;;  %v338_v54 = vrot.slane %v8392_v53, 1 }
  0x2d   :  { %6915 = vmatprep.subr.mxu1 %v210_v17  ;;  %6857 = vmatpush3.msra.mxu0 %v226_v16  ;;  %v289_v6 = vrot.slane %v8415_v0, 7  ;;  %v243_v8 = vld [vmem:[#allocation2 + $0x140] sm:$0xff]  ;;  %v291_v10 = vrot.slane %v8423_v4, 7  ;;  %v242_v11 = vld [vmem:[#allocation2 + $0x138] sm:$0xff]  ;;  %v293_v12 = vrot.slane %v8431_v7, 7  ;;  %v8440_v13 = vld [vmem:[%s10103_s0 + $0x68] sm:$0xff] }
  0x2e   :  { %6916 = vmatpush3.msra.mxu1 %v210_v17  ;;  %6858 = vmatprep.subr.mxu0 %v225_v18  ;;  %v286_v5 = vsel %vm269_vm0, %v283_v58, %v285_v62  ;;  %v288_v9 = vsel %vm269_vm0, %v285_v62, %v287_v2  ;;  %v241_v15 = vld [vmem:[#allocation2 + $0x130] sm:$0xff] }
  0x2f   :  { %6917 = vmatprep.subr.mxu1 %v209_v19  ;;  %6859 = vmatpush3.msra.mxu0 %v225_v18  ;;  %v290_v14 = vsel %vm269_vm0, %v287_v2, %v289_v6  ;;  %v8447_v16 = vld [vmem:[%s10103_s0 + $0x70] sm:$0xff]  ;;  %v292_v17 = vsel %vm269_vm0, %v289_v6, %v291_v10  ;;  %v295_v18 = vrot.slane %v8440_v13, 7 }
  0x30   :  { %6918 = vmatpush3.msra.mxu1 %v209_v19  ;;  %6860 = vmatprep.subr.mxu0 %v224_v20  ;;  %v294_v19 = vsel %vm269_vm0, %v291_v10, %v293_v12  ;;  %v953_v10 = vld [vmem:[#allocation2 + $0x278] sm:$0xff] }
  0x31   :  { %6919 = vmatprep.subr.mxu1 %v208_v21  ;;  %6861 = vmatpush3.msra.mxu0 %v224_v20  ;;  %v8456_v20 = vld [vmem:[%s10103_s0 + $0x78] sm:$0xff] }
  0x32   :  { %6920 = vmatpush3.msra.mxu1 %v208_v21  ;;  %6862 = vmatprep.subr.mxu0 %v223_v22  ;;  %v240_v21 = vld [vmem:[#allocation2 + $0x128] sm:$0xff]  ;;  %v354_v2 = vrot.slane %v8456_v20, 1 }
  0x33   :  { %6921 = vmatprep.subr.mxu1 %v207_v23  ;;  %6863 = vmatpush3.msra.mxu0 %v223_v22  ;;  %v297_v22 = vrot.slane %v8447_v16, 7 }
  0x34   :  { %6922 = vmatpush3.msra.mxu1 %v207_v23  ;;  %6864 = vmatprep.subr.mxu0 %v222_v24  ;;  %v8463_v23 = vld [vmem:[%s10103_s0 + $0x80] sm:$0xff] }
  0x35   :  { %6923 = vmatprep.subr.mxu1 %v206_v25  ;;  %6865 = vmatpush3.msra.mxu0 %v222_v24  ;;  %v296_v24 = vsel %vm269_vm0, %v293_v12, %v295_v18  ;;  %v951_v12 = vld [vmem:[#allocation2 + $0x268] sm:$0xff] }
  0x36   :  { %6924 = vmatpush3.msra.mxu1 %v206_v25  ;;  %6866 = vmatprep.subr.mxu0 %v221_v26  ;;  %v299_v25 = vrot.slane %v8456_v20, 7 }
  0x37   :  { %6925 = vmatprep.subr.mxu1 %v205_v27  ;;  %6867 = vmatpush3.msra.mxu0 %v221_v26  ;;  %v239_v26 = vld [vmem:[#allocation2 + $0x120] sm:$0xff] }
  0x38   :  { %6926 = vmatpush3.msra.mxu1 %v205_v27  ;;  %6868 = vmatprep.subr.mxu0 %v220_v30  ;;  %v8471_v27 = vld [vmem:[%s10103_s0 + $0x88] sm:$0xff]  ;;  %v300_v34 = vsel %vm269_vm0, %v297_v22, %v299_v25 }
  0x39   :  { %6927 = vmatprep.subr.mxu1 %v204_v31  ;;  %6869 = vmatpush3.msra.mxu0 %v220_v30  ;;  %v298_v30 = vsel %vm269_vm0, %v295_v18, %v297_v22  ;;  %v358_v6 = vrot.slane %v8471_v27, 1  ;;  %v934_v18 = vld [vmem:[#allocation2 + $0x1e0] sm:$0xff]  ;;  %v932_v22 = vld [vmem:[#allocation2 + $0x1d0] sm:$0xff] }
  0x3a   :  { %6928 = vmatpush3.msra.mxu1 %v204_v31  ;;  %6870 = vmatprep.subr.mxu0 %v219_v35  ;;  %v301_v31 = vrot.slane %v8463_v23, 7 }
  0x3b   :  { %6929 = vmatprep.subr.mxu1 %v203_v36  ;;  %6871 = vmatpush3.msra.mxu0 %v219_v35  ;;  %v303_v35 = vrot.slane %v8471_v27, 7 }
  0x3c   :  { %6872 = vmatprep.mubr.f32.mxu0 %v8337_v28  ;;  %6930 = vmatpush3.msra.mxu1 %v203_v36  ;;  %v325_v36 = vrot.slane %v8337_v28, 1  ;;  %v302_v42 = vsel %vm269_vm0, %v299_v25, %v301_v31  ;;  %v945_v25 = vld [vmem:[#allocation2 + $0x238] sm:$0xff] }
  0x3d   :  { %6931 = vmatprep.mubr.msk.f32.mxu1 %vm8358_vm1, %v270_v33  ;;  %6873 = vmatmul.mubr.f32.vlgmr.msra.gmra.mxu0 %v8342_v29  ;;  %v238_v33 = vld [vmem:[#allocation2 + $0x118] sm:$0xff]  ;;  %v304_v28 = vsel %vm269_vm0, %v301_v31, %v303_v35  ;;  %v235_v29 = vld [vmem:[#allocation2 + $0x100] sm:$0xff]  ;;  %v943_v31 = vld [vmem:[#allocation2 + $0x228] sm:$0xff] }
  0x3e   :  { %6932 = vmatmul.mubr.f32.vlgmr.msra.gmra.mxu1 %v272_v41  ;;  %6958 = vmatprep.subr.mxu0 %v250_v43  ;;  %v237_v41 = vld [vmem:[#allocation2 + $0x110] sm:$0xff]  ;;  %v927_v35 = vld [vmem:[#allocation2 + $0x1a8] sm:$0xff] }
  0x3f   :  { %6875 = vmatprep.mubr.f32.mxu0 %v8347_v32  ;;  %6959 = vmatpush3.msra.mxu0 %v250_v43  ;;  %v328_v43 = vrot.slane %v8347_v32, 1  ;;  %v332_v32 = vrot.slane %v8365_v40, 1 }
  0x40   :  { %6934 = vmatprep.mubr.f32.mxu1 %v274_v44  ;;  %6960 = vmatprep.subr.mxu0 %v249_v47  ;;  %v236_v44 = vld [vmem:[#allocation2 + $0x108] sm:$0xff] }
  0x41   :  { %6876 = vmatmul.mubr.f32.gmra.mxu0 %v8354_v37  ;;  %v334_v37 = vrot.slane %v8377_v46, 1  ;;  %v331_v50 = vsel %vm324_vm2, %v328_v43, %v330_v45  ;;  %7017 = vmatprep.subr.mxu1 %v953_v10 }
  0x42   :  { %6935 = vmatmul.mubr.f32.gmra.mxu1 %v276_v48  ;;  %6961 = vmatpush3.msra.mxu0 %v249_v47  ;;  %v327_v47 = vsel %vm324_vm2, %v325_v36, %v326_v38  ;;  %v329_v48 = vsel %vm324_vm2, %v326_v38, %v328_v43  ;;  %v941_v36 = vld [vmem:[#allocation2 + $0x218] sm:$0xff]  ;;  %v926_v38 = vld [vmem:[#allocation2 + $0x1a0] sm:$0xff]  ;;  %v939_v43 = vld [vmem:[#allocation2 + $0x208] sm:$0xff] }
  0x43   :  { %6878 = vmatprep.mubr.f32.mxu0 %v8365_v40  ;;  %6962 = vmatprep.subr.mxu0 %v248_v51  ;;  %v335_v40 = vsel %vm324_vm2, %v332_v32, %v334_v37 }
  0x44   :  { %6937 = vmatprep.mubr.f32.mxu1 %v278_v52  ;;  %6963 = vmatpush3.msra.mxu0 %v248_v51  ;;  %v336_v51 = vrot.slane %v8385_v49, 1  ;;  %v333_v52 = vsel %vm324_vm2, %v330_v45, %v332_v32  ;;  %v938_v45 = vld [vmem:[#allocation2 + $0x200] sm:$0xff] }
  0x45   :  { %6964 = vmatprep.subr.mxu0 %v247_v55  ;;  %6879 = vmatmul.mubr.f32.gmra.mxu0 %v8377_v46 }
  0x46   :  { %6938 = vmatmul.mubr.f32.gmra.mxu1 %v280_v57  ;;  %6965 = vmatpush3.msra.mxu0 %v247_v55  ;;  %v340_v55 = vrot.slane %v8400_v56, 1  ;;  %v337_v46 = vsel %vm324_vm2, %v334_v37, %v336_v51  ;;  %v342_v57 = vrot.slane %v8407_v60, 1  ;;  %v339_v58 = vsel %vm324_vm2, %v336_v51, %v338_v54 }
  0x47   :  { %6966 = vmatprep.subr.mxu0 %v246_v59  ;;  %6881 = vmatprep.mubr.f32.mxu0 %v8385_v49  ;;  %v344_v49 = vrot.slane %v8415_v0, 1 }
  0x48   :  { %6967 = vmatpush3.msra.mxu0 %v246_v59  ;;  %6940 = vmatprep.mubr.f32.mxu1 %v282_v61  ;;  %v341_v59 = vsel %vm324_vm2, %v338_v54, %v340_v55  ;;  %v343_v61 = vsel %vm324_vm2, %v340_v55, %v342_v57 }
  0x49   :  { %6882 = vmatmul.mubr.f32.gmra.mxu0 %v8392_v53  ;;  %6968 = vmatprep.subr.mxu0 %v245_v63  ;;  %v346_v53 = vrot.slane %v8423_v4, 1  ;;  %v345_v62 = vsel %vm324_vm2, %v342_v57, %v344_v49 }
  0x4a   :  { %6941 = vmatmul.mubr.f32.gmra.mxu1 %v284_v1  ;;  %6969 = vmatpush3.msra.mxu0 %v245_v63 }
  0x4b   :  { %6970 = vmatprep.subr.mxu0 %v244_v3  ;;  %6884 = vmatprep.mubr.f32.mxu0 %v8400_v56  ;;  %v348_v56 = vrot.slane %v8431_v7, 1  ;;  %v347_v63 = vsel %vm324_vm2, %v344_v49, %v346_v53 }
  0x4c   :  { %6943 = vmatprep.mubr.f32.mxu1 %v286_v5  ;;  %6971 = vmatpush3.msra.mxu0 %v244_v3 }
  0x4d   :  { %6885 = vmatmul.mubr.f32.gmra.mxu0 %v8407_v60  ;;  %6972 = vmatprep.subr.mxu0 %v243_v8  ;;  %v350_v60 = vrot.slane %v8440_v13, 1  ;;  %v349_v1 = vsel %vm324_vm2, %v346_v53, %v348_v56 }
  0x4e   :  { %6944 = vmatmul.mubr.f32.gmra.mxu1 %v288_v9  ;;  %6973 = vmatpush3.msra.mxu0 %v243_v8 }
  0x4f   :  { %6974 = vmatprep.subr.mxu0 %v242_v11  ;;  %6887 = vmatprep.mubr.f32.mxu0 %v8415_v0  ;;  %v352_v0 = vrot.slane %v8447_v16, 1  ;;  %v351_v3 = vsel %vm324_vm2, %v348_v56, %v350_v60 }
  0x50   :  { %6946 = vmatprep.mubr.f32.mxu1 %v290_v14  ;;  %6975 = vmatpush3.msra.mxu0 %v242_v11  ;;  %v952_v11 = vld [vmem:[#allocation2 + $0x270] sm:$0xff]  ;;  %v950_v14 = vld [vmem:[#allocation2 + $0x260] sm:$0xff] }
  0x51   :  { %6888 = vmatmul.mubr.f32.gmra.mxu0 %v8423_v4  ;;  %6976 = vmatprep.subr.mxu0 %v241_v15  ;;  %v356_v4 = vrot.slane %v8463_v23, 1  ;;  %v353_v5 = vsel %vm324_vm2, %v350_v60, %v352_v0 }
  0x52   :  { %6947 = vmatmul.mubr.f32.gmra.mxu1 %v292_v17  ;;  %6977 = vmatpush3.msra.mxu0 %v241_v15  ;;  %v936_v15 = vld [vmem:[#allocation2 + $0x1f0] sm:$0xff]  ;;  %v935_v17 = vld [vmem:[#allocation2 + $0x1e8] sm:$0xff] }
  0x53   :  { %6890 = vmatprep.mubr.f32.mxu0 %v8431_v7  ;;  %6949 = vmatprep.mubr.f32.mxu1 %v294_v19  ;;  %v355_v7 = vsel %vm324_vm2, %v352_v0, %v354_v2  ;;  %v357_v8 = vsel %vm324_vm2, %v354_v2, %v356_v4  ;;  %v359_v9 = vsel %vm324_vm2, %v356_v4, %v358_v6  ;;  %v948_v19 = vld [vmem:[#allocation2 + $0x250] sm:$0xff] }
  0x54   :  { %6978 = vmatprep.subr.mxu0 %v240_v21  ;;  %7018 = vmatpush3.msra.mxu1 %v953_v10 }
  0x55   :  { %6891 = vmatmul.mubr.f32.gmra.mxu0 %v8440_v13  ;;  %7019 = vmatprep.subr.mxu1 %v952_v11  ;;  %v937_v13 = vld [vmem:[#allocation2 + $0x1f8] sm:$0xff] }
  0x56   :  { %6950 = vmatmul.mubr.f32.gmra.mxu1 %v296_v24  ;;  %6979 = vmatpush3.msra.mxu0 %v240_v21  ;;  %v947_v21 = vld [vmem:[#allocation2 + $0x248] sm:$0xff] }
  0x57   :  { %6980 = vmatprep.subr.mxu0 %v239_v26  ;;  %6893 = vmatprep.mubr.f32.mxu0 %v8447_v16  ;;  %v949_v16 = vld [vmem:[#allocation2 + $0x258] sm:$0xff]  ;;  %v931_v24 = vld [vmem:[#allocation2 + $0x1c8] sm:$0xff] }
  0x58   :  { %6981 = vmatpush3.msra.mxu0 %v239_v26  ;;  %6952 = vmatprep.mubr.f32.mxu1 %v298_v30  ;;  %v930_v26 = vld [vmem:[#allocation2 + $0x1c0] sm:$0xff]  ;;  %v929_v30 = vld [vmem:[#allocation2 + $0x1b8] sm:$0xff] }
  0x59   :  { %6982 = vmatprep.subr.mxu0 %v238_v33  ;;  %6894 = vmatmul.mubr.f32.gmra.mxu0 %v8456_v20  ;;  %v933_v20 = vld [vmem:[#allocation2 + $0x1d8] sm:$0xff] }
  0x5a   :  { %6953 = vmatmul.mubr.f32.gmra.mxu1 %v300_v34  ;;  %6983 = vmatpush3.msra.mxu0 %v238_v33  ;;  %v928_v33 = vld [vmem:[#allocation2 + $0x1b0] sm:$0xff]  ;;  %v942_v34 = vld [vmem:[#allocation2 + $0x220] sm:$0xff] }
  0x5b   :  { %6984 = vmatprep.subr.mxu0 %v237_v41  ;;  %6896 = vmatprep.mubr.f32.mxu0 %v8463_v23  ;;  %v946_v23 = vld [vmem:[#allocation2 + $0x240] sm:$0xff] }
  0x5c   :  { %6955 = vmatprep.mubr.f32.mxu1 %v302_v42  ;;  %6985 = vmatpush3.msra.mxu0 %v237_v41  ;;  %v940_v41 = vld [vmem:[#allocation2 + $0x210] sm:$0xff]  ;;  %v925_v42 = vld [vmem:[#allocation2 + $0x198] sm:$0xff] }
  0x5d   :  { %6897 = vmatmul.mubr.f32.gmra.mxu0 %v8471_v27  ;;  %6986 = vmatprep.subr.mxu0 %v236_v44  ;;  %v944_v27 = vld [vmem:[#allocation2 + $0x230] sm:$0xff] }
  0x5e   :  { %6956 = vmatmul.mubr.f32.gmra.mxu1 %v304_v28  ;;  %6987 = vmatpush3.msra.mxu0 %v236_v44  ;;  %v924_v44 = vld [vmem:[#allocation2 + $0x190] sm:$0xff]  ;;  %v923_v28 = vld [vmem:[#allocation2 + $0x188] sm:$0xff] }
  0x5f   :  { %6988 = vmatprep.subr.mxu0 %v235_v29  ;;  %6990 = vmatprep.mubr.f32.mxu0 %v327_v47  ;;  %v8520_v47 = vld [vmem:[#allocation2 + $0x2f8] sm:$0xff] }
  0x60   :  { %6989 = vmatpush3.msra.mxu0 %v235_v29  ;;  %7020 = vmatpush3.msra.mxu1 %v952_v11  ;;  %v922_v29 = vld [vmem:[#allocation2 + $0x180] sm:$0xff] }
  0x61   :  { %6991 = vmatmul.mubr.f32.vlgmr.msra.gmra.mxu0 %v329_v48  ;;  %7021 = vmatprep.subr.mxu1 %v951_v12  ;;  %v8547_v11 = vld [vmem:[#allocation4] ss:$0 sm:$0xff] }
  0x62   :  { %6993 = vmatprep.mubr.f32.mxu0 %v331_v50  ;;  %7022 = vmatpush3.msra.mxu1 %v951_v12 }
  0x63   :  { %7076 = vmatprep.subr.mxu0 %v937_v13  ;;  %7023 = vmatprep.subr.mxu1 %v950_v14 }
  0x64   :  { %7077 = vmatpush3.msra.mxu0 %v937_v13  ;;  %7024 = vmatpush3.msra.mxu1 %v950_v14 }
  0x65   :  { %6994 = vmatmul.mubr.f32.gmra.mxu0 %v333_v52  ;;  %7078 = vmatprep.subr.mxu0 %v936_v15 }
  0x66   :  { %6996 = vmatprep.mubr.f32.mxu0 %v335_v40  ;;  %7025 = vmatprep.subr.mxu1 %v949_v16 }
  0x67   :  { %7079 = vmatpush3.msra.mxu0 %v936_v15  ;;  %7026 = vmatpush3.msra.mxu1 %v949_v16 }
  0x68   :  { %7080 = vmatprep.subr.mxu0 %v935_v17  ;;  %7027 = vmatprep.subr.mxu1 %v948_v19 }
  0x69   :  { %6997 = vmatmul.mubr.f32.gmra.mxu0 %v337_v46  ;;  %7028 = vmatpush3.msra.mxu1 %v948_v19 }
  0x6a   :  { %6999 = vmatprep.mubr.f32.mxu0 %v339_v58  ;;  %7081 = vmatpush3.msra.mxu0 %v935_v17 }
  0x6b   :  { %7082 = vmatprep.subr.mxu0 %v934_v18  ;;  %7029 = vmatprep.subr.mxu1 %v947_v21 }
  0x6c   :  { %7083 = vmatpush3.msra.mxu0 %v934_v18  ;;  %7030 = vmatpush3.msra.mxu1 %v947_v21 }
  0x6d   :  { %7000 = vmatmul.mubr.f32.gmra.mxu0 %v341_v59  ;;  %7084 = vmatprep.subr.mxu0 %v933_v20 }
  0x6e   :  { %7002 = vmatprep.mubr.f32.mxu0 %v343_v61  ;;  %7085 = vmatpush3.msra.mxu0 %v933_v20 }
  0x6f   :  { %7086 = vmatprep.subr.mxu0 %v932_v22  ;;  %7031 = vmatprep.subr.mxu1 %v946_v23 }
  0x70   :  { %7087 = vmatpush3.msra.mxu0 %v932_v22  ;;  %7032 = vmatpush3.msra.mxu1 %v946_v23 }
  0x71   :  { %7003 = vmatmul.mubr.f32.gmra.mxu0 %v345_v62  ;;  %7088 = vmatprep.subr.mxu0 %v931_v24 }
  0x72   :  { %7005 = vmatprep.mubr.f32.mxu0 %v347_v63  ;;  %7033 = vmatprep.subr.mxu1 %v945_v25 }
  0x73   :  { %7089 = vmatpush3.msra.mxu0 %v931_v24  ;;  %7034 = vmatpush3.msra.mxu1 %v945_v25 }
  0x74   :  { %7090 = vmatprep.subr.mxu0 %v930_v26  ;;  %7035 = vmatprep.subr.mxu1 %v944_v27 }
  0x75   :  { %7006 = vmatmul.mubr.f32.gmra.mxu0 %v349_v1  ;;  %7036 = vmatpush3.msra.mxu1 %v944_v27 }
  0x76   :  { %7008 = vmatprep.mubr.f32.mxu0 %v351_v3  ;;  %7091 = vmatpush3.msra.mxu0 %v930_v26 }
  0x77   :  { %7092 = vmatprep.subr.mxu0 %v929_v30  ;;  %7037 = vmatprep.subr.mxu1 %v943_v31 }
  0x78   :  { %7093 = vmatpush3.msra.mxu0 %v929_v30  ;;  %7038 = vmatpush3.msra.mxu1 %v943_v31 }
  0x79   :  { %7009 = vmatmul.mubr.f32.gmra.mxu0 %v353_v5  ;;  %7094 = vmatprep.subr.mxu0 %v928_v33 }
  0x7a   :  { %7011 = vmatprep.mubr.f32.mxu0 %v355_v7  ;;  %7039 = vmatprep.subr.mxu1 %v942_v34 }
  0x7b   :  { %7095 = vmatpush3.msra.mxu0 %v928_v33  ;;  %7040 = vmatpush3.msra.mxu1 %v942_v34 }
  0x7c   :  { %7096 = vmatprep.subr.mxu0 %v927_v35  ;;  %7041 = vmatprep.subr.mxu1 %v941_v36 }
  0x7d   :  { %7012 = vmatmul.mubr.f32.gmra.mxu0 %v357_v8  ;;  %7042 = vmatpush3.msra.mxu1 %v941_v36  ;;  %v58_v8 = vlaneseq }
  0x7e   :  { %7014 = vmatprep.mubr.f32.mxu0 %v359_v9  ;;  %7097 = vmatpush3.msra.mxu0 %v927_v35 }
  0x7f   :  { %7098 = vmatprep.subr.mxu0 %v926_v38  ;;  %7043 = vmatprep.subr.mxu1 %v940_v41  ;;  %v8551_v15 = vshrl.u32 %v58_v8, 7 }
  0x80   :  { %7099 = vmatpush3.msra.mxu0 %v926_v38  ;;  %7044 = vmatpush3.msra.mxu1 %v940_v41 }
  0x81   :  { %7015 = vmatmul.mubr.msk.f32.gmra.mxu0 %vm324_vm2, %v358_v6  ;;  %7100 = vmatprep.subr.mxu0 %v925_v42  ;;  %vm77_vm3 = vcmp.ge.s32.totalorder %v8551_v15, 1 }
  0x82   :  { %7045 = vmatprep.subr.mxu1 %v939_v43  ;;  %7101 = vmatpush3.msra.mxu0 %v925_v42  ;;  %v968_v42 = vld [vmem:[#allocation2 + $0x2f0] sm:$0xff] }
  0x83   :  { %7046 = vmatpush3.msra.mxu1 %v939_v43  ;;  %7102 = vmatprep.subr.mxu0 %v924_v44 }
  0x84   :  { %7047 = vmatprep.subr.mxu1 %v938_v45  ;;  %7103 = vmatpush3.msra.mxu0 %v924_v44 }
  0x85   :  { %7048 = vmatpush3.msra.mxu1 %v938_v45  ;;  %7104 = vmatprep.subr.mxu0 %v923_v28 }
  0x86   :  { %7105 = vmatpush3.msra.mxu0 %v923_v28  ;;  %7135 = vmatprep.subr.mxu1 %v8520_v47 }
  0x87   :  { %7106 = vmatprep.subr.mxu0 %v922_v29 }
  0x88   :  { %7107 = vmatpush3.msra.mxu0 %v922_v29 }
  0xfd   :  { %v6874_v32 = vpop.f32.mrf.mxu0 }
  0xfe   :  { %v6933_v48 = vpop.f32.mrf.mxu1 }
  0xff   :  { %v445_v37 = vpop.f32.mrf.mxu0  ;;  %v606_v9 = vadd.f32 %v6933_v48, %v6874_v32 }
 0x100   :  { %v600_v50 = vpop.f32.mrf.mxu1 }
 0x101   :  { %v6877_v51 = vpop.f32.mrf.mxu0  ;;  %v601_v12 = vadd.f32 %v600_v50, %v445_v37 }
 0x102   :  { %v6936_v52 = vpop.f32.mrf.mxu1 }
 0x103   :  { %v455_v54 = vpop.f32.mrf.mxu0  ;;  %v616_v17 = vadd.f32 %v6936_v52, %v6877_v51 }
 0x104   :  { %v610_v55 = vpop.f32.mrf.mxu1 }
 0x105   :  { %v6880_v40 = vpop.f32.mrf.mxu0  ;;  %v611_v21 = vadd.f32 %v610_v55, %v455_v54 }
 0x106   :  { %v6939_v58 = vpop.f32.mrf.mxu1 }
 0x107   :  { %v465_v46 = vpop.f32.mrf.mxu0  ;;  %v626_v27 = vadd.f32 %v6939_v58, %v6880_v40 }
 0x108   :  { %v620_v53 = vpop.f32.mrf.mxu1 }
 0x109   :  { %v6883_v57 = vpop.f32.mrf.mxu0  ;;  %v621_v35 = vadd.f32 %v620_v53, %v465_v46  ;;  %v967_v46 = vld [vmem:[#allocation2 + $0x2e8] sm:$0xff] }
 0x10a   :  { %v6942_v62 = vpop.f32.mrf.mxu1 }
 0x10b   :  { %v475_v49 = vpop.f32.mrf.mxu0  ;;  %v636_v32 = vadd.f32 %v6942_v62, %v6883_v57 }
 0x10c   :  { %v630_v0 = vpop.f32.mrf.mxu1 }
 0x10d   :  { %v8523_v59 = vpop.f32.mrf.mxu0  ;;  %v631_v54 = vadd.f32 %v630_v0, %v475_v49 }
 0x10e   :  { %v8537_v3 = vpop.f32.mrf.mxu1 }
 0x10f   :  { %v8525_v61 = vpop.f32.mrf.mxu0  ;;  %v646_v49 = vadd.f32 %v8537_v3, %v8523_v59 }
 0x110   :  { %v8543_v6 = vpop.f32.mrf.mxu1 }
 0x111   :  { %v8527_v56 = vpop.f32.mrf.mxu0 }
 0x112   :  { %v8549_v14 = vpop.f32.mrf.mxu1 }
 0x113   :  { %v8529_v60 = vpop.f32.mrf.mxu0 }
 0x114   :  { %v8555_v24 = vpop.f32.mrf.mxu1 }
 0x115   :  { %v8531_v63 = vpop.f32.mrf.mxu0 }
 0x116   :  { %v8568_v43 = vpop.f32.mrf.mxu1 }
 0x117   :  { %v8533_v1 = vpop.f32.mrf.mxu0 }
 0x118   :  { %v8584_v57 = vpop.f32.mrf.mxu1 }
 0x119   :  { %v8535_v2 = vpop.f32.mrf.mxu0 }
 0x11b   :  { %v8539_v4 = vpop.f32.mrf.mxu0 }
 0x11d   :  { %v8541_v5 = vpop.f32.mrf.mxu0 }
 0x11f   :  { %v8545_v7 = vpop.f32.mrf.mxu0 }
 0x121   :  { %v6992_v10 = vpop.f32.mrf.mxu0 }
 0x122   :  { %v845_v13 = vadd.f32 %v6992_v10, %v606_v9  ;;  %v8597_v10 = vadd.s32 72, %v8551_v15 }
 0x123   :  { %v755_v16 = vpop.f32.mrf.mxu0 }
 0x124   :  { %v868_v18 = vadd.f32 %v8547_v11, %v845_v13  ;;  %v844_v19 = vadd.f32 %v755_v16, %v601_v12  ;;  %vm140_vm4 = vcmp.ge.s32.totalorder %v8597_v10, 73 }
 0x125   :  { %v6995_v20 = vpop.f32.mrf.mxu0 }
 0x126   :  { %v867_v22 = vadd.f32 %v8547_v11, %v844_v19  ;;  %v847_v23 = vadd.f32 %v6995_v20, %v616_v17  ;;  %v8557_v25 = vmax.f32 %v868_v18, 0.0  ;;  %v966_v17 = vld [vmem:[#allocation2 + $0x2e0] sm:$0xff]  ;;  %v641_v18 = vadd.f32 %v8543_v6, %v8525_v61  ;;  %v965_v6 = vld [vmem:[#allocation2 + $0x2d8] sm:$0xff] }
 0x127   :  { %v765_v26 = vpop.f32.mrf.mxu0  ;;  %v656_v20 = vadd.f32 %v8549_v14, %v8527_v56 }
 0x128   :  { %v885_v30 = vmax.f32 %v867_v22, 0.0  ;;  %v870_v31 = vadd.f32 %v8547_v11, %v847_v23  ;;  %v846_v33 = vadd.f32 %v765_v26, %v611_v21  ;;  %v989_v44 = vrot.slane %v8557_v25, 7  ;;  %v6954_v21 = vpop.f32.mrf.mxu1 }
 0x129   :  { %v6998_v34 = vpop.f32.mrf.mxu0  ;;  %v8611_v23 = vadd.s32 64, %v8551_v15 }
 0x12a   :  { %v8563_v36 = vsel %vm77_vm3, %v885_v30, 0.0  ;;  %v869_v38 = vadd.f32 %v8547_v11, %v846_v33  ;;  %v849_v41 = vadd.f32 %v6998_v34, %v626_v27  ;;  %7049 = vmatprep.mubr.msk.f32.mxu1 %vm77_vm3, %v885_v30  ;;  %v8572_v28 = vmax.f32 %v870_v31, 0.0 }
 0x12b   :  { %v988_v45 = vrot.slane %v8563_v36, 7  ;;  %v775_v29 = vpop.f32.mrf.mxu0  ;;  %7050 = vmatmul.mubr.f32.vlgmr.msra.gmra.mxu1 %v8557_v25  ;;  %v651_v31 = vadd.f32 %v8555_v24, %v8529_v60  ;;  %vm103_vm5 = vcmp.le.s32.totalorder %v8611_v23, 64  ;;  %v963_v24 = vld [vmem:[#allocation2 + $0x2c8] sm:$0xff] }
 0x12c   :  { %v872_v48 = vadd.f32 %v8547_v11, %v849_v41  ;;  %v848_v37 = vadd.f32 %v775_v29, %v621_v35  ;;  %7136 = vmatpush3.msra.mxu1 %v8520_v47  ;;  %v8577_v50 = vmax.f32 %v869_v38, 0.0  ;;  %v993_v62 = vrot.slane %v8572_v28, 7  ;;  %v964_v35 = vld [vmem:[#allocation2 + $0x2d0] sm:$0xff] }
 0x12d   :  { %v7001_v51 = vpop.f32.mrf.mxu0  ;;  %7108 = vmatprep.mubr.msk.f32.mxu0 %vm8358_vm1, %v988_v45  ;;  %v990_v52 = vsel %vm269_vm0, %v988_v45, %v989_v44  ;;  %7137 = vmatprep.subr.mxu1 %v968_v42  ;;  %v670_v45 = vpop.f32.mrf.mxu1 }
 0x12e   :  { %v871_v40 = vadd.f32 %v8547_v11, %v848_v37  ;;  %v851_v55 = vadd.f32 %v7001_v51, %v636_v32  ;;  %7052 = vmatprep.mubr.f32.mxu1 %v8577_v50  ;;  %7109 = vmatmul.mubr.f32.vlgmr.msra.gmra.mxu0 %v990_v52  ;;  %v8586_v47 = vmax.f32 %v872_v48, 0.0  ;;  %v991_v53 = vrot.slane %v8577_v50, 7 }
 0x12f   :  { %v785_v58 = vpop.f32.mrf.mxu0  ;;  %7053 = vmatmul.mubr.f32.gmra.mxu1 %v8572_v28  ;;  %v666_v32 = vadd.f32 %v8568_v43, %v8531_v63  ;;  %v661_v63 = vadd.f32 %v8584_v57, %v8533_v1  ;;  %v676_v57 = vadd.f32 %v6954_v21, %v8535_v2  ;;  %v671_v2 = vadd.f32 %v670_v45, %v8539_v4  ;;  %v960_v21 = vld [vmem:[#allocation2 + $0x2b0] sm:$0xff]  ;;  %v958_v45 = vld [vmem:[#allocation2 + $0x2a0] sm:$0xff] }
 0x130   :  { %v874_v0 = vadd.f32 %v8547_v11, %v851_v55  ;;  %v850_v8 = vadd.f32 %v785_v58, %v631_v54  ;;  %7138 = vmatpush3.msra.mxu1 %v968_v42  ;;  %v8594_v9 = vmax.f32 %v871_v40, 0.0  ;;  %v992_v13 = vsel %vm269_vm0, %v989_v44, %v991_v53 }
 0x131   :  { %7139 = vmatprep.subr.mxu1 %v967_v46  ;;  %v7004_v12 = vpop.f32.mrf.mxu0  ;;  %v994_v16 = vsel %vm269_vm0, %v991_v53, %v993_v62  ;;  %7111 = vmatprep.mubr.f32.mxu0 %v992_v13  ;;  %v997_v26 = vrot.slane %v8586_v47, 7  ;;  %v962_v53 = vld [vmem:[#allocation2 + $0x2c0] sm:$0xff] }
 0x132   :  { %v873_v59 = vadd.f32 %v8547_v11, %v850_v8  ;;  %v853_v3 = vadd.f32 %v7004_v12, %v646_v49  ;;  %7140 = vmatpush3.msra.mxu1 %v967_v46  ;;  %v995_v19 = vrot.slane %v8594_v9, 7  ;;  %v8607_v22 = vmax.f32 %v874_v0, 0.0  ;;  %7055 = vmatprep.mubr.f32.mxu1 %v8594_v9  ;;  %v961_v12 = vld [vmem:[#allocation2 + $0x2b8] sm:$0xff] }
 0x133   :  { %7112 = vmatmul.mubr.f32.gmra.mxu0 %v994_v16  ;;  %v795_v61 = vpop.f32.mrf.mxu0  ;;  %7141 = vmatprep.subr.mxu1 %v966_v17 }
 0x134   :  { %v876_v27 = vadd.f32 %v8547_v11, %v853_v3  ;;  %v852_v30 = vadd.f32 %v795_v61, %v641_v18  ;;  %7056 = vmatmul.mubr.f32.gmra.mxu1 %v8586_v47  ;;  %v996_v56 = vsel %vm269_vm0, %v993_v62, %v995_v19  ;;  %v8617_v14 = vmax.f32 %v873_v59, 0.0  ;;  %v6957_v62 = vpop.f32.mrf.mxu1 }
 0x135   :  { %7142 = vmatpush3.msra.mxu1 %v966_v17  ;;  %v7007_v33 = vpop.f32.mrf.mxu0  ;;  %7114 = vmatprep.mubr.f32.mxu0 %v996_v56  ;;  %v998_v34 = vsel %vm269_vm0, %v995_v19, %v997_v26  ;;  %v1001_v29 = vrot.slane %v8607_v22, 7 }
 0x136   :  { %v894_v38 = vmax.f32 %v876_v27, 0.0  ;;  %v875_v41 = vadd.f32 %v8547_v11, %v852_v30  ;;  %7143 = vmatprep.subr.mxu1 %v965_v6  ;;  %v855_v42 = vadd.f32 %v7007_v33, %v656_v20  ;;  %7058 = vmatprep.mubr.f32.mxu1 %v8617_v14  ;;  %v999_v44 = vrot.slane %v8617_v14, 7 }
 0x137   :  { %7144 = vmatpush3.msra.mxu1 %v965_v6  ;;  %7115 = vmatmul.mubr.f32.gmra.mxu0 %v998_v34  ;;  %v805_v60 = vpop.f32.mrf.mxu0  ;;  %v680_v6 = vpop.f32.mrf.mxu1  ;;  %v686_v27 = vadd.f32 %v6957_v62, %v8541_v5 }
 0x138   :  { %v8632_v48 = vsel %vm140_vm4, %v894_v38, 0.0  ;;  %v893_v37 = vmax.f32 %v875_v41, 0.0  ;;  %v854_v51 = vadd.f32 %v805_v60, %v651_v31  ;;  %7059 = vmatmul.mubr.f32.gmra.mxu1 %v8607_v22  ;;  %7145 = vmatprep.subr.mxu1 %v964_v35  ;;  %v878_v52 = vadd.f32 %v8547_v11, %v855_v42  ;;  %v959_v31 = vld [vmem:[#allocation2 + $0x2a8] sm:$0xff] }
 0x139   :  { %7146 = vmatpush3.msra.mxu1 %v964_v35  ;;  %v7010_v54 = vpop.f32.mrf.mxu0  ;;  %v1000_v40 = vsel %vm269_vm0, %v997_v26, %v999_v44  ;;  %v1002_v55 = vsel %vm269_vm0, %v999_v44, %v1001_v29  ;;  %v1005_v49 = vrot.slane %v8632_v48, 7  ;;  %v8672_v35 = vadd.s32 136, %v8551_v15 }
 0x13a   :  { %v8642_v43 = vsel %vm103_vm5, %v893_v37, 0.0  ;;  %v877_v46 = vadd.f32 %v8547_v11, %v854_v51  ;;  %v857_v58 = vadd.f32 %v7010_v54, %v666_v32  ;;  %7117 = vmatprep.mubr.f32.mxu0 %v1000_v40  ;;  %7147 = vmatprep.subr.mxu1 %v963_v24  ;;  %v8652_v16 = vmax.f32 %v878_v52, 0.0  ;;  %v957_v52 = vld [vmem:[#allocation2 + $0x298] sm:$0xff] }
 0x13b   :  { %7061 = vmatprep.mubr.msk.f32.mxu1 %vm103_vm5, %v893_v37  ;;  %7118 = vmatmul.mubr.f32.gmra.mxu0 %v1002_v55  ;;  %v815_v0 = vpop.f32.mrf.mxu0  ;;  %v1003_v1 = vrot.slane %v8642_v43, 7  ;;  %v681_v41 = vadd.f32 %v680_v6, %v8545_v7  ;;  %vm166_vm6 = vcmp.le.s32.totalorder %v8672_v35, 136 }
 0x13c   :  { %7148 = vmatpush3.msra.mxu1 %v963_v24  ;;  %v856_v8 = vadd.f32 %v815_v0, %v661_v63  ;;  %v8650_v13 = vmax.f32 %v877_v46, 0.0  ;;  %v880_v17 = vadd.f32 %v8547_v11, %v857_v58  ;;  %v1009_v5 = vrot.slane %v8652_v16, 7 }
 0x13d   :  { %7062 = vmatmul.mubr.msk.f32.gmra.mxu1 %vm140_vm4, %v894_v38  ;;  %7149 = vmatprep.subr.mxu1 %v962_v53  ;;  %v7013_v18 = vpop.f32.mrf.mxu0  ;;  %v1004_v59 = vsel %vm269_vm0, %v1001_v29, %v1003_v1  ;;  %v1006_v3 = vsel %vm269_vm0, %v1003_v1, %v1005_v49  ;;  %v955_v1 = vld [vmem:[#allocation2 + $0x288] sm:$0xff] }
 0x13e   :  { %v879_v19 = vadd.f32 %v8547_v11, %v856_v8  ;;  %7150 = vmatpush3.msra.mxu1 %v962_v53  ;;  %v859_v20 = vadd.f32 %v7013_v18, %v676_v57  ;;  %7064 = vmatprep.mubr.f32.mxu1 %v8650_v13  ;;  %v1007_v61 = vrot.slane %v8650_v13, 7  ;;  %v8667_v33 = vmax.f32 %v880_v17, 0.0  ;;  %v956_v53 = vld [vmem:[#allocation2 + $0x290] sm:$0xff] }
 0x13f   :  { %7151 = vmatprep.subr.mxu1 %v961_v12  ;;  %7120 = vmatprep.mubr.f32.mxu0 %v1004_v59  ;;  %v825_v26 = vpop.f32.mrf.mxu0  ;;  %v1042_v57 = vrot.slane %v8563_v36, 1  ;;  %v1043_v18 = vrot.slane %v8557_v25, 1  ;;  %v1045_v59 = vrot.slane %v8577_v50, 1  ;;  %v1047_v25 = vrot.slane %v8572_v28, 1 }
 0x140   :  { %7152 = vmatpush3.msra.mxu1 %v961_v12  ;;  %v858_v30 = vadd.f32 %v825_v26, %v671_v2  ;;  %7121 = vmatmul.mubr.f32.gmra.mxu0 %v1006_v3  ;;  %v1008_v4 = vsel %vm269_vm0, %v1005_v49, %v1007_v61  ;;  %v8665_v56 = vmax.f32 %v879_v19, 0.0  ;;  %v882_v34 = vadd.f32 %v8547_v11, %v859_v20  ;;  %v954_v2 = vld [vmem:[#allocation2 + $0x280] sm:$0xff] }
 0x141   :  { %7065 = vmatmul.mubr.f32.gmra.mxu1 %v8652_v16  ;;  %7153 = vmatprep.subr.mxu1 %v960_v21  ;;  %v7016_v38 = vpop.f32.mrf.mxu0  ;;  %v1010_v29 = vsel %vm269_vm0, %v1007_v61, %v1009_v5  ;;  %v1013_v40 = vrot.slane %v8667_v33, 7  ;;  %v1044_v36 = vsel %vm324_vm2, %v1042_v57, %v1043_v18  ;;  %v1046_v50 = vsel %vm324_vm2, %v1043_v18, %v1045_v59  ;;  %v1660_v57 = vld [vmem:[#allocation2 + $0x3a8] sm:$0xff] }
 0x142   :  { %v881_v42 = vadd.f32 %v8547_v11, %v858_v30  ;;  %v861_v44 = vadd.f32 %v7016_v38, %v686_v27  ;;  %7123 = vmatprep.mubr.f32.mxu0 %v1008_v4  ;;  %7154 = vmatpush3.msra.mxu1 %v960_v21  ;;  %v1011_v60 = vrot.slane %v8665_v56, 7  ;;  %v8684_v54 = vmax.f32 %v882_v34, 0.0  ;;  %v1644_v18 = vld [vmem:[#allocation2 + $0x328] sm:$0xff] }
 0x143   :  { %7067 = vmatprep.mubr.f32.mxu1 %v8665_v56  ;;  %7155 = vmatprep.subr.mxu1 %v959_v31  ;;  %v835_v24 = vpop.f32.mrf.mxu0  ;;  %v1049_v20 = vrot.slane %v8594_v9, 1  ;;  %v1048_v21 = vsel %vm324_vm2, %v1045_v59, %v1047_v25  ;;  %v1051_v61 = vrot.slane %v8586_v47, 1  ;;  %v1053_v26 = vrot.slane %v8617_v14, 1  ;;  %v1658_v59 = vld [vmem:[#allocation2 + $0x398] sm:$0xff] }
 0x144   :  { %v884_v32 = vadd.f32 %v8547_v11, %v861_v44  ;;  %v860_v37 = vadd.f32 %v835_v24, %v681_v41  ;;  %7124 = vmatmul.mubr.f32.gmra.mxu0 %v1010_v29  ;;  %7156 = vmatpush3.msra.mxu1 %v959_v31  ;;  %v1012_v7 = vsel %vm269_vm0, %v1009_v5, %v1011_v60  ;;  %v8682_v51 = vmax.f32 %v881_v42, 0.0  ;;  %v1670_v29 = vld [vmem:[#allocation2 + $0x3f8] sm:$0xff] }
 0x145   :  { %7068 = vmatmul.mubr.f32.gmra.mxu1 %v8667_v33  ;;  %7157 = vmatprep.subr.mxu1 %v958_v45  ;;  %v1014_v58 = vsel %vm269_vm0, %v1011_v60, %v1013_v40  ;;  %v1050_v6 = vsel %vm324_vm2, %v1047_v25, %v1049_v20  ;;  %v1052_v27 = vsel %vm324_vm2, %v1049_v20, %v1051_v61  ;;  %v1055_v28 = vrot.slane %v8607_v22, 1  ;;  %v1641_v25 = vld [vmem:[#allocation2 + $0x310] sm:$0xff]  ;;  %v1640_v20 = vld [vmem:[#allocation2 + $0x308] sm:$0xff] }
 0x146   :  { %v902_v55 = vmax.f32 %v884_v32, 0.0  ;;  %v883_v63 = vadd.f32 %v8547_v11, %v860_v37  ;;  %7126 = vmatprep.mubr.f32.mxu0 %v1012_v7  ;;  %7158 = vmatpush3.msra.mxu1 %v958_v45  ;;  %v1015_v46 = vrot.slane %v8682_v51, 7  ;;  %v1017_v11 = vrot.slane %v8684_v54, 7  ;;  %v1669_v32 = vld [vmem:[#allocation2 + $0x3f0] sm:$0xff]  ;;  %v1668_v37 = vld [vmem:[#allocation2 + $0x3e8] sm:$0xff]  ;;  %v1667_v7 = vld [vmem:[#allocation2 + $0x3e0] sm:$0xff] }
 0x147   :  { %7070 = vmatprep.mubr.f32.mxu1 %v8682_v51  ;;  %7159 = vmatprep.subr.mxu1 %v957_v52  ;;  %v1054_v30 = vsel %vm324_vm2, %v1051_v61, %v1053_v26  ;;  %v1057_v9 = vrot.slane %v8642_v43, 1  ;;  %v1056_v4 = vsel %vm324_vm2, %v1053_v26, %v1055_v28  ;;  %v1059_v47 = vrot.slane %v8632_v48, 1  ;;  %v8746_v61 = vld [vmem:[#allocation2 + $0x478] sm:$0xff] }
 0x148   :  { %v8695_v62 = vsel %vm166_vm6, %v902_v55, 0.0  ;;  %7127 = vmatmul.mubr.f32.gmra.mxu0 %v1014_v58  ;;  %7160 = vmatpush3.msra.mxu1 %v957_v52  ;;  %v1016_v49 = vsel %vm269_vm0, %v1013_v40, %v1015_v46  ;;  %v8698_v0 = vmax.f32 %v883_v63, 0.0  ;;  %v1018_v17 = vsel %vm269_vm0, %v1015_v46, %v1017_v11  ;;  %v1666_v52 = vld [vmem:[#allocation2 + $0x3d8] sm:$0xff]  ;;  %v1652_v40 = vld [vmem:[#allocation2 + $0x368] sm:$0xff]  ;;  %v1651_v63 = vld [vmem:[#allocation2 + $0x360] sm:$0xff] }
 0x149   :  { %7071 = vmatmul.mubr.f32.gmra.mxu1 %v8684_v54  ;;  %7129 = vmatprep.mubr.f32.mxu0 %v1016_v49  ;;  %v1021_v12 = vrot.slane %v8695_v62, 7  ;;  %v1058_v31 = vsel %vm324_vm2, %v1055_v28, %v1057_v9  ;;  %v1061_v14 = vrot.slane %v8650_v13, 1  ;;  %v1060_v34 = vsel %vm324_vm2, %v1057_v9, %v1059_v47  ;;  %v1664_v46 = vld [vmem:[#allocation2 + $0x3c8] sm:$0xff]  ;;  %v1650_v58 = vld [vmem:[#allocation2 + $0x358] sm:$0xff] }
 0x14a   :  { %7161 = vmatprep.subr.mxu1 %v956_v53  ;;  %7073 = vmatprep.mubr.f32.mxu1 %v8698_v0  ;;  %v1019_v8 = vrot.slane %v8698_v0, 7  ;;  %v1063_v22 = vrot.slane %v8652_v16, 1  ;;  %v1065_v43 = vrot.slane %v8665_v56, 1  ;;  %v1067_v48 = vrot.slane %v8667_v33, 1  ;;  %v1662_v49 = vld [vmem:[#allocation2 + $0x3b8] sm:$0xff] }
 0x14b   :  { %7162 = vmatpush3.msra.mxu1 %v956_v53  ;;  %v1062_v38 = vsel %vm324_vm2, %v1059_v47, %v1061_v14  ;;  %v1069_v13 = vrot.slane %v8682_v51, 1  ;;  %v1071_v16 = vrot.slane %v8684_v54, 1  ;;  %v1073_v56 = vrot.slane %v8698_v0, 1  ;;  %7194 = vmatprep.subr.mxu0 %v1670_v29  ;;  %v1654_v51 = vld [vmem:[#allocation2 + $0x378] sm:$0xff]  ;;  %v1653_v54 = vld [vmem:[#allocation2 + $0x370] sm:$0xff]  ;;  %v1663_v53 = vld [vmem:[#allocation2 + $0x3c0] sm:$0xff] }
 0x14c   :  { %7130 = vmatmul.mubr.f32.gmra.mxu0 %v1018_v17  ;;  %7163 = vmatprep.subr.mxu1 %v955_v1  ;;  %v1020_v3 = vsel %vm269_vm0, %v1017_v11, %v1019_v8  ;;  %v1022_v19 = vsel %vm269_vm0, %v1019_v8, %v1021_v12  ;;  %v1064_v5 = vsel %vm324_vm2, %v1061_v14, %v1063_v22  ;;  %v1075_v45 = vrot.slane %v8695_v62, 1  ;;  %v1649_v62 = vld [vmem:[#allocation2 + $0x350] sm:$0xff]  ;;  %v1648_v0 = vld [vmem:[#allocation2 + $0x348] sm:$0xff]  ;;  %v1646_v8 = vld [vmem:[#allocation2 + $0x338] sm:$0xff] }
 0x14d   :  { %7074 = vmatmul.mubr.msk.f32.gmra.mxu1 %vm166_vm6, %v902_v55  ;;  %7132 = vmatprep.mubr.f32.mxu0 %v1020_v3  ;;  %v1066_v41 = vsel %vm324_vm2, %v1063_v22, %v1065_v43  ;;  %v1068_v42 = vsel %vm324_vm2, %v1065_v43, %v1067_v48  ;;  %v1070_v44 = vsel %vm324_vm2, %v1067_v48, %v1069_v13  ;;  %v1665_v55 = vld [vmem:[#allocation2 + $0x3d0] sm:$0xff]  ;;  %v1659_v12 = vld [vmem:[#allocation2 + $0x3a0] sm:$0xff] }
 0x14e   :  { %7164 = vmatpush3.msra.mxu1 %v955_v1  ;;  %7167 = vmatprep.mubr.f32.mxu1 %v1044_v36  ;;  %v1072_v60 = vsel %vm324_vm2, %v1069_v13, %v1071_v16  ;;  %v1074_v33 = vsel %vm324_vm2, %v1071_v16, %v1073_v56  ;;  %v1076_v24 = vsel %vm324_vm2, %v1073_v56, %v1075_v45  ;;  %v1661_v11 = vld [vmem:[#allocation2 + $0x3b0] sm:$0xff]  ;;  %v1647_v1 = vld [vmem:[#allocation2 + $0x340] sm:$0xff]  ;;  %v1642_v36 = vld [vmem:[#allocation2 + $0x318] sm:$0xff] }
 0x14f   :  { %7165 = vmatprep.subr.mxu1 %v954_v2  ;;  %7195 = vmatpush3.msra.mxu0 %v1670_v29  ;;  %v1645_v17 = vld [vmem:[#allocation2 + $0x330] sm:$0xff]  ;;  %v1643_v3 = vld [vmem:[#allocation2 + $0x320] sm:$0xff] }
 0x150   :  { %7166 = vmatpush3.msra.mxu1 %v954_v2  ;;  %7133 = vmatmul.mubr.f32.gmra.mxu0 %v1022_v19  ;;  %v1657_v2 = vld [vmem:[#allocation2 + $0x390] sm:$0xff]  ;;  %v1656_v19 = vld [vmem:[#allocation2 + $0x388] sm:$0xff] }
 0x151   :  { %7168 = vmatmul.mubr.f32.vlgmr.msra.gmra.mxu1 %v1046_v50  ;;  %7196 = vmatprep.subr.mxu0 %v1669_v32  ;;  %v1655_v50 = vld [vmem:[#allocation2 + $0x380] sm:$0xff] }
 0x152   :  { %7170 = vmatprep.mubr.f32.mxu1 %v1048_v21  ;;  %7197 = vmatpush3.msra.mxu0 %v1669_v32  ;;  %v1639_v21 = vld [vmem:[#allocation2 + $0x300] sm:$0xff] }
 0x153   :  { %7198 = vmatprep.subr.mxu0 %v1668_v37  ;;  %7253 = vmatprep.subr.mxu1 %v1654_v51 }
 0x154   :  { %7199 = vmatpush3.msra.mxu0 %v1668_v37  ;;  %7254 = vmatpush3.msra.mxu1 %v1654_v51  ;;  %v8771_v51 = vld [vmem:[#allocation4 + $0x1] ss:$0 sm:$0xff] }
 0x155   :  { %7171 = vmatmul.mubr.f32.gmra.mxu1 %v1050_v6  ;;  %7200 = vmatprep.subr.mxu0 %v1667_v7 }
 0x156   :  { %7173 = vmatprep.mubr.f32.mxu1 %v1052_v27  ;;  %7201 = vmatpush3.msra.mxu0 %v1667_v7 }
 0x157   :  { %7202 = vmatprep.subr.mxu0 %v1666_v52  ;;  %7255 = vmatprep.subr.mxu1 %v1653_v54 }
 0x158   :  { %7203 = vmatpush3.msra.mxu0 %v1666_v52  ;;  %7256 = vmatpush3.msra.mxu1 %v1653_v54 }
 0x159   :  { %7174 = vmatmul.mubr.f32.gmra.mxu1 %v1054_v30  ;;  %7257 = vmatprep.subr.mxu1 %v1652_v40 }
 0x15a   :  { %7176 = vmatprep.mubr.f32.mxu1 %v1056_v4  ;;  %7204 = vmatprep.subr.mxu0 %v1665_v55 }
 0x15b   :  { %7258 = vmatpush3.msra.mxu1 %v1652_v40  ;;  %7205 = vmatpush3.msra.mxu0 %v1665_v55 }
 0x15c   :  { %7259 = vmatprep.subr.mxu1 %v1651_v63  ;;  %7206 = vmatprep.subr.mxu0 %v1664_v46 }
 0x15d   :  { %7177 = vmatmul.mubr.f32.gmra.mxu1 %v1058_v31  ;;  %7207 = vmatpush3.msra.mxu0 %v1664_v46 }
 0x15e   :  { %7179 = vmatprep.mubr.f32.mxu1 %v1060_v34  ;;  %7260 = vmatpush3.msra.mxu1 %v1651_v63 }
 0x15f   :  { %7261 = vmatprep.subr.mxu1 %v1650_v58  ;;  %7208 = vmatprep.subr.mxu0 %v1663_v53 }
 0x160   :  { %7262 = vmatpush3.msra.mxu1 %v1650_v58  ;;  %7209 = vmatpush3.msra.mxu0 %v1663_v53 }
 0x161   :  { %7180 = vmatmul.mubr.f32.gmra.mxu1 %v1062_v38  ;;  %7263 = vmatprep.subr.mxu1 %v1649_v62 }
 0x162   :  { %7182 = vmatprep.mubr.f32.mxu1 %v1064_v5  ;;  %7210 = vmatprep.subr.mxu0 %v1662_v49 }
 0x163   :  { %7264 = vmatpush3.msra.mxu1 %v1649_v62  ;;  %7211 = vmatpush3.msra.mxu0 %v1662_v49 }
 0x164   :  { %7265 = vmatprep.subr.mxu1 %v1648_v0  ;;  %7212 = vmatprep.subr.mxu0 %v1661_v11 }
 0x165   :  { %7183 = vmatmul.mubr.f32.gmra.mxu1 %v1066_v41  ;;  %7213 = vmatpush3.msra.mxu0 %v1661_v11 }
 0x166   :  { %7185 = vmatprep.mubr.f32.mxu1 %v1068_v42  ;;  %7266 = vmatpush3.msra.mxu1 %v1648_v0 }
 0x167   :  { %7267 = vmatprep.subr.mxu1 %v1647_v1  ;;  %7214 = vmatprep.subr.mxu0 %v1660_v57 }
 0x168   :  { %7268 = vmatpush3.msra.mxu1 %v1647_v1  ;;  %7215 = vmatpush3.msra.mxu0 %v1660_v57 }
 0x169   :  { %7186 = vmatmul.mubr.f32.gmra.mxu1 %v1070_v44  ;;  %7269 = vmatprep.subr.mxu1 %v1646_v8 }
 0x16a   :  { %7188 = vmatprep.mubr.f32.mxu1 %v1072_v60  ;;  %7270 = vmatpush3.msra.mxu1 %v1646_v8 }
 0x16b   :  { %7216 = vmatprep.subr.mxu0 %v1659_v12  ;;  %7271 = vmatprep.subr.mxu1 %v1645_v17 }
 0x16c   :  { %7217 = vmatpush3.msra.mxu0 %v1659_v12  ;;  %7272 = vmatpush3.msra.mxu1 %v1645_v17 }
 0x16d   :  { %7189 = vmatmul.mubr.f32.gmra.mxu1 %v1074_v33  ;;  %7273 = vmatprep.subr.mxu1 %v1644_v18 }
 0x16e   :  { %7191 = vmatprep.mubr.f32.mxu1 %v1076_v24  ;;  %7218 = vmatprep.subr.mxu0 %v1658_v59 }
 0x16f   :  { %7274 = vmatpush3.msra.mxu1 %v1644_v18  ;;  %7219 = vmatpush3.msra.mxu0 %v1658_v59 }
 0x170   :  { %7275 = vmatprep.subr.mxu1 %v1643_v3  ;;  %7220 = vmatprep.subr.mxu0 %v1657_v2 }
 0x171   :  { %7192 = vmatmul.mubr.msk.f32.gmra.mxu1 %vm324_vm2, %v1075_v45  ;;  %7221 = vmatpush3.msra.mxu0 %v1657_v2 }
 0x172   :  { %7276 = vmatpush3.msra.mxu1 %v1643_v3  ;;  %7222 = vmatprep.subr.mxu0 %v1656_v19 }
 0x173   :  { %7277 = vmatprep.subr.mxu1 %v1642_v36  ;;  %7223 = vmatpush3.msra.mxu0 %v1656_v19 }
 0x174   :  { %7278 = vmatpush3.msra.mxu1 %v1642_v36  ;;  %7224 = vmatprep.subr.mxu0 %v1655_v50 }
 0x175   :  { %7279 = vmatprep.subr.mxu1 %v1641_v25  ;;  %7225 = vmatpush3.msra.mxu0 %v1655_v50 }
 0x176   :  { %7280 = vmatpush3.msra.mxu1 %v1641_v25  ;;  %7312 = vmatprep.subr.mxu0 %v8746_v61  ;;  %v1685_v25 = vld [vmem:[#allocation2 + $0x470] sm:$0xff] }
 0x177   :  { %7281 = vmatprep.subr.mxu1 %v1640_v20 }
 0x178   :  { %7282 = vmatpush3.msra.mxu1 %v1640_v20 }
 0x179   :  { %7283 = vmatprep.subr.mxu1 %v1639_v21 }
 0x17a   :  { %7284 = vmatpush3.msra.mxu1 %v1639_v21 }
 0x1eb   :  { %v7051_v6 = vpop.f32.mrf.mxu1 }
 0x1ed   :  { %v1162_v26 = vpop.f32.mrf.mxu1 }
 0x1ee   :  { %v7110_v27 = vpop.f32.mrf.mxu0 }
 0x1ef   :  { %v7054_v28 = vpop.f32.mrf.mxu1  ;;  %v1323_v37 = vadd.f32 %v7110_v27, %v7051_v6 }
 0x1f0   :  { %v1317_v30 = vpop.f32.mrf.mxu0 }
 0x1f1   :  { %v1172_v9 = vpop.f32.mrf.mxu1  ;;  %v1318_v52 = vadd.f32 %v1317_v30, %v1162_v26 }
 0x1f3   :  { %v7113_v4 = vpop.f32.mrf.mxu0 }
 0x1f4   :  { %v7057_v47 = vpop.f32.mrf.mxu1  ;;  %v1333_v63 = vadd.f32 %v7113_v4, %v7054_v28 }
 0x1f5   :  { %v1327_v14 = vpop.f32.mrf.mxu0 }
 0x1f6   :  { %v1182_v31 = vpop.f32.mrf.mxu1  ;;  %v1328_v62 = vadd.f32 %v1327_v14, %v1172_v9 }
 0x1f7   :  { %v7116_v38 = vpop.f32.mrf.mxu0 }
 0x1f8   :  { %v7060_v34 = vpop.f32.mrf.mxu1  ;;  %v1343_v8 = vadd.f32 %v7116_v38, %v7057_v47 }
 0x1f9   :  { %v1337_v5 = vpop.f32.mrf.mxu0 }
 0x1fa   :  { %v1192_v22 = vpop.f32.mrf.mxu1  ;;  %v1338_v3 = vadd.f32 %v1337_v5, %v1182_v31 }
 0x1fb   :  { %v7119_v13 = vpop.f32.mrf.mxu0 }
 0x1fc   :  { %v1353_v27 = vadd.f32 %v7119_v13, %v7060_v34  ;;  %v1684_v34 = vld [vmem:[#allocation2 + $0x468] sm:$0xff] }
 0x1fd   :  { %v8749_v43 = vpop.f32.mrf.mxu1  ;;  %v1347_v44 = vpop.f32.mrf.mxu0 }
 0x1fe   :  { %v1348_v31 = vadd.f32 %v1347_v44, %v1192_v22 }
 0x1ff   :  { %v8751_v48 = vpop.f32.mrf.mxu1 }
 0x200   :  { %v7122_v60 = vpop.f32.mrf.mxu0 }
 0x201   :  { %v8753_v41 = vpop.f32.mrf.mxu1  ;;  %v1363_v22 = vadd.f32 %v7122_v60, %v8749_v43 }
 0x202   :  { %v8767_v29 = vpop.f32.mrf.mxu0 }
 0x203   :  { %v8755_v42 = vpop.f32.mrf.mxu1 }
 0x204   :  { %v8773_v40 = vpop.f32.mrf.mxu0 }
 0x205   :  { %v8757_v16 = vpop.f32.mrf.mxu1  ;;  %v1373_v60 = vadd.f32 %v8773_v40, %v8753_v41 }
 0x206   :  { %v8777_v11 = vpop.f32.mrf.mxu0 }
 0x207   :  { %v8759_v56 = vpop.f32.mrf.mxu1  ;;  %v1368_v41 = vadd.f32 %v8777_v11, %v8755_v42  ;;  %v1680_v42 = vld [vmem:[#allocation2 + $0x448] sm:$0xff] }
 0x208   :  { %v8789_v50 = vpop.f32.mrf.mxu0 }
 0x209   :  { %v8761_v45 = vpop.f32.mrf.mxu1 }
 0x20a   :  { %v8805_v5 = vpop.f32.mrf.mxu0 }
 0x20b   :  { %v8763_v33 = vpop.f32.mrf.mxu1 }
 0x20d   :  { %v8765_v24 = vpop.f32.mrf.mxu1 }
 0x20f   :  { %v8769_v32 = vpop.f32.mrf.mxu1 }
 0x211   :  { %v7169_v7 = vpop.f32.mrf.mxu1 }
 0x212   :  { %v1562_v54 = vadd.f32 %v7169_v7, %v1323_v37 }
 0x213   :  { %v1472_v55 = vpop.f32.mrf.mxu1 }
 0x214   :  { %v1585_v46 = vadd.f32 %v8771_v51, %v1562_v54  ;;  %v1561_v58 = vadd.f32 %v1472_v55, %v1318_v52 }
 0x215   :  { %v7172_v53 = vpop.f32.mrf.mxu1 }
 0x216   :  { %v1584_v49 = vadd.f32 %v8771_v51, %v1561_v58  ;;  %v1564_v0 = vadd.f32 %v7172_v53, %v1333_v63  ;;  %v8779_v1 = vmax.f32 %v1585_v46, 0.0  ;;  %v1683_v58 = vld [vmem:[#allocation2 + $0x460] sm:$0xff]  ;;  %v1358_v53 = vadd.f32 %v8767_v29, %v8751_v48 }
 0x217   :  { %v1482_v57 = vpop.f32.mrf.mxu1 }
 0x218   :  { %v1602_v12 = vmax.f32 %v1584_v49, 0.0  ;;  %v1587_v17 = vadd.f32 %v8771_v51, %v1564_v0  ;;  %v1563_v18 = vadd.f32 %v1482_v57, %v1328_v62  ;;  %v1706_v20 = vrot.slane %v8779_v1, 7  ;;  %v7131_v0 = vpop.f32.mrf.mxu0 }
 0x219   :  { %v7175_v59 = vpop.f32.mrf.mxu1 }
 0x21a   :  { %v8784_v2 = vsel %vm77_vm3, %v1602_v12, 0.0  ;;  %v1586_v36 = vadd.f32 %v8771_v51, %v1563_v18  ;;  %v1566_v19 = vadd.f32 %v7175_v59, %v1343_v8  ;;  %7226 = vmatprep.mubr.msk.f32.mxu0 %vm77_vm3, %v1602_v12  ;;  %v8793_v6 = vmax.f32 %v1587_v17, 0.0  ;;  %v1682_v12 = vld [vmem:[#allocation2 + $0x458] sm:$0xff] }
 0x21b   :  { %v1705_v21 = vrot.slane %v8784_v2, 7  ;;  %v1492_v26 = vpop.f32.mrf.mxu1  ;;  %7227 = vmatmul.mubr.f32.vlgmr.msra.gmra.mxu0 %v8779_v1 }
 0x21c   :  { %v1589_v28 = vadd.f32 %v8771_v51, %v1566_v19  ;;  %v1565_v30 = vadd.f32 %v1492_v26, %v1338_v3  ;;  %7313 = vmatpush3.msra.mxu0 %v8746_v61  ;;  %v8798_v9 = vmax.f32 %v1586_v36, 0.0  ;;  %v1710_v7 = vrot.slane %v8793_v6, 7  ;;  %v1681_v36 = vld [vmem:[#allocation2 + $0x450] sm:$0xff]  ;;  %v1387_v26 = vpop.f32.mrf.mxu0 }
 0x21d   :  { %v7178_v4 = vpop.f32.mrf.mxu1  ;;  %7285 = vmatprep.mubr.msk.f32.mxu1 %vm8358_vm1, %v1705_v21  ;;  %v1707_v47 = vsel %vm269_vm0, %v1705_v21, %v1706_v20  ;;  %7314 = vmatprep.subr.mxu0 %v1685_v25 }
 0x21e   :  { %v1588_v14 = vadd.f32 %v8771_v51, %v1565_v30  ;;  %v1568_v38 = vadd.f32 %v7178_v4, %v1353_v27  ;;  %7229 = vmatprep.mubr.f32.mxu0 %v8798_v9  ;;  %7286 = vmatmul.mubr.f32.vlgmr.msra.gmra.mxu1 %v1707_v47  ;;  %v8807_v61 = vmax.f32 %v1589_v28, 0.0  ;;  %v1708_v37 = vrot.slane %v8798_v9, 7 }
 0x21f   :  { %v1502_v13 = vpop.f32.mrf.mxu1  ;;  %7230 = vmatmul.mubr.f32.gmra.mxu0 %v8793_v6  ;;  %v1383_v28 = vadd.f32 %v8789_v50, %v8757_v16  ;;  %v1378_v16 = vadd.f32 %v8805_v5, %v8759_v56  ;;  %v1393_v5 = vadd.f32 %v7131_v0, %v8761_v45  ;;  %v1388_v45 = vadd.f32 %v1387_v26, %v8763_v33  ;;  %v1675_v26 = vld [vmem:[#allocation2 + $0x420] sm:$0xff] }
 0x220   :  { %v1591_v44 = vadd.f32 %v8771_v51, %v1568_v38  ;;  %v1567_v52 = vadd.f32 %v1502_v13, %v1348_v31  ;;  %7315 = vmatpush3.msra.mxu0 %v1685_v25  ;;  %v8814_v54 = vmax.f32 %v1588_v14, 0.0  ;;  %v1709_v63 = vsel %vm269_vm0, %v1706_v20, %v1708_v37 }
 0x221   :  { %7316 = vmatprep.subr.mxu0 %v1684_v34  ;;  %v7181_v55 = vpop.f32.mrf.mxu1  ;;  %v1711_v46 = vsel %vm269_vm0, %v1708_v37, %v1710_v7  ;;  %7288 = vmatprep.mubr.f32.mxu1 %v1709_v63  ;;  %v1714_v48 = vrot.slane %v8807_v61, 7  ;;  %v1678_v63 = vld [vmem:[#allocation2 + $0x438] sm:$0xff] }
 0x222   :  { %v1590_v62 = vadd.f32 %v8771_v51, %v1567_v52  ;;  %v1570_v49 = vadd.f32 %v7181_v55, %v1363_v22  ;;  %7317 = vmatpush3.msra.mxu0 %v1684_v34  ;;  %v1712_v43 = vrot.slane %v8814_v54, 7  ;;  %v8824_v57 = vmax.f32 %v1591_v44, 0.0  ;;  %7232 = vmatprep.mubr.f32.mxu0 %v8814_v54  ;;  %v7134_v22 = vpop.f32.mrf.mxu0 }
 0x223   :  { %7289 = vmatmul.mubr.f32.gmra.mxu1 %v1711_v46  ;;  %v1512_v8 = vpop.f32.mrf.mxu1  ;;  %7318 = vmatprep.subr.mxu0 %v1683_v58 }
 0x224   :  { %v1593_v29 = vadd.f32 %v8771_v51, %v1570_v49  ;;  %v1569_v17 = vadd.f32 %v1512_v8, %v1358_v53  ;;  %7233 = vmatmul.mubr.f32.gmra.mxu0 %v8807_v61  ;;  %v1713_v18 = vsel %vm269_vm0, %v1710_v7, %v1712_v43  ;;  %v8831_v59 = vmax.f32 %v1590_v62, 0.0  ;;  %v1679_v7 = vld [vmem:[#allocation2 + $0x440] sm:$0xff]  ;;  %v1677_v8 = vld [vmem:[#allocation2 + $0x430] sm:$0xff] }
 0x225   :  { %7319 = vmatpush3.msra.mxu0 %v1683_v58  ;;  %v7184_v40 = vpop.f32.mrf.mxu1  ;;  %7291 = vmatprep.mubr.f32.mxu1 %v1713_v18  ;;  %v1715_v3 = vsel %vm269_vm0, %v1712_v43, %v1714_v48  ;;  %v1718_v11 = vrot.slane %v8824_v57, 7 }
 0x226   :  { %v1611_v19 = vmax.f32 %v1593_v29, 0.0  ;;  %v1592_v25 = vadd.f32 %v8771_v51, %v1569_v17  ;;  %7320 = vmatprep.subr.mxu0 %v1682_v12  ;;  %v1572_v20 = vadd.f32 %v7184_v40, %v1373_v60  ;;  %7235 = vmatprep.mubr.f32.mxu0 %v8831_v59  ;;  %v1716_v21 = vrot.slane %v8831_v59, 7  ;;  %v1676_v40 = vld [vmem:[#allocation2 + $0x428] sm:$0xff] }
 0x227   :  { %7321 = vmatpush3.msra.mxu0 %v1682_v12  ;;  %7292 = vmatmul.mubr.f32.gmra.mxu1 %v1715_v3  ;;  %v1522_v27 = vpop.f32.mrf.mxu1  ;;  %v1403_v17 = vadd.f32 %v7134_v22, %v8765_v24 }
 0x228   :  { %v8844_v30 = vsel %vm140_vm4, %v1611_v19, 0.0  ;;  %v1610_v4 = vmax.f32 %v1592_v25, 0.0  ;;  %v1571_v47 = vadd.f32 %v1522_v27, %v1368_v41  ;;  %7236 = vmatmul.mubr.f32.gmra.mxu0 %v8824_v57  ;;  %7322 = vmatprep.subr.mxu0 %v1681_v36  ;;  %v1595_v31 = vadd.f32 %v8771_v51, %v1572_v20 }
 0x229   :  { %7323 = vmatpush3.msra.mxu0 %v1681_v36  ;;  %v7187_v14 = vpop.f32.mrf.mxu1  ;;  %v1717_v38 = vsel %vm269_vm0, %v1714_v48, %v1716_v21  ;;  %v1719_v34 = vsel %vm269_vm0, %v1716_v21, %v1718_v11  ;;  %v1722_v44 = vrot.slane %v8844_v30, 7  ;;  %v1397_v48 = vpop.f32.mrf.mxu0 }
 0x22a   :  { %v8854_v50 = vsel %vm103_vm5, %v1610_v4, 0.0  ;;  %v1594_v13 = vadd.f32 %v8771_v51, %v1571_v47  ;;  %v1574_v37 = vadd.f32 %v7187_v14, %v1383_v28  ;;  %7294 = vmatprep.mubr.f32.mxu1 %v1717_v38  ;;  %7324 = vmatprep.subr.mxu0 %v1680_v42  ;;  %v8864_v58 = vmax.f32 %v1595_v31, 0.0  ;;  %v1674_v31 = vld [vmem:[#allocation2 + $0x418] sm:$0xff] }
 0x22b   :  { %7238 = vmatprep.mubr.msk.f32.mxu0 %vm103_vm5, %v1610_v4  ;;  %7295 = vmatmul.mubr.f32.gmra.mxu1 %v1719_v34  ;;  %v1532_v52 = vpop.f32.mrf.mxu1  ;;  %v1720_v56 = vrot.slane %v8854_v50, 7  ;;  %v1398_v24 = vadd.f32 %v1397_v48, %v8769_v32 }
 0x22c   :  { %7325 = vmatpush3.msra.mxu0 %v1680_v42  ;;  %v1573_v55 = vadd.f32 %v1532_v52, %v1378_v16  ;;  %v8862_v46 = vmax.f32 %v1594_v13, 0.0  ;;  %v1597_v53 = vadd.f32 %v8771_v51, %v1574_v37  ;;  %v1726_v25 = vrot.slane %v8864_v58, 7 }
 0x22d   :  { %7239 = vmatmul.mubr.msk.f32.gmra.mxu0 %vm140_vm4, %v1611_v19  ;;  %7326 = vmatprep.subr.mxu0 %v1679_v7  ;;  %v7190_v62 = vpop.f32.mrf.mxu1  ;;  %v1721_v49 = vsel %vm269_vm0, %v1718_v11, %v1720_v56  ;;  %v1723_v43 = vsel %vm269_vm0, %v1720_v56, %v1722_v44  ;;  %v1672_v56 = vld [vmem:[#allocation2 + $0x408] sm:$0xff] }
 0x22e   :  { %v1596_v60 = vadd.f32 %v8771_v51, %v1573_v55  ;;  %7327 = vmatpush3.msra.mxu0 %v1679_v7  ;;  %v1576_v0 = vadd.f32 %v7190_v62, %v1393_v5  ;;  %7241 = vmatprep.mubr.f32.mxu0 %v8862_v46  ;;  %v1724_v12 = vrot.slane %v8862_v46, 7  ;;  %v8879_v3 = vmax.f32 %v1597_v53, 0.0  ;;  %v1673_v7 = vld [vmem:[#allocation2 + $0x410] sm:$0xff] }
 0x22f   :  { %7328 = vmatprep.subr.mxu0 %v1678_v63  ;;  %7297 = vmatprep.mubr.f32.mxu1 %v1721_v49  ;;  %v1542_v29 = vpop.f32.mrf.mxu1  ;;  %v1759_v5 = vrot.slane %v8784_v2, 1  ;;  %v1760_v62 = vrot.slane %v8779_v1, 1  ;;  %v1762_v49 = vrot.slane %v8798_v9, 1  ;;  %v1764_v1 = vrot.slane %v8793_v6, 1 }
 0x230   :  { %7329 = vmatpush3.msra.mxu0 %v1678_v63  ;;  %v1575_v18 = vadd.f32 %v1542_v29, %v1388_v45  ;;  %7298 = vmatmul.mubr.f32.gmra.mxu1 %v1723_v43  ;;  %v1725_v33 = vsel %vm269_vm0, %v1722_v44, %v1724_v12  ;;  %v8877_v41 = vmax.f32 %v1596_v60, 0.0  ;;  %v1599_v36 = vadd.f32 %v8771_v51, %v1576_v0  ;;  %v1671_v45 = vld [vmem:[#allocation2 + $0x400] sm:$0xff] }
 0x231   :  { %7242 = vmatmul.mubr.f32.gmra.mxu0 %v8864_v58  ;;  %7330 = vmatprep.subr.mxu0 %v1677_v8  ;;  %v7193_v19 = vpop.f32.mrf.mxu1  ;;  %v1727_v11 = vsel %vm269_vm0, %v1724_v12, %v1726_v25  ;;  %v1730_v38 = vrot.slane %v8879_v3, 7  ;;  %v1761_v2 = vsel %vm324_vm2, %v1759_v5, %v1760_v62  ;;  %v1763_v9 = vsel %vm324_vm2, %v1760_v62, %v1762_v49  ;;  %v2377_v5 = vld [vmem:[#allocation2 + $0x528] sm:$0xff] }
 0x232   :  { %v1598_v20 = vadd.f32 %v8771_v51, %v1575_v18  ;;  %v1578_v21 = vadd.f32 %v7193_v19, %v1403_v17  ;;  %7300 = vmatprep.mubr.f32.mxu1 %v1725_v33  ;;  %7331 = vmatpush3.msra.mxu0 %v1677_v8  ;;  %v1728_v27 = vrot.slane %v8877_v41, 7  ;;  %v8893_v14 = vmax.f32 %v1599_v36, 0.0  ;;  %v2361_v62 = vld [vmem:[#allocation2 + $0x4a8] sm:$0xff] }
 0x233   :  { %7244 = vmatprep.mubr.f32.mxu0 %v8877_v41  ;;  %7332 = vmatprep.subr.mxu0 %v1676_v40  ;;  %v1552_v42 = vpop.f32.mrf.mxu1  ;;  %v1766_v0 = vrot.slane %v8814_v54, 1  ;;  %v1765_v8 = vsel %vm324_vm2, %v1762_v49, %v1764_v1  ;;  %v1768_v12 = vrot.slane %v8807_v61, 1  ;;  %v1770_v29 = vrot.slane %v8831_v59, 1  ;;  %v2375_v49 = vld [vmem:[#allocation2 + $0x518] sm:$0xff] }
 0x234   :  { %v1601_v28 = vadd.f32 %v8771_v51, %v1578_v21  ;;  %v1577_v4 = vadd.f32 %v1552_v42, %v1398_v24  ;;  %7301 = vmatmul.mubr.f32.gmra.mxu1 %v1727_v11  ;;  %7333 = vmatpush3.msra.mxu0 %v1676_v40  ;;  %v1729_v32 = vsel %vm269_vm0, %v1726_v25, %v1728_v27  ;;  %v8891_v47 = vmax.f32 %v1598_v20, 0.0  ;;  %v2387_v11 = vld [vmem:[#allocation2 + $0x578] sm:$0xff] }
 0x235   :  { %7245 = vmatmul.mubr.f32.gmra.mxu0 %v8879_v3  ;;  %7334 = vmatprep.subr.mxu0 %v1675_v26  ;;  %v1731_v37 = vsel %vm269_vm0, %v1728_v27, %v1730_v38  ;;  %v1767_v48 = vsel %vm324_vm2, %v1764_v1, %v1766_v0  ;;  %v1769_v17 = vsel %vm324_vm2, %v1766_v0, %v1768_v12  ;;  %v1772_v6 = vrot.slane %v8824_v57, 1  ;;  %v2358_v1 = vld [vmem:[#allocation2 + $0x490] sm:$0xff]  ;;  %v2357_v0 = vld [vmem:[#allocation2 + $0x488] sm:$0xff] }
 0x236   :  { %v1619_v34 = vmax.f32 %v1601_v28, 0.0  ;;  %v1600_v16 = vadd.f32 %v8771_v51, %v1577_v4  ;;  %7303 = vmatprep.mubr.f32.mxu1 %v1729_v32  ;;  %7335 = vmatpush3.msra.mxu0 %v1675_v26  ;;  %v1732_v13 = vrot.slane %v8891_v47, 7  ;;  %v1734_v51 = vrot.slane %v8893_v14, 7  ;;  %v2386_v28 = vld [vmem:[#allocation2 + $0x570] sm:$0xff]  ;;  %v2385_v4 = vld [vmem:[#allocation2 + $0x568] sm:$0xff]  ;;  %v2384_v32 = vld [vmem:[#allocation2 + $0x560] sm:$0xff] }
 0x237   :  { %7247 = vmatprep.mubr.f32.mxu0 %v8891_v47  ;;  %7336 = vmatprep.subr.mxu0 %v1674_v31  ;;  %v1771_v18 = vsel %vm324_vm2, %v1768_v12, %v1770_v29  ;;  %v1774_v54 = vrot.slane %v8854_v50, 1  ;;  %v1773_v33 = vsel %vm324_vm2, %v1770_v29, %v1772_v6  ;;  %v1776_v61 = vrot.slane %v8844_v30, 1  ;;  %v8954_v12 = vld [vmem:[#allocation2 + $0x5f8] sm:$0xff] }
 0x238   :  { %v8903_v22 = vsel %vm166_vm6, %v1619_v34, 0.0  ;;  %7304 = vmatmul.mubr.f32.gmra.mxu1 %v1731_v37  ;;  %7337 = vmatpush3.msra.mxu0 %v1674_v31  ;;  %v1733_v44 = vsel %vm269_vm0, %v1730_v38, %v1732_v13  ;;  %v8906_v52 = vmax.f32 %v1600_v16, 0.0  ;;  %v1735_v53 = vsel %vm269_vm0, %v1732_v13, %v1734_v51  ;;  %v2383_v31 = vld [vmem:[#allocation2 + $0x558] sm:$0xff]  ;;  %v2369_v38 = vld [vmem:[#allocation2 + $0x4e8] sm:$0xff]  ;;  %v2368_v16 = vld [vmem:[#allocation2 + $0x4e0] sm:$0xff] }
 0x239   :  { %7248 = vmatmul.mubr.f32.gmra.mxu0 %v8893_v14  ;;  %7306 = vmatprep.mubr.f32.mxu1 %v1733_v44  ;;  %v1738_v63 = vrot.slane %v8903_v22, 7  ;;  %v1775_v40 = vsel %vm324_vm2, %v1772_v6, %v1774_v54  ;;  %v1778_v59 = vrot.slane %v8862_v46, 1  ;;  %v1777_v36 = vsel %vm324_vm2, %v1774_v54, %v1776_v61  ;;  %v2381_v13 = vld [vmem:[#allocation2 + $0x548] sm:$0xff]  ;;  %v2367_v37 = vld [vmem:[#allocation2 + $0x4d8] sm:$0xff] }
 0x23a   :  { %7338 = vmatprep.subr.mxu0 %v1673_v7  ;;  %7250 = vmatprep.mubr.f32.mxu0 %v8906_v52  ;;  %v1736_v55 = vrot.slane %v8906_v52, 7  ;;  %v1780_v57 = vrot.slane %v8864_v58, 1  ;;  %v1782_v50 = vrot.slane %v8877_v41, 1  ;;  %v1784_v30 = vrot.slane %v8879_v3, 1  ;;  %v2379_v44 = vld [vmem:[#allocation2 + $0x538] sm:$0xff] }
 0x23b   :  { %7339 = vmatpush3.msra.mxu0 %v1673_v7  ;;  %v1779_v19 = vsel %vm324_vm2, %v1776_v61, %v1778_v59  ;;  %v1786_v46 = vrot.slane %v8891_v47, 1  ;;  %v1788_v58 = vrot.slane %v8893_v14, 1  ;;  %v1790_v41 = vrot.slane %v8906_v52, 1  ;;  %7371 = vmatprep.subr.mxu1 %v2387_v11  ;;  %v2371_v47 = vld [vmem:[#allocation2 + $0x4f8] sm:$0xff]  ;;  %v2370_v14 = vld [vmem:[#allocation2 + $0x4f0] sm:$0xff]  ;;  %v2380_v7 = vld [vmem:[#allocation2 + $0x540] sm:$0xff] }
 0x23c   :  { %7307 = vmatmul.mubr.f32.gmra.mxu1 %v1735_v53  ;;  %7340 = vmatprep.subr.mxu0 %v1672_v56  ;;  %v1737_v43 = vsel %vm269_vm0, %v1734_v51, %v1736_v55  ;;  %v1739_v60 = vsel %vm269_vm0, %v1736_v55, %v1738_v63  ;;  %v1781_v25 = vsel %vm324_vm2, %v1778_v59, %v1780_v57  ;;  %v1792_v26 = vrot.slane %v8903_v22, 1  ;;  %v2366_v22 = vld [vmem:[#allocation2 + $0x4d0] sm:$0xff]  ;;  %v2365_v52 = vld [vmem:[#allocation2 + $0x4c8] sm:$0xff]  ;;  %v2363_v55 = vld [vmem:[#allocation2 + $0x4b8] sm:$0xff] }
 0x23d   :  { %7251 = vmatmul.mubr.msk.f32.gmra.mxu0 %vm166_vm6, %v1619_v34  ;;  %7309 = vmatprep.mubr.f32.mxu1 %v1737_v43  ;;  %v1783_v24 = vsel %vm324_vm2, %v1780_v57, %v1782_v50  ;;  %v1785_v20 = vsel %vm324_vm2, %v1782_v50, %v1784_v30  ;;  %v1787_v21 = vsel %vm324_vm2, %v1784_v30, %v1786_v46  ;;  %v2382_v34 = vld [vmem:[#allocation2 + $0x550] sm:$0xff]  ;;  %v2376_v63 = vld [vmem:[#allocation2 + $0x520] sm:$0xff] }
 0x23e   :  { %7341 = vmatpush3.msra.mxu0 %v1672_v56  ;;  %7344 = vmatprep.mubr.f32.mxu0 %v1761_v2  ;;  %v1789_v27 = vsel %vm324_vm2, %v1786_v46, %v1788_v58  ;;  %v1791_v3 = vsel %vm324_vm2, %v1788_v58, %v1790_v41  ;;  %v1793_v42 = vsel %vm324_vm2, %v1790_v41, %v1792_v26  ;;  %v2378_v51 = vld [vmem:[#allocation2 + $0x530] sm:$0xff]  ;;  %v2364_v56 = vld [vmem:[#allocation2 + $0x4c0] sm:$0xff]  ;;  %v2359_v2 = vld [vmem:[#allocation2 + $0x498] sm:$0xff] }
 0x23f   :  { %7342 = vmatprep.subr.mxu0 %v1671_v45  ;;  %7372 = vmatpush3.msra.mxu1 %v2387_v11  ;;  %v2362_v53 = vld [vmem:[#allocation2 + $0x4b0] sm:$0xff]  ;;  %v2360_v43 = vld [vmem:[#allocation2 + $0x4a0] sm:$0xff] }
 0x240   :  { %7343 = vmatpush3.msra.mxu0 %v1671_v45  ;;  %7310 = vmatmul.mubr.f32.gmra.mxu1 %v1739_v60  ;;  %v2374_v45 = vld [vmem:[#allocation2 + $0x510] sm:$0xff]  ;;  %v2373_v60 = vld [vmem:[#allocation2 + $0x508] sm:$0xff] }
 0x241   :  { %7345 = vmatmul.mubr.f32.vlgmr.msra.gmra.mxu0 %v1763_v9  ;;  %7373 = vmatprep.subr.mxu1 %v2386_v28  ;;  %v2372_v9 = vld [vmem:[#allocation2 + $0x500] sm:$0xff] }
 0x242   :  { %7347 = vmatprep.mubr.f32.mxu0 %v1765_v8  ;;  %7374 = vmatpush3.msra.mxu1 %v2386_v28  ;;  %v2356_v8 = vld [vmem:[#allocation2 + $0x480] sm:$0xff] }
 0x243   :  { %7375 = vmatprep.subr.mxu1 %v2385_v4  ;;  %7430 = vmatprep.subr.mxu0 %v2371_v47 }
 0x244   :  { %7376 = vmatpush3.msra.mxu1 %v2385_v4  ;;  %7431 = vmatpush3.msra.mxu0 %v2371_v47  ;;  %v8979_v47 = vld [vmem:[#allocation4 + $0x2] ss:$0 sm:$0xff] }
 0x245   :  { %7348 = vmatmul.mubr.f32.gmra.mxu0 %v1767_v48  ;;  %7377 = vmatprep.subr.mxu1 %v2384_v32 }
 0x246   :  { %7350 = vmatprep.mubr.f32.mxu0 %v1769_v17  ;;  %7378 = vmatpush3.msra.mxu1 %v2384_v32 }
 0x247   :  { %7379 = vmatprep.subr.mxu1 %v2383_v31  ;;  %7432 = vmatprep.subr.mxu0 %v2370_v14 }
 0x248   :  { %7380 = vmatpush3.msra.mxu1 %v2383_v31  ;;  %7433 = vmatpush3.msra.mxu0 %v2370_v14 }
 0x249   :  { %7351 = vmatmul.mubr.f32.gmra.mxu0 %v1771_v18  ;;  %7434 = vmatprep.subr.mxu0 %v2369_v38 }
 0x24a   :  { %7353 = vmatprep.mubr.f32.mxu0 %v1773_v33  ;;  %7381 = vmatprep.subr.mxu1 %v2382_v34 }
 0x24b   :  { %7435 = vmatpush3.msra.mxu0 %v2369_v38  ;;  %7382 = vmatpush3.msra.mxu1 %v2382_v34 }
 0x24c   :  { %7436 = vmatprep.subr.mxu0 %v2368_v16  ;;  %7383 = vmatprep.subr.mxu1 %v2381_v13 }
 0x24d   :  { %7354 = vmatmul.mubr.f32.gmra.mxu0 %v1775_v40  ;;  %7384 = vmatpush3.msra.mxu1 %v2381_v13 }
 0x24e   :  { %7356 = vmatprep.mubr.f32.mxu0 %v1777_v36  ;;  %7437 = vmatpush3.msra.mxu0 %v2368_v16 }
 0x24f   :  { %7438 = vmatprep.subr.mxu0 %v2367_v37  ;;  %7385 = vmatprep.subr.mxu1 %v2380_v7 }
 0x250   :  { %7439 = vmatpush3.msra.mxu0 %v2367_v37  ;;  %7386 = vmatpush3.msra.mxu1 %v2380_v7 }
 0x251   :  { %7357 = vmatmul.mubr.f32.gmra.mxu0 %v1779_v19  ;;  %7440 = vmatprep.subr.mxu0 %v2366_v22 }
 0x252   :  { %7359 = vmatprep.mubr.f32.mxu0 %v1781_v25  ;;  %7387 = vmatprep.subr.mxu1 %v2379_v44 }
 0x253   :  { %7441 = vmatpush3.msra.mxu0 %v2366_v22  ;;  %7388 = vmatpush3.msra.mxu1 %v2379_v44 }
 0x254   :  { %7442 = vmatprep.subr.mxu0 %v2365_v52  ;;  %7389 = vmatprep.subr.mxu1 %v2378_v51 }
 0x255   :  { %7360 = vmatmul.mubr.f32.gmra.mxu0 %v1783_v24  ;;  %7390 = vmatpush3.msra.mxu1 %v2378_v51 }
 0x256   :  { %7362 = vmatprep.mubr.f32.mxu0 %v1785_v20  ;;  %7443 = vmatpush3.msra.mxu0 %v2365_v52 }
 0x257   :  { %7444 = vmatprep.subr.mxu0 %v2364_v56  ;;  %7391 = vmatprep.subr.mxu1 %v2377_v5 }
 0x258   :  { %7445 = vmatpush3.msra.mxu0 %v2364_v56  ;;  %7392 = vmatpush3.msra.mxu1 %v2377_v5 }
 0x259   :  { %7363 = vmatmul.mubr.f32.gmra.mxu0 %v1787_v21  ;;  %7446 = vmatprep.subr.mxu0 %v2363_v55 }
 0x25a   :  { %7365 = vmatprep.mubr.f32.mxu0 %v1789_v27  ;;  %7447 = vmatpush3.msra.mxu0 %v2363_v55 }
 0x25b   :  { %7393 = vmatprep.subr.mxu1 %v2376_v63  ;;  %7448 = vmatprep.subr.mxu0 %v2362_v53 }
 0x25c   :  { %7394 = vmatpush3.msra.mxu1 %v2376_v63  ;;  %7449 = vmatpush3.msra.mxu0 %v2362_v53 }
 0x25d   :  { %7366 = vmatmul.mubr.f32.gmra.mxu0 %v1791_v3  ;;  %7450 = vmatprep.subr.mxu0 %v2361_v62 }
 0x25e   :  { %7368 = vmatprep.mubr.f32.mxu0 %v1793_v42  ;;  %7395 = vmatprep.subr.mxu1 %v2375_v49 }
 0x25f   :  { %7451 = vmatpush3.msra.mxu0 %v2361_v62  ;;  %7396 = vmatpush3.msra.mxu1 %v2375_v49 }
 0x260   :  { %7452 = vmatprep.subr.mxu0 %v2360_v43  ;;  %7397 = vmatprep.subr.mxu1 %v2374_v45 }
 0x261   :  { %7369 = vmatmul.mubr.msk.f32.gmra.mxu0 %vm324_vm2, %v1792_v26  ;;  %7398 = vmatpush3.msra.mxu1 %v2374_v45 }
 0x262   :  { %7453 = vmatpush3.msra.mxu0 %v2360_v43  ;;  %7399 = vmatprep.subr.mxu1 %v2373_v60 }
 0x263   :  { %7454 = vmatprep.subr.mxu0 %v2359_v2  ;;  %7400 = vmatpush3.msra.mxu1 %v2373_v60 }
 0x264   :  { %7455 = vmatpush3.msra.mxu0 %v2359_v2  ;;  %7401 = vmatprep.subr.mxu1 %v2372_v9 }
 0x265   :  { %7456 = vmatprep.subr.mxu0 %v2358_v1  ;;  %7402 = vmatpush3.msra.mxu1 %v2372_v9 }
 0x266   :  { %7457 = vmatpush3.msra.mxu0 %v2358_v1  ;;  %7489 = vmatprep.subr.mxu1 %v8954_v12  ;;  %v2402_v1 = vld [vmem:[#allocation2 + $0x5f0] sm:$0xff] }
 0x267   :  { %7458 = vmatprep.subr.mxu0 %v2357_v0 }
 0x268   :  { %7459 = vmatpush3.msra.mxu0 %v2357_v0 }
 0x269   :  { %7460 = vmatprep.subr.mxu0 %v2356_v8 }
 0x26a   :  { %7461 = vmatpush3.msra.mxu0 %v2356_v8 }
 0x2db   :  { %v7228_v48 = vpop.f32.mrf.mxu0 }
 0x2dd   :  { %v1879_v29 = vpop.f32.mrf.mxu0 }
 0x2de   :  { %v7287_v17 = vpop.f32.mrf.mxu1 }
 0x2df   :  { %v7231_v6 = vpop.f32.mrf.mxu0  ;;  %v2040_v4 = vadd.f32 %v7287_v17, %v7228_v48 }
 0x2e0   :  { %v2034_v18 = vpop.f32.mrf.mxu1 }
 0x2e1   :  { %v1889_v54 = vpop.f32.mrf.mxu0  ;;  %v2035_v31 = vadd.f32 %v2034_v18, %v1879_v29 }
 0x2e3   :  { %v7290_v33 = vpop.f32.mrf.mxu1 }
 0x2e4   :  { %v7234_v61 = vpop.f32.mrf.mxu0  ;;  %v2050_v16 = vadd.f32 %v7290_v33, %v7231_v6 }
 0x2e5   :  { %v2044_v59 = vpop.f32.mrf.mxu1 }
 0x2e6   :  { %v1899_v40 = vpop.f32.mrf.mxu0  ;;  %v2045_v22 = vadd.f32 %v2044_v59, %v1889_v54 }
 0x2e7   :  { %v7293_v19 = vpop.f32.mrf.mxu1 }
 0x2e8   :  { %v7237_v36 = vpop.f32.mrf.mxu0  ;;  %v2060_v55 = vadd.f32 %v7293_v19, %v7234_v61 }
 0x2e9   :  { %v2054_v25 = vpop.f32.mrf.mxu1 }
 0x2ea   :  { %v1909_v57 = vpop.f32.mrf.mxu0  ;;  %v2055_v43 = vadd.f32 %v2054_v25, %v1899_v40 }
 0x2eb   :  { %v7296_v46 = vpop.f32.mrf.mxu1 }
 0x2ec   :  { %v2070_v17 = vadd.f32 %v7296_v46, %v7237_v36  ;;  %v2401_v36 = vld [vmem:[#allocation2 + $0x5e8] sm:$0xff] }
 0x2ed   :  { %v8957_v50 = vpop.f32.mrf.mxu0  ;;  %v2064_v21 = vpop.f32.mrf.mxu1 }
 0x2ee   :  { %v2065_v40 = vadd.f32 %v2064_v21, %v1909_v57 }
 0x2ef   :  { %v8959_v30 = vpop.f32.mrf.mxu0 }
 0x2f0   :  { %v7299_v27 = vpop.f32.mrf.mxu1 }
 0x2f1   :  { %v8961_v24 = vpop.f32.mrf.mxu0  ;;  %v2080_v57 = vadd.f32 %v7299_v27, %v8957_v50 }
 0x2f2   :  { %v8975_v11 = vpop.f32.mrf.mxu1 }
 0x2f3   :  { %v8963_v20 = vpop.f32.mrf.mxu0 }
 0x2f4   :  { %v8981_v38 = vpop.f32.mrf.mxu1 }
 0x2f5   :  { %v8965_v58 = vpop.f32.mrf.mxu0  ;;  %v2090_v27 = vadd.f32 %v8981_v38, %v8961_v24 }
 0x2f6   :  { %v8985_v51 = vpop.f32.mrf.mxu1 }
 0x2f7   :  { %v8967_v41 = vpop.f32.mrf.mxu0  ;;  %v2085_v24 = vadd.f32 %v8985_v51, %v8963_v20  ;;  %v2397_v20 = vld [vmem:[#allocation2 + $0x5c8] sm:$0xff] }
 0x2f8   :  { %v8997_v9 = vpop.f32.mrf.mxu1 }
 0x2f9   :  { %v8969_v26 = vpop.f32.mrf.mxu0 }
 0x2fa   :  { %v9013_v25 = vpop.f32.mrf.mxu1 }
 0x2fb   :  { %v8971_v3 = vpop.f32.mrf.mxu0 }
 0x2fd   :  { %v8973_v42 = vpop.f32.mrf.mxu0 }
 0x2ff   :  { %v8977_v28 = vpop.f32.mrf.mxu0 }
 0x301   :  { %v7346_v32 = vpop.f32.mrf.mxu0 }
 0x302   :  { %v2279_v14 = vadd.f32 %v7346_v32, %v2040_v4 }
 0x303   :  { %v2189_v34 = vpop.f32.mrf.mxu0 }
 0x304   :  { %v2302_v13 = vadd.f32 %v8979_v47, %v2279_v14  ;;  %v2278_v37 = vadd.f32 %v2189_v34, %v2035_v31 }
 0x305   :  { %v7349_v7 = vpop.f32.mrf.mxu0 }
 0x306   :  { %v2301_v44 = vadd.f32 %v8979_v47, %v2278_v37  ;;  %v2281_v52 = vadd.f32 %v7349_v7, %v2050_v16  ;;  %v8987_v56 = vmax.f32 %v2302_v13, 0.0  ;;  %v2400_v37 = vld [vmem:[#allocation2 + $0x5e0] sm:$0xff]  ;;  %v2075_v7 = vadd.f32 %v8975_v11, %v8959_v30 }
 0x307   :  { %v2199_v5 = vpop.f32.mrf.mxu0 }
 0x308   :  { %v2319_v63 = vmax.f32 %v2301_v44, 0.0  ;;  %v2304_v53 = vadd.f32 %v8979_v47, %v2281_v52  ;;  %v2280_v62 = vadd.f32 %v2199_v5, %v2045_v22  ;;  %v2423_v0 = vrot.slane %v8987_v56, 7  ;;  %v7308_v52 = vpop.f32.mrf.mxu1 }
 0x309   :  { %v7352_v49 = vpop.f32.mrf.mxu0 }
 0x30a   :  { %v8992_v45 = vsel %vm77_vm3, %v2319_v63, 0.0  ;;  %v2303_v2 = vadd.f32 %v8979_v47, %v2280_v62  ;;  %v2283_v60 = vadd.f32 %v7352_v49, %v2060_v55  ;;  %7403 = vmatprep.mubr.msk.f32.mxu1 %vm77_vm3, %v2319_v63  ;;  %v9001_v48 = vmax.f32 %v2304_v53, 0.0  ;;  %v2399_v63 = vld [vmem:[#allocation2 + $0x5d8] sm:$0xff] }
 0x30b   :  { %v2422_v8 = vrot.slane %v8992_v45, 7  ;;  %v2209_v29 = vpop.f32.mrf.mxu0  ;;  %7404 = vmatmul.mubr.f32.vlgmr.msra.gmra.mxu1 %v8987_v56 }
 0x30c   :  { %v2306_v6 = vadd.f32 %v8979_v47, %v2283_v60  ;;  %v2282_v18 = vadd.f32 %v2209_v29, %v2055_v43  ;;  %7490 = vmatpush3.msra.mxu1 %v8954_v12  ;;  %v9006_v54 = vmax.f32 %v2303_v2, 0.0  ;;  %v2427_v32 = vrot.slane %v9001_v48, 7  ;;  %v2398_v2 = vld [vmem:[#allocation2 + $0x5d0] sm:$0xff]  ;;  %v2104_v29 = vpop.f32.mrf.mxu1 }
 0x30d   :  { %v7355_v33 = vpop.f32.mrf.mxu0  ;;  %7462 = vmatprep.mubr.msk.f32.mxu0 %vm8358_vm1, %v2422_v8  ;;  %v2424_v61 = vsel %vm269_vm0, %v2422_v8, %v2423_v0  ;;  %7491 = vmatprep.subr.mxu1 %v2402_v1 }
 0x30e   :  { %v2305_v59 = vadd.f32 %v8979_v47, %v2282_v18  ;;  %v2285_v19 = vadd.f32 %v7355_v33, %v2070_v17  ;;  %7406 = vmatprep.mubr.f32.mxu1 %v9006_v54  ;;  %7463 = vmatmul.mubr.f32.vlgmr.msra.gmra.mxu0 %v2424_v61  ;;  %v9015_v12 = vmax.f32 %v2306_v6, 0.0  ;;  %v2425_v4 = vrot.slane %v9006_v54, 7 }
 0x30f   :  { %v2219_v46 = vpop.f32.mrf.mxu0  ;;  %7407 = vmatmul.mubr.f32.gmra.mxu1 %v9001_v48  ;;  %v2100_v6 = vadd.f32 %v8997_v9, %v8965_v58  ;;  %v2095_v58 = vadd.f32 %v9013_v25, %v8967_v41  ;;  %v2110_v25 = vadd.f32 %v7308_v52, %v8969_v26  ;;  %v2105_v26 = vadd.f32 %v2104_v29, %v8971_v3  ;;  %v2392_v29 = vld [vmem:[#allocation2 + $0x5a0] sm:$0xff] }
 0x310   :  { %v2308_v21 = vadd.f32 %v8979_v47, %v2285_v19  ;;  %v2284_v31 = vadd.f32 %v2219_v46, %v2065_v40  ;;  %7492 = vmatpush3.msra.mxu1 %v2402_v1  ;;  %v9022_v14 = vmax.f32 %v2305_v59, 0.0  ;;  %v2426_v16 = vsel %vm269_vm0, %v2423_v0, %v2425_v4 }
 0x311   :  { %7493 = vmatprep.subr.mxu1 %v2401_v36  ;;  %v7358_v34 = vpop.f32.mrf.mxu0  ;;  %v2428_v13 = vsel %vm269_vm0, %v2425_v4, %v2427_v32  ;;  %7465 = vmatprep.mubr.f32.mxu0 %v2426_v16  ;;  %v2431_v30 = vrot.slane %v9015_v12, 7  ;;  %v2395_v16 = vld [vmem:[#allocation2 + $0x5b8] sm:$0xff] }
 0x312   :  { %v2307_v22 = vadd.f32 %v8979_v47, %v2284_v31  ;;  %v2287_v44 = vadd.f32 %v7358_v34, %v2080_v57  ;;  %7494 = vmatpush3.msra.mxu1 %v2401_v36  ;;  %v2429_v50 = vrot.slane %v9022_v14, 7  ;;  %v9032_v5 = vmax.f32 %v2308_v21, 0.0  ;;  %7409 = vmatprep.mubr.f32.mxu1 %v9022_v14  ;;  %v7311_v57 = vpop.f32.mrf.mxu1 }
 0x313   :  { %7466 = vmatmul.mubr.f32.gmra.mxu0 %v2428_v13  ;;  %v2229_v55 = vpop.f32.mrf.mxu0  ;;  %7495 = vmatprep.subr.mxu1 %v2400_v37 }
 0x314   :  { %v2310_v11 = vadd.f32 %v8979_v47, %v2287_v44  ;;  %v2286_v53 = vadd.f32 %v2229_v55, %v2075_v7  ;;  %7410 = vmatmul.mubr.f32.gmra.mxu1 %v9015_v12  ;;  %v2430_v62 = vsel %vm269_vm0, %v2427_v32, %v2429_v50  ;;  %v9039_v49 = vmax.f32 %v2307_v22, 0.0  ;;  %v2396_v32 = vld [vmem:[#allocation2 + $0x5c0] sm:$0xff]  ;;  %v2394_v55 = vld [vmem:[#allocation2 + $0x5b0] sm:$0xff] }
 0x315   :  { %7496 = vmatpush3.msra.mxu1 %v2400_v37  ;;  %v7361_v38 = vpop.f32.mrf.mxu0  ;;  %7468 = vmatprep.mubr.f32.mxu0 %v2430_v62  ;;  %v2432_v43 = vsel %vm269_vm0, %v2429_v50, %v2431_v30  ;;  %v2435_v51 = vrot.slane %v9032_v5, 7 }
 0x316   :  { %v2328_v60 = vmax.f32 %v2310_v11, 0.0  ;;  %v2309_v1 = vadd.f32 %v8979_v47, %v2286_v53  ;;  %7497 = vmatprep.subr.mxu1 %v2399_v63  ;;  %v2289_v0 = vadd.f32 %v7361_v38, %v2090_v27  ;;  %7412 = vmatprep.mubr.f32.mxu1 %v9039_v49  ;;  %v2433_v8 = vrot.slane %v9039_v49, 7  ;;  %v2393_v38 = vld [vmem:[#allocation2 + $0x5a8] sm:$0xff] }
 0x317   :  { %7498 = vmatpush3.msra.mxu1 %v2399_v63  ;;  %7469 = vmatmul.mubr.f32.gmra.mxu0 %v2432_v43  ;;  %v2239_v17 = vpop.f32.mrf.mxu0  ;;  %v2120_v53 = vadd.f32 %v7311_v57, %v8973_v42 }
 0x318   :  { %v9052_v18 = vsel %vm140_vm4, %v2328_v60, 0.0  ;;  %v2327_v33 = vmax.f32 %v2309_v1, 0.0  ;;  %v2288_v61 = vadd.f32 %v2239_v17, %v2085_v24  ;;  %7413 = vmatmul.mubr.f32.gmra.mxu1 %v9032_v5  ;;  %7499 = vmatprep.subr.mxu1 %v2398_v2  ;;  %v2312_v40 = vadd.f32 %v8979_v47, %v2289_v0 }
 0x319   :  { %7500 = vmatpush3.msra.mxu1 %v2398_v2  ;;  %v7364_v59 = vpop.f32.mrf.mxu0  ;;  %v2434_v19 = vsel %vm269_vm0, %v2431_v30, %v2433_v8  ;;  %v2436_v36 = vsel %vm269_vm0, %v2433_v8, %v2435_v51  ;;  %v2439_v21 = vrot.slane %v9052_v18, 7  ;;  %v2114_v30 = vpop.f32.mrf.mxu1 }
 0x31a   :  { %v9062_v9 = vsel %vm103_vm5, %v2327_v33, 0.0  ;;  %v2311_v46 = vadd.f32 %v8979_v47, %v2288_v61  ;;  %v2291_v4 = vadd.f32 %v7364_v59, %v2100_v6  ;;  %7471 = vmatprep.mubr.f32.mxu0 %v2434_v19  ;;  %7501 = vmatprep.subr.mxu1 %v2397_v20  ;;  %v9072_v37 = vmax.f32 %v2312_v40, 0.0  ;;  %v2391_v40 = vld [vmem:[#allocation2 + $0x598] sm:$0xff] }
 0x31b   :  { %7415 = vmatprep.mubr.msk.f32.mxu1 %vm103_vm5, %v2327_v33  ;;  %7472 = vmatmul.mubr.f32.gmra.mxu0 %v2436_v36  ;;  %v2249_v31 = vpop.f32.mrf.mxu0  ;;  %v2437_v41 = vrot.slane %v9062_v9, 7  ;;  %v2115_v42 = vadd.f32 %v2114_v30, %v8977_v28 }
 0x31c   :  { %7502 = vmatpush3.msra.mxu1 %v2397_v20  ;;  %v2290_v34 = vadd.f32 %v2249_v31, %v2095_v58  ;;  %v9070_v13 = vmax.f32 %v2311_v46, 0.0  ;;  %v2314_v7 = vadd.f32 %v8979_v47, %v2291_v4  ;;  %v2443_v1 = vrot.slane %v9072_v37, 7 }
 0x31d   :  { %7416 = vmatmul.mubr.msk.f32.gmra.mxu1 %vm140_vm4, %v2328_v60  ;;  %7503 = vmatprep.subr.mxu1 %v2396_v32  ;;  %v7367_v22 = vpop.f32.mrf.mxu0  ;;  %v2438_v44 = vsel %vm269_vm0, %v2435_v51, %v2437_v41  ;;  %v2440_v50 = vsel %vm269_vm0, %v2437_v41, %v2439_v21  ;;  %v2389_v41 = vld [vmem:[#allocation2 + $0x588] sm:$0xff] }
 0x31e   :  { %v2313_v27 = vadd.f32 %v8979_v47, %v2290_v34  ;;  %7504 = vmatpush3.msra.mxu1 %v2396_v32  ;;  %v2293_v52 = vadd.f32 %v7367_v22, %v2110_v25  ;;  %7418 = vmatprep.mubr.f32.mxu1 %v9070_v13  ;;  %v2441_v63 = vrot.slane %v9070_v13, 7  ;;  %v9087_v43 = vmax.f32 %v2314_v7, 0.0  ;;  %v2390_v32 = vld [vmem:[#allocation2 + $0x590] sm:$0xff] }
 0x31f   :  { %7505 = vmatprep.subr.mxu1 %v2395_v16  ;;  %7474 = vmatprep.mubr.f32.mxu0 %v2438_v44  ;;  %v2259_v11 = vpop.f32.mrf.mxu0  ;;  %v2476_v25 = vrot.slane %v8992_v45, 1  ;;  %v2477_v22 = vrot.slane %v8987_v56, 1  ;;  %v2479_v44 = vrot.slane %v9006_v54, 1  ;;  %v2481_v56 = vrot.slane %v9001_v48, 1 }
 0x320   :  { %7506 = vmatpush3.msra.mxu1 %v2395_v16  ;;  %v2292_v62 = vadd.f32 %v2259_v11, %v2105_v26  ;;  %7475 = vmatmul.mubr.f32.gmra.mxu0 %v2440_v50  ;;  %v2442_v3 = vsel %vm269_vm0, %v2439_v21, %v2441_v63  ;;  %v9085_v24 = vmax.f32 %v2313_v27, 0.0  ;;  %v2316_v2 = vadd.f32 %v8979_v47, %v2293_v52  ;;  %v2388_v26 = vld [vmem:[#allocation2 + $0x580] sm:$0xff] }
 0x321   :  { %7419 = vmatmul.mubr.f32.gmra.mxu1 %v9072_v37  ;;  %7507 = vmatprep.subr.mxu1 %v2394_v55  ;;  %v7370_v60 = vpop.f32.mrf.mxu0  ;;  %v2444_v51 = vsel %vm269_vm0, %v2441_v63, %v2443_v1  ;;  %v2447_v19 = vrot.slane %v9087_v43, 7  ;;  %v2478_v45 = vsel %vm324_vm2, %v2476_v25, %v2477_v22  ;;  %v2480_v54 = vsel %vm324_vm2, %v2477_v22, %v2479_v44  ;;  %v3094_v25 = vld [vmem:[#allocation2 + $0x6a8] sm:$0xff] }
 0x322   :  { %v2315_v0 = vadd.f32 %v8979_v47, %v2292_v62  ;;  %v2295_v8 = vadd.f32 %v7370_v60, %v2120_v53  ;;  %7477 = vmatprep.mubr.f32.mxu0 %v2442_v3  ;;  %7508 = vmatpush3.msra.mxu1 %v2394_v55  ;;  %v2445_v17 = vrot.slane %v9085_v24, 7  ;;  %v9101_v59 = vmax.f32 %v2316_v2, 0.0  ;;  %v3078_v22 = vld [vmem:[#allocation2 + $0x628] sm:$0xff] }
 0x323   :  { %7421 = vmatprep.mubr.f32.mxu1 %v9085_v24  ;;  %7509 = vmatprep.subr.mxu1 %v2393_v38  ;;  %v2269_v20 = vpop.f32.mrf.mxu0  ;;  %v2483_v52 = vrot.slane %v9022_v14, 1  ;;  %v2482_v55 = vsel %vm324_vm2, %v2479_v44, %v2481_v56  ;;  %v2485_v63 = vrot.slane %v9015_v12, 1  ;;  %v2487_v11 = vrot.slane %v9039_v49, 1  ;;  %v3092_v44 = vld [vmem:[#allocation2 + $0x698] sm:$0xff] }
 0x324   :  { %v2318_v6 = vadd.f32 %v8979_v47, %v2295_v8  ;;  %v2294_v33 = vadd.f32 %v2269_v20, %v2115_v42  ;;  %7478 = vmatmul.mubr.f32.gmra.mxu0 %v2444_v51  ;;  %7510 = vmatpush3.msra.mxu1 %v2393_v38  ;;  %v2446_v28 = vsel %vm269_vm0, %v2443_v1, %v2445_v17  ;;  %v9099_v61 = vmax.f32 %v2315_v0, 0.0  ;;  %v3104_v51 = vld [vmem:[#allocation2 + $0x6f8] sm:$0xff] }
 0x325   :  { %7422 = vmatmul.mubr.f32.gmra.mxu1 %v9087_v43  ;;  %7511 = vmatprep.subr.mxu1 %v2392_v29  ;;  %v2448_v4 = vsel %vm269_vm0, %v2445_v17, %v2447_v19  ;;  %v2484_v30 = vsel %vm324_vm2, %v2481_v56, %v2483_v52  ;;  %v2486_v53 = vsel %vm324_vm2, %v2483_v52, %v2485_v63  ;;  %v2489_v48 = vrot.slane %v9032_v5, 1  ;;  %v3075_v56 = vld [vmem:[#allocation2 + $0x610] sm:$0xff]  ;;  %v3074_v52 = vld [vmem:[#allocation2 + $0x608] sm:$0xff] }
 0x326   :  { %v2336_v36 = vmax.f32 %v2318_v6, 0.0  ;;  %v2317_v58 = vadd.f32 %v8979_v47, %v2294_v33  ;;  %7480 = vmatprep.mubr.f32.mxu0 %v2446_v28  ;;  %7512 = vmatpush3.msra.mxu1 %v2392_v29  ;;  %v2449_v46 = vrot.slane %v9099_v61, 7  ;;  %v2451_v47 = vrot.slane %v9101_v59, 7  ;;  %v3103_v6 = vld [vmem:[#allocation2 + $0x6f0] sm:$0xff]  ;;  %v3102_v33 = vld [vmem:[#allocation2 + $0x6e8] sm:$0xff]  ;;  %v3101_v28 = vld [vmem:[#allocation2 + $0x6e0] sm:$0xff] }
 0x327   :  { %7424 = vmatprep.mubr.f32.mxu1 %v9099_v61  ;;  %7513 = vmatprep.subr.mxu1 %v2391_v40  ;;  %v2488_v62 = vsel %vm324_vm2, %v2485_v63, %v2487_v11  ;;  %v2491_v14 = vrot.slane %v9062_v9, 1  ;;  %v2490_v3 = vsel %vm324_vm2, %v2487_v11, %v2489_v48  ;;  %v2493_v12 = vrot.slane %v9052_v18, 1  ;;  %v9162_v63 = vld [vmem:[#allocation2 + $0x778] sm:$0xff] }
 0x328   :  { %v9111_v57 = vsel %vm166_vm6, %v2336_v36, 0.0  ;;  %7481 = vmatmul.mubr.f32.gmra.mxu0 %v2448_v4  ;;  %7514 = vmatpush3.msra.mxu1 %v2391_v40  ;;  %v2450_v21 = vsel %vm269_vm0, %v2447_v19, %v2449_v46  ;;  %v9114_v31 = vmax.f32 %v2317_v58, 0.0  ;;  %v2452_v7 = vsel %vm269_vm0, %v2449_v46, %v2451_v47  ;;  %v3100_v40 = vld [vmem:[#allocation2 + $0x6d8] sm:$0xff]  ;;  %v3086_v19 = vld [vmem:[#allocation2 + $0x668] sm:$0xff]  ;;  %v3085_v58 = vld [vmem:[#allocation2 + $0x660] sm:$0xff] }
 0x329   :  { %7425 = vmatmul.mubr.f32.gmra.mxu1 %v9101_v59  ;;  %7483 = vmatprep.mubr.f32.mxu0 %v2450_v21  ;;  %v2455_v16 = vrot.slane %v9111_v57, 7  ;;  %v2492_v38 = vsel %vm324_vm2, %v2489_v48, %v2491_v14  ;;  %v2495_v49 = vrot.slane %v9070_v13, 1  ;;  %v2494_v2 = vsel %vm324_vm2, %v2491_v14, %v2493_v12  ;;  %v3098_v46 = vld [vmem:[#allocation2 + $0x6c8] sm:$0xff]  ;;  %v3084_v4 = vld [vmem:[#allocation2 + $0x658] sm:$0xff] }
 0x32a   :  { %7515 = vmatprep.subr.mxu1 %v2390_v32  ;;  %7427 = vmatprep.mubr.f32.mxu1 %v9114_v31  ;;  %v2453_v34 = vrot.slane %v9114_v31, 7  ;;  %v2497_v5 = vrot.slane %v9072_v37, 1  ;;  %v2499_v9 = vrot.slane %v9085_v24, 1  ;;  %v2501_v18 = vrot.slane %v9087_v43, 1  ;;  %v3096_v21 = vld [vmem:[#allocation2 + $0x6b8] sm:$0xff] }
 0x32b   :  { %7516 = vmatpush3.msra.mxu1 %v2390_v32  ;;  %v2496_v60 = vsel %vm324_vm2, %v2493_v12, %v2495_v49  ;;  %v2503_v13 = vrot.slane %v9099_v61, 1  ;;  %v2505_v37 = vrot.slane %v9101_v59, 1  ;;  %v2507_v24 = vrot.slane %v9114_v31, 1  ;;  %7548 = vmatprep.subr.mxu0 %v3104_v51  ;;  %v3088_v61 = vld [vmem:[#allocation2 + $0x678] sm:$0xff]  ;;  %v3087_v59 = vld [vmem:[#allocation2 + $0x670] sm:$0xff]  ;;  %v3097_v32 = vld [vmem:[#allocation2 + $0x6c0] sm:$0xff] }
 0x32c   :  { %7484 = vmatmul.mubr.f32.gmra.mxu0 %v2452_v7  ;;  %7517 = vmatprep.subr.mxu1 %v2389_v41  ;;  %v2454_v50 = vsel %vm269_vm0, %v2451_v47, %v2453_v34  ;;  %v2456_v27 = vsel %vm269_vm0, %v2453_v34, %v2455_v16  ;;  %v2498_v1 = vsel %vm324_vm2, %v2495_v49, %v2497_v5  ;;  %v2509_v29 = vrot.slane %v9111_v57, 1  ;;  %v3083_v57 = vld [vmem:[#allocation2 + $0x650] sm:$0xff]  ;;  %v3082_v31 = vld [vmem:[#allocation2 + $0x648] sm:$0xff]  ;;  %v3080_v34 = vld [vmem:[#allocation2 + $0x638] sm:$0xff] }
 0x32d   :  { %7428 = vmatmul.mubr.msk.f32.gmra.mxu1 %vm166_vm6, %v2336_v36  ;;  %7486 = vmatprep.mubr.f32.mxu0 %v2454_v50  ;;  %v2500_v42 = vsel %vm324_vm2, %v2497_v5, %v2499_v9  ;;  %v2502_v0 = vsel %vm324_vm2, %v2499_v9, %v2501_v18  ;;  %v2504_v8 = vsel %vm324_vm2, %v2501_v18, %v2503_v13  ;;  %v3099_v36 = vld [vmem:[#allocation2 + $0x6d0] sm:$0xff]  ;;  %v3093_v16 = vld [vmem:[#allocation2 + $0x6a0] sm:$0xff] }
 0x32e   :  { %7518 = vmatpush3.msra.mxu1 %v2389_v41  ;;  %7521 = vmatprep.mubr.f32.mxu1 %v2478_v45  ;;  %v2506_v17 = vsel %vm324_vm2, %v2503_v13, %v2505_v37  ;;  %v2508_v43 = vsel %vm324_vm2, %v2505_v37, %v2507_v24  ;;  %v2510_v20 = vsel %vm324_vm2, %v2507_v24, %v2509_v29  ;;  %v3095_v47 = vld [vmem:[#allocation2 + $0x6b0] sm:$0xff]  ;;  %v3081_v41 = vld [vmem:[#allocation2 + $0x640] sm:$0xff]  ;;  %v3076_v45 = vld [vmem:[#allocation2 + $0x618] sm:$0xff] }
 0x32f   :  { %7519 = vmatprep.subr.mxu1 %v2388_v26  ;;  %7549 = vmatpush3.msra.mxu0 %v3104_v51  ;;  %v3079_v7 = vld [vmem:[#allocation2 + $0x630] sm:$0xff]  ;;  %v3077_v50 = vld [vmem:[#allocation2 + $0x620] sm:$0xff] }
 0x330   :  { %7520 = vmatpush3.msra.mxu1 %v2388_v26  ;;  %7487 = vmatmul.mubr.f32.gmra.mxu0 %v2456_v27  ;;  %v3091_v26 = vld [vmem:[#allocation2 + $0x690] sm:$0xff]  ;;  %v3090_v27 = vld [vmem:[#allocation2 + $0x688] sm:$0xff] }
 0x331   :  { %7522 = vmatmul.mubr.f32.vlgmr.msra.gmra.mxu1 %v2480_v54  ;;  %7550 = vmatprep.subr.mxu0 %v3103_v6  ;;  %v3089_v54 = vld [vmem:[#allocation2 + $0x680] sm:$0xff] }
 0x332   :  { %7524 = vmatprep.mubr.f32.mxu1 %v2482_v55  ;;  %7551 = vmatpush3.msra.mxu0 %v3103_v6  ;;  %v3073_v55 = vld [vmem:[#allocation2 + $0x600] sm:$0xff] }
 0x333   :  { %7552 = vmatprep.subr.mxu0 %v3102_v33  ;;  %7607 = vmatprep.subr.mxu1 %v3088_v61 }
 0x334   :  { %7553 = vmatpush3.msra.mxu0 %v3102_v33  ;;  %7608 = vmatpush3.msra.mxu1 %v3088_v61  ;;  %v9187_v61 = vld [vmem:[#allocation4 + $0x3] ss:$0 sm:$0xff] }
 0x335   :  { %7525 = vmatmul.mubr.f32.gmra.mxu1 %v2484_v30  ;;  %7554 = vmatprep.subr.mxu0 %v3101_v28 }
 0x336   :  { %7527 = vmatprep.mubr.f32.mxu1 %v2486_v53  ;;  %7555 = vmatpush3.msra.mxu0 %v3101_v28 }
 0x337   :  { %7556 = vmatprep.subr.mxu0 %v3100_v40  ;;  %7609 = vmatprep.subr.mxu1 %v3087_v59 }
 0x338   :  { %7557 = vmatpush3.msra.mxu0 %v3100_v40  ;;  %7610 = vmatpush3.msra.mxu1 %v3087_v59 }
 0x339   :  { %7528 = vmatmul.mubr.f32.gmra.mxu1 %v2488_v62  ;;  %7611 = vmatprep.subr.mxu1 %v3086_v19 }
 0x33a   :  { %7530 = vmatprep.mubr.f32.mxu1 %v2490_v3  ;;  %7558 = vmatprep.subr.mxu0 %v3099_v36 }
 0x33b   :  { %7612 = vmatpush3.msra.mxu1 %v3086_v19  ;;  %7559 = vmatpush3.msra.mxu0 %v3099_v36 }
 0x33c   :  { %7613 = vmatprep.subr.mxu1 %v3085_v58  ;;  %7560 = vmatprep.subr.mxu0 %v3098_v46 }
 0x33d   :  { %7531 = vmatmul.mubr.f32.gmra.mxu1 %v2492_v38  ;;  %7561 = vmatpush3.msra.mxu0 %v3098_v46 }
 0x33e   :  { %7533 = vmatprep.mubr.f32.mxu1 %v2494_v2  ;;  %7614 = vmatpush3.msra.mxu1 %v3085_v58 }
 0x33f   :  { %7615 = vmatprep.subr.mxu1 %v3084_v4  ;;  %7562 = vmatprep.subr.mxu0 %v3097_v32 }
 0x340   :  { %7616 = vmatpush3.msra.mxu1 %v3084_v4  ;;  %7563 = vmatpush3.msra.mxu0 %v3097_v32 }
 0x341   :  { %7534 = vmatmul.mubr.f32.gmra.mxu1 %v2496_v60  ;;  %7617 = vmatprep.subr.mxu1 %v3083_v57 }
 0x342   :  { %7536 = vmatprep.mubr.f32.mxu1 %v2498_v1  ;;  %7564 = vmatprep.subr.mxu0 %v3096_v21 }
 0x343   :  { %7618 = vmatpush3.msra.mxu1 %v3083_v57  ;;  %7565 = vmatpush3.msra.mxu0 %v3096_v21 }
 0x344   :  { %7619 = vmatprep.subr.mxu1 %v3082_v31  ;;  %7566 = vmatprep.subr.mxu0 %v3095_v47 }
 0x345   :  { %7537 = vmatmul.mubr.f32.gmra.mxu1 %v2500_v42  ;;  %7567 = vmatpush3.msra.mxu0 %v3095_v47 }
 0x346   :  { %7539 = vmatprep.mubr.f32.mxu1 %v2502_v0  ;;  %7620 = vmatpush3.msra.mxu1 %v3082_v31 }
 0x347   :  { %7621 = vmatprep.subr.mxu1 %v3081_v41  ;;  %7568 = vmatprep.subr.mxu0 %v3094_v25 }
 0x348   :  { %7622 = vmatpush3.msra.mxu1 %v3081_v41  ;;  %7569 = vmatpush3.msra.mxu0 %v3094_v25 }
 0x349   :  { %7540 = vmatmul.mubr.f32.gmra.mxu1 %v2504_v8  ;;  %7623 = vmatprep.subr.mxu1 %v3080_v34 }
 0x34a   :  { %7542 = vmatprep.mubr.f32.mxu1 %v2506_v17  ;;  %7624 = vmatpush3.msra.mxu1 %v3080_v34 }
 0x34b   :  { %7570 = vmatprep.subr.mxu0 %v3093_v16  ;;  %7625 = vmatprep.subr.mxu1 %v3079_v7 }
 0x34c   :  { %7571 = vmatpush3.msra.mxu0 %v3093_v16  ;;  %7626 = vmatpush3.msra.mxu1 %v3079_v7 }
 0x34d   :  { %7543 = vmatmul.mubr.f32.gmra.mxu1 %v2508_v43  ;;  %7627 = vmatprep.subr.mxu1 %v3078_v22 }
 0x34e   :  { %7545 = vmatprep.mubr.f32.mxu1 %v2510_v20  ;;  %7572 = vmatprep.subr.mxu0 %v3092_v44 }
 0x34f   :  { %7628 = vmatpush3.msra.mxu1 %v3078_v22  ;;  %7573 = vmatpush3.msra.mxu0 %v3092_v44 }
 0x350   :  { %7629 = vmatprep.subr.mxu1 %v3077_v50  ;;  %7574 = vmatprep.subr.mxu0 %v3091_v26 }
 0x351   :  { %7546 = vmatmul.mubr.msk.f32.gmra.mxu1 %vm324_vm2, %v2509_v29  ;;  %7575 = vmatpush3.msra.mxu0 %v3091_v26 }
 0x352   :  { %7630 = vmatpush3.msra.mxu1 %v3077_v50  ;;  %7576 = vmatprep.subr.mxu0 %v3090_v27 }
 0x353   :  { %7631 = vmatprep.subr.mxu1 %v3076_v45  ;;  %7577 = vmatpush3.msra.mxu0 %v3090_v27 }
 0x354   :  { %7632 = vmatpush3.msra.mxu1 %v3076_v45  ;;  %7578 = vmatprep.subr.mxu0 %v3089_v54 }
 0x355   :  { %7633 = vmatprep.subr.mxu1 %v3075_v56  ;;  %7579 = vmatpush3.msra.mxu0 %v3089_v54 }
 0x356   :  { %7634 = vmatpush3.msra.mxu1 %v3075_v56  ;;  %7666 = vmatprep.subr.mxu0 %v9162_v63  ;;  %v3119_v56 = vld [vmem:[#allocation2 + $0x770] sm:$0xff] }
 0x357   :  { %7635 = vmatprep.subr.mxu1 %v3074_v52 }
 0x358   :  { %7636 = vmatpush3.msra.mxu1 %v3074_v52 }
 0x359   :  { %7637 = vmatprep.subr.mxu1 %v3073_v55 }
 0x35a   :  { %7638 = vmatpush3.msra.mxu1 %v3073_v55 }
 0x3cb   :  { %v7405_v30 = vpop.f32.mrf.mxu1 }
 0x3cd   :  { %v2596_v11 = vpop.f32.mrf.mxu1 }
 0x3ce   :  { %v7464_v53 = vpop.f32.mrf.mxu0 }
 0x3cf   :  { %v7408_v48 = vpop.f32.mrf.mxu1  ;;  %v2757_v33 = vadd.f32 %v7464_v53, %v7405_v30 }
 0x3d0   :  { %v2751_v62 = vpop.f32.mrf.mxu0 }
 0x3d1   :  { %v2606_v14 = vpop.f32.mrf.mxu1  ;;  %v2752_v40 = vadd.f32 %v2751_v62, %v2596_v11 }
 0x3d3   :  { %v7467_v3 = vpop.f32.mrf.mxu0 }
 0x3d4   :  { %v7411_v12 = vpop.f32.mrf.mxu1  ;;  %v2767_v58 = vadd.f32 %v7467_v3, %v7408_v48 }
 0x3d5   :  { %v2761_v49 = vpop.f32.mrf.mxu0 }
 0x3d6   :  { %v2616_v38 = vpop.f32.mrf.mxu1  ;;  %v2762_v57 = vadd.f32 %v2761_v49, %v2606_v14 }
 0x3d7   :  { %v7470_v60 = vpop.f32.mrf.mxu0 }
 0x3d8   :  { %v7414_v2 = vpop.f32.mrf.mxu1  ;;  %v2777_v34 = vadd.f32 %v7470_v60, %v7411_v12 }
 0x3d9   :  { %v2771_v1 = vpop.f32.mrf.mxu0 }
 0x3da   :  { %v2626_v5 = vpop.f32.mrf.mxu1  ;;  %v2772_v50 = vadd.f32 %v2771_v1, %v2616_v38 }
 0x3db   :  { %v7473_v13 = vpop.f32.mrf.mxu0 }
 0x3dc   :  { %v2787_v53 = vadd.f32 %v7473_v13, %v7414_v2  ;;  %v3118_v2 = vld [vmem:[#allocation2 + $0x768] sm:$0xff] }
 0x3dd   :  { %v9165_v9 = vpop.f32.mrf.mxu1  ;;  %v2781_v8 = vpop.f32.mrf.mxu0 }
 0x3de   :  { %v2782_v38 = vadd.f32 %v2781_v8, %v2626_v5 }
 0x3df   :  { %v9167_v18 = vpop.f32.mrf.mxu1 }
 0x3e0   :  { %v7476_v17 = vpop.f32.mrf.mxu0 }
 0x3e1   :  { %v9169_v42 = vpop.f32.mrf.mxu1  ;;  %v2797_v5 = vadd.f32 %v7476_v17, %v9165_v9 }
 0x3e2   :  { %v9183_v51 = vpop.f32.mrf.mxu0 }
 0x3e3   :  { %v9171_v0 = vpop.f32.mrf.mxu1 }
 0x3e4   :  { %v9189_v19 = vpop.f32.mrf.mxu0 }
 0x3e5   :  { %v9173_v37 = vpop.f32.mrf.mxu1  ;;  %v2807_v17 = vadd.f32 %v9189_v19, %v9169_v42 }
 0x3e6   :  { %v9193_v47 = vpop.f32.mrf.mxu0 }
 0x3e7   :  { %v9175_v24 = vpop.f32.mrf.mxu1 }
 0x3e8   :  { %v9205_v54 = vpop.f32.mrf.mxu0 }
 0x3e9   :  { %v9177_v29 = vpop.f32.mrf.mxu1 }
 0x3ea   :  { %v9221_v1 = vpop.f32.mrf.mxu0 }
 0x3eb   :  { %v9179_v43 = vpop.f32.mrf.mxu1 }
 0x3ed   :  { %v9181_v20 = vpop.f32.mrf.mxu1 }
 0x3ef   :  { %v9185_v6 = vpop.f32.mrf.mxu1 }
 0x3f1   :  { %v7523_v28 = vpop.f32.mrf.mxu1 }
 0x3f2   :  { %v2996_v59 = vadd.f32 %v7523_v28, %v2757_v33 }
 0x3f3   :  { %v2906_v36 = vpop.f32.mrf.mxu1 }
 0x3f4   :  { %v3019_v46 = vadd.f32 %v9187_v61, %v2996_v59  ;;  %v2995_v4 = vadd.f32 %v2906_v36, %v2752_v40 }
 0x3f5   :  { %v7526_v32 = vpop.f32.mrf.mxu1 }
 0x3f6   :  { %v3018_v21 = vadd.f32 %v9187_v61, %v2995_v4  ;;  %v2998_v31 = vadd.f32 %v7526_v32, %v2767_v58  ;;  %v9195_v41 = vmax.f32 %v3019_v46, 0.0  ;;  %v3117_v4 = vld [vmem:[#allocation2 + $0x760] sm:$0xff]  ;;  %v2792_v32 = vadd.f32 %v9183_v51, %v9167_v18  ;;  %v3116_v18 = vld [vmem:[#allocation2 + $0x758] sm:$0xff] }
 0x3f7   :  { %v2916_v25 = vpop.f32.mrf.mxu1 }
 0x3f8   :  { %v3036_v16 = vmax.f32 %v3018_v21, 0.0  ;;  %v3021_v7 = vadd.f32 %v9187_v61, %v2998_v31  ;;  %v2997_v22 = vadd.f32 %v2916_v25, %v2762_v57  ;;  %v3140_v52 = vrot.slane %v9195_v41, 7  ;;  %v7485_v31 = vpop.f32.mrf.mxu0 }
 0x3f9   :  { %v7529_v44 = vpop.f32.mrf.mxu1 }
 0x3fa   :  { %v9200_v26 = vsel %vm77_vm3, %v3036_v16, 0.0  ;;  %v3020_v45 = vadd.f32 %v9187_v61, %v2997_v22  ;;  %v3000_v27 = vadd.f32 %v7529_v44, %v2777_v34  ;;  %7580 = vmatprep.mubr.msk.f32.mxu0 %vm77_vm3, %v3036_v16  ;;  %v9209_v30 = vmax.f32 %v3021_v7, 0.0 }
 0x3fb   :  { %v3139_v55 = vrot.slane %v9200_v26, 7  ;;  %v2926_v11 = vpop.f32.mrf.mxu1  ;;  %7581 = vmatmul.mubr.f32.vlgmr.msra.gmra.mxu0 %v9195_v41 }
 0x3fc   :  { %v3023_v48 = vadd.f32 %v9187_v61, %v3000_v27  ;;  %v2999_v62 = vadd.f32 %v2926_v11, %v2772_v50  ;;  %7667 = vmatpush3.msra.mxu0 %v9162_v63  ;;  %v9214_v14 = vmax.f32 %v3020_v45, 0.0  ;;  %v3144_v28 = vrot.slane %v9209_v30, 7 }
 0x3fd   :  { %v7532_v3 = vpop.f32.mrf.mxu1  ;;  %7639 = vmatprep.mubr.msk.f32.mxu1 %vm8358_vm1, %v3139_v55  ;;  %v3141_v12 = vsel %vm269_vm0, %v3139_v55, %v3140_v52  ;;  %7668 = vmatprep.subr.mxu0 %v3119_v56  ;;  %v2802_v50 = vadd.f32 %v9193_v47, %v9171_v0  ;;  %v2821_v55 = vpop.f32.mrf.mxu0 }
 0x3fe   :  { %v3022_v49 = vadd.f32 %v9187_v61, %v2999_v62  ;;  %v3002_v60 = vadd.f32 %v7532_v3, %v2787_v53  ;;  %7583 = vmatprep.mubr.f32.mxu0 %v9214_v14  ;;  %7640 = vmatmul.mubr.f32.vlgmr.msra.gmra.mxu1 %v3141_v12  ;;  %v9223_v63 = vmax.f32 %v3023_v48, 0.0  ;;  %v3142_v33 = vrot.slane %v9214_v14, 7  ;;  %v3114_v12 = vld [vmem:[#allocation2 + $0x748] sm:$0xff] }
 0x3ff   :  { %v2936_v13 = vpop.f32.mrf.mxu1  ;;  %7584 = vmatmul.mubr.f32.gmra.mxu0 %v9209_v30  ;;  %v2817_v62 = vadd.f32 %v9205_v54, %v9173_v37  ;;  %v2812_v37 = vadd.f32 %v9221_v1, %v9175_v24  ;;  %v2827_v1 = vadd.f32 %v7485_v31, %v9177_v29  ;;  %v2822_v29 = vadd.f32 %v2821_v55, %v9179_v43 }
 0x400   :  { %v3025_v8 = vadd.f32 %v9187_v61, %v3002_v60  ;;  %v3001_v40 = vadd.f32 %v2936_v13, %v2782_v38  ;;  %7669 = vmatpush3.msra.mxu0 %v3119_v56  ;;  %v9230_v59 = vmax.f32 %v3022_v49, 0.0  ;;  %v3143_v58 = vsel %vm269_vm0, %v3140_v52, %v3142_v33  ;;  %v3115_v52 = vld [vmem:[#allocation2 + $0x750] sm:$0xff] }
 0x401   :  { %7670 = vmatprep.subr.mxu0 %v3118_v2  ;;  %v7535_v36 = vpop.f32.mrf.mxu1  ;;  %v3145_v46 = vsel %vm269_vm0, %v3142_v33, %v3144_v28  ;;  %7642 = vmatprep.mubr.f32.mxu1 %v3143_v58  ;;  %v3148_v25 = vrot.slane %v9223_v63, 7  ;;  %v3112_v58 = vld [vmem:[#allocation2 + $0x738] sm:$0xff] }
 0x402   :  { %v3024_v57 = vadd.f32 %v9187_v61, %v3001_v40  ;;  %v3004_v21 = vadd.f32 %v7535_v36, %v2797_v5  ;;  %7671 = vmatpush3.msra.mxu0 %v3118_v2  ;;  %v3146_v9 = vrot.slane %v9230_v59, 7  ;;  %v9241_v34 = vmax.f32 %v3025_v8, 0.0  ;;  %7586 = vmatprep.mubr.f32.mxu0 %v9230_v59  ;;  %v7488_v5 = vpop.f32.mrf.mxu0 }
 0x403   :  { %7643 = vmatmul.mubr.f32.gmra.mxu1 %v3145_v46  ;;  %v2946_v16 = vpop.f32.mrf.mxu1  ;;  %7672 = vmatprep.subr.mxu0 %v3117_v4 }
 0x404   :  { %v3027_v51 = vadd.f32 %v9187_v61, %v3004_v21  ;;  %v3003_v7 = vadd.f32 %v2946_v16, %v2792_v32  ;;  %7587 = vmatmul.mubr.f32.gmra.mxu0 %v9223_v63  ;;  %v3147_v22 = vsel %vm269_vm0, %v3144_v28, %v3146_v9  ;;  %v9247_v19 = vmax.f32 %v3024_v57, 0.0  ;;  %v3113_v28 = vld [vmem:[#allocation2 + $0x740] sm:$0xff] }
 0x405   :  { %7673 = vmatpush3.msra.mxu0 %v3117_v4  ;;  %v7538_v42 = vpop.f32.mrf.mxu1  ;;  %7645 = vmatprep.mubr.f32.mxu1 %v3147_v22  ;;  %v3149_v44 = vsel %vm269_vm0, %v3146_v9, %v3148_v25  ;;  %v3152_v11 = vrot.slane %v9241_v34, 7 }
 0x406   :  { %v3045_v45 = vmax.f32 %v3027_v51, 0.0  ;;  %v3026_v27 = vadd.f32 %v9187_v61, %v3003_v7  ;;  %7674 = vmatprep.subr.mxu0 %v3116_v18  ;;  %v3006_v56 = vadd.f32 %v7538_v42, %v2807_v17  ;;  %7589 = vmatprep.mubr.f32.mxu0 %v9247_v19  ;;  %v3150_v48 = vrot.slane %v9247_v19, 7  ;;  %v3110_v42 = vld [vmem:[#allocation2 + $0x728] sm:$0xff] }
 0x407   :  { %7675 = vmatpush3.msra.mxu0 %v3116_v18  ;;  %v2956_v53 = vpop.f32.mrf.mxu1  ;;  %7646 = vmatmul.mubr.f32.gmra.mxu1 %v3149_v44  ;;  %v2831_v18 = vpop.f32.mrf.mxu0  ;;  %v2837_v7 = vadd.f32 %v7488_v5, %v9181_v20 }
 0x408   :  { %v9260_v0 = vsel %vm140_vm4, %v3045_v45, 0.0  ;;  %v3044_v47 = vmax.f32 %v3026_v27, 0.0  ;;  %v3005_v3 = vadd.f32 %v2956_v53, %v2802_v50  ;;  %7590 = vmatmul.mubr.f32.gmra.mxu0 %v9241_v34  ;;  %v3029_v38 = vadd.f32 %v9187_v61, %v3006_v56  ;;  %7676 = vmatprep.subr.mxu0 %v3115_v52 }
 0x409   :  { %v7541_v49 = vpop.f32.mrf.mxu1  ;;  %v3151_v60 = vsel %vm269_vm0, %v3148_v25, %v3150_v48  ;;  %v3153_v2 = vsel %vm269_vm0, %v3150_v48, %v3152_v11  ;;  %7677 = vmatpush3.msra.mxu0 %v3115_v52  ;;  %v3156_v8 = vrot.slane %v9260_v0, 7  ;;  %v3111_v25 = vld [vmem:[#allocation2 + $0x730] sm:$0xff]  ;;  %v2832_v20 = vadd.f32 %v2831_v18, %v9185_v6  ;;  %v3108_v6 = vld [vmem:[#allocation2 + $0x718] sm:$0xff] }
 0x40a   :  { %v9270_v54 = vsel %vm103_vm5, %v3044_v47, 0.0  ;;  %v3028_v13 = vadd.f32 %v9187_v61, %v3005_v3  ;;  %v3008_v33 = vadd.f32 %v7541_v49, %v2817_v62  ;;  %7648 = vmatprep.mubr.f32.mxu1 %v3151_v60  ;;  %7678 = vmatprep.subr.mxu0 %v3114_v12  ;;  %v9280_v4 = vmax.f32 %v3029_v38, 0.0 }
 0x40b   :  { %7592 = vmatprep.mubr.msk.f32.mxu0 %vm103_vm5, %v3044_v47  ;;  %v2966_v40 = vpop.f32.mrf.mxu1  ;;  %v3154_v24 = vrot.slane %v9270_v54, 7  ;;  %7649 = vmatmul.mubr.f32.gmra.mxu1 %v3153_v2 }
 0x40c   :  { %7679 = vmatpush3.msra.mxu0 %v3114_v12  ;;  %v3007_v36 = vadd.f32 %v2966_v40, %v2812_v37  ;;  %v9278_v46 = vmax.f32 %v3028_v13, 0.0  ;;  %v3031_v32 = vadd.f32 %v9187_v61, %v3008_v33  ;;  %v3160_v44 = vrot.slane %v9280_v4, 7 }
 0x40d   :  { %7593 = vmatmul.mubr.msk.f32.gmra.mxu0 %vm140_vm4, %v3045_v45  ;;  %7680 = vmatprep.subr.mxu0 %v3113_v28  ;;  %v7544_v57 = vpop.f32.mrf.mxu1  ;;  %v3155_v21 = vsel %vm269_vm0, %v3152_v11, %v3154_v24  ;;  %v3157_v9 = vsel %vm269_vm0, %v3154_v24, %v3156_v8  ;;  %v3109_v11 = vld [vmem:[#allocation2 + $0x720] sm:$0xff]  ;;  %v3106_v24 = vld [vmem:[#allocation2 + $0x708] sm:$0xff] }
 0x40e   :  { %v3030_v17 = vadd.f32 %v9187_v61, %v3007_v36  ;;  %7681 = vmatpush3.msra.mxu0 %v3113_v28  ;;  %v3010_v31 = vadd.f32 %v7544_v57, %v2827_v1  ;;  %7595 = vmatprep.mubr.f32.mxu0 %v9278_v46  ;;  %v3158_v16 = vrot.slane %v9278_v46, 7  ;;  %v9294_v50 = vmax.f32 %v3031_v32, 0.0  ;;  %v3107_v28 = vld [vmem:[#allocation2 + $0x710] sm:$0xff] }
 0x40f   :  { %7682 = vmatprep.subr.mxu0 %v3112_v58  ;;  %7651 = vmatprep.mubr.f32.mxu1 %v3155_v21  ;;  %v2976_v51 = vpop.f32.mrf.mxu1  ;;  %v3193_v1 = vrot.slane %v9200_v26, 1  ;;  %v3194_v57 = vrot.slane %v9195_v41, 1  ;;  %v3196_v21 = vrot.slane %v9214_v14, 1  ;;  %v3198_v41 = vrot.slane %v9209_v30, 1 }
 0x410   :  { %7683 = vmatpush3.msra.mxu0 %v3112_v58  ;;  %v3009_v22 = vadd.f32 %v2976_v51, %v2822_v29  ;;  %7652 = vmatmul.mubr.f32.gmra.mxu1 %v3157_v9  ;;  %v3159_v43 = vsel %vm269_vm0, %v3156_v8, %v3158_v16  ;;  %v3033_v45 = vadd.f32 %v9187_v61, %v3010_v31  ;;  %v9298_v56 = vmax.f32 %v3030_v17, 0.0  ;;  %v3105_v29 = vld [vmem:[#allocation2 + $0x700] sm:$0xff] }
 0x411   :  { %7596 = vmatmul.mubr.f32.gmra.mxu0 %v9280_v4  ;;  %7684 = vmatprep.subr.mxu0 %v3111_v25  ;;  %v7547_v27 = vpop.f32.mrf.mxu1  ;;  %v3161_v48 = vsel %vm269_vm0, %v3158_v16, %v3160_v44  ;;  %v3164_v38 = vrot.slane %v9294_v50, 7  ;;  %v3195_v26 = vsel %vm324_vm2, %v3193_v1, %v3194_v57  ;;  %v3197_v14 = vsel %vm324_vm2, %v3194_v57, %v3196_v21  ;;  %v3811_v1 = vld [vmem:[#allocation2 + $0x828] sm:$0xff] }
 0x412   :  { %v3032_v52 = vadd.f32 %v9187_v61, %v3009_v22  ;;  %v3012_v55 = vadd.f32 %v7547_v27, %v2837_v7  ;;  %7654 = vmatprep.mubr.f32.mxu1 %v3159_v43  ;;  %7685 = vmatpush3.msra.mxu0 %v3111_v25  ;;  %v3162_v62 = vrot.slane %v9298_v56, 7  ;;  %v9309_v49 = vmax.f32 %v3033_v45, 0.0  ;;  %v3795_v57 = vld [vmem:[#allocation2 + $0x7a8] sm:$0xff] }
 0x413   :  { %7598 = vmatprep.mubr.f32.mxu0 %v9298_v56  ;;  %7686 = vmatprep.subr.mxu0 %v3110_v42  ;;  %v2986_v53 = vpop.f32.mrf.mxu1  ;;  %v3200_v31 = vrot.slane %v9230_v59, 1  ;;  %v3199_v25 = vsel %vm324_vm2, %v3196_v21, %v3198_v41  ;;  %v3202_v16 = vrot.slane %v9223_v63, 1  ;;  %v3204_v51 = vrot.slane %v9247_v19, 1  ;;  %v3809_v21 = vld [vmem:[#allocation2 + $0x818] sm:$0xff] }
 0x414   :  { %v9305_v47 = vmax.f32 %v3032_v52, 0.0  ;;  %v3035_v3 = vadd.f32 %v9187_v61, %v3012_v55  ;;  %v3011_v12 = vadd.f32 %v2986_v53, %v2832_v20  ;;  %7655 = vmatmul.mubr.f32.gmra.mxu1 %v3161_v48  ;;  %7687 = vmatpush3.msra.mxu0 %v3110_v42  ;;  %v3163_v60 = vsel %vm269_vm0, %v3160_v44, %v3162_v62 }
 0x415   :  { %7599 = vmatmul.mubr.f32.gmra.mxu0 %v9294_v50  ;;  %7688 = vmatprep.subr.mxu0 %v3109_v11  ;;  %v3165_v33 = vsel %vm269_vm0, %v3162_v62, %v3164_v38  ;;  %v3168_v40 = vrot.slane %v9309_v49, 7  ;;  %v3201_v18 = vsel %vm324_vm2, %v3198_v41, %v3200_v31  ;;  %v3203_v7 = vsel %vm324_vm2, %v3200_v31, %v3202_v16  ;;  %v3821_v62 = vld [vmem:[#allocation2 + $0x878] sm:$0xff]  ;;  %v3792_v41 = vld [vmem:[#allocation2 + $0x790] sm:$0xff]  ;;  %v3791_v31 = vld [vmem:[#allocation2 + $0x788] sm:$0xff] }
 0x416   :  { %v3053_v2 = vmax.f32 %v3035_v3, 0.0  ;;  %v3034_v37 = vadd.f32 %v9187_v61, %v3011_v12  ;;  %7657 = vmatprep.mubr.f32.mxu1 %v3163_v60  ;;  %7689 = vmatpush3.msra.mxu0 %v3109_v11  ;;  %v3166_v13 = vrot.slane %v9305_v47, 7  ;;  %v3206_v30 = vrot.slane %v9241_v34, 1  ;;  %v3819_v3 = vld [vmem:[#allocation2 + $0x868] sm:$0xff]  ;;  %v3805_v12 = vld [vmem:[#allocation2 + $0x7f8] sm:$0xff] }
 0x417   :  { %7601 = vmatprep.mubr.f32.mxu0 %v9305_v47  ;;  %7690 = vmatprep.subr.mxu0 %v3108_v6  ;;  %v3208_v22 = vrot.slane %v9270_v54, 1  ;;  %v3205_v59 = vsel %vm324_vm2, %v3202_v16, %v3204_v51  ;;  %v3210_v63 = vrot.slane %v9260_v0, 1  ;;  %v3212_v19 = vrot.slane %v9278_v46, 1  ;;  %v3803_v60 = vld [vmem:[#allocation2 + $0x7e8] sm:$0xff]  ;;  %v9370_v16 = vld [vmem:[#allocation2 + $0x8f8] sm:$0xff] }
 0x418   :  { %v9319_v5 = vsel %vm166_vm6, %v3053_v2, 0.0  ;;  %v9321_v8 = vmax.f32 %v3034_v37, 0.0  ;;  %7658 = vmatmul.mubr.f32.gmra.mxu1 %v3165_v33  ;;  %7691 = vmatpush3.msra.mxu0 %v3108_v6  ;;  %v3167_v61 = vsel %vm269_vm0, %v3164_v38, %v3166_v13  ;;  %v3169_v32 = vsel %vm269_vm0, %v3166_v13, %v3168_v40  ;;  %v3818_v6 = vld [vmem:[#allocation2 + $0x860] sm:$0xff]  ;;  %v3817_v38 = vld [vmem:[#allocation2 + $0x858] sm:$0xff]  ;;  %v3815_v13 = vld [vmem:[#allocation2 + $0x848] sm:$0xff] }
 0x419   :  { %7602 = vmatmul.mubr.f32.gmra.mxu0 %v9309_v49  ;;  %7660 = vmatprep.mubr.f32.mxu1 %v3167_v61  ;;  %v3172_v58 = vrot.slane %v9319_v5, 7  ;;  %v3207_v43 = vsel %vm324_vm2, %v3204_v51, %v3206_v30  ;;  %v3209_v42 = vsel %vm324_vm2, %v3206_v30, %v3208_v22  ;;  %v3211_v44 = vsel %vm324_vm2, %v3208_v22, %v3210_v63  ;;  %v3802_v37 = vld [vmem:[#allocation2 + $0x7e0] sm:$0xff]  ;;  %v3801_v33 = vld [vmem:[#allocation2 + $0x7d8] sm:$0xff]  ;;  %v3799_v61 = vld [vmem:[#allocation2 + $0x7c8] sm:$0xff] }
 0x41a   :  { %7692 = vmatprep.subr.mxu0 %v3107_v28  ;;  %7604 = vmatprep.mubr.f32.mxu0 %v9321_v8  ;;  %v3170_v36 = vrot.slane %v9321_v8, 7  ;;  %v3214_v34 = vrot.slane %v9280_v4, 1  ;;  %v3213_v54 = vsel %vm324_vm2, %v3210_v63, %v3212_v19  ;;  %v3216_v45 = vrot.slane %v9298_v56, 1 }
 0x41b   :  { %7693 = vmatpush3.msra.mxu0 %v3107_v28  ;;  %v3218_v0 = vrot.slane %v9294_v50, 1  ;;  %v3220_v20 = vrot.slane %v9305_v47, 1  ;;  %v3222_v4 = vrot.slane %v9309_v49, 1  ;;  %v3224_v55 = vrot.slane %v9321_v8, 1  ;;  %7725 = vmatprep.subr.mxu1 %v3821_v62  ;;  %v3820_v47 = vld [vmem:[#allocation2 + $0x870] sm:$0xff]  ;;  %v3814_v28 = vld [vmem:[#allocation2 + $0x840] sm:$0xff] }
 0x41c   :  { %7661 = vmatmul.mubr.f32.gmra.mxu1 %v3169_v32  ;;  %7694 = vmatprep.subr.mxu0 %v3106_v24  ;;  %v3171_v9 = vsel %vm269_vm0, %v3168_v40, %v3170_v36  ;;  %v3173_v17 = vsel %vm269_vm0, %v3170_v36, %v3172_v58  ;;  %v3215_v27 = vsel %vm324_vm2, %v3212_v19, %v3214_v34  ;;  %v3226_v11 = vrot.slane %v9319_v5, 1  ;;  %v3804_v49 = vld [vmem:[#allocation2 + $0x7f0] sm:$0xff]  ;;  %v3813_v8 = vld [vmem:[#allocation2 + $0x838] sm:$0xff]  ;;  %v3810_v58 = vld [vmem:[#allocation2 + $0x820] sm:$0xff] }
 0x41d   :  { %7605 = vmatmul.mubr.msk.f32.gmra.mxu0 %vm166_vm6, %v3053_v2  ;;  %7663 = vmatprep.mubr.f32.mxu1 %v3171_v9  ;;  %v3217_v46 = vsel %vm324_vm2, %v3214_v34, %v3216_v45  ;;  %v3219_v52 = vsel %vm324_vm2, %v3216_v45, %v3218_v0  ;;  %v3221_v56 = vsel %vm324_vm2, %v3218_v0, %v3220_v20  ;;  %v3816_v2 = vld [vmem:[#allocation2 + $0x850] sm:$0xff]  ;;  %v3797_v36 = vld [vmem:[#allocation2 + $0x7b8] sm:$0xff]  ;;  %v3794_v9 = vld [vmem:[#allocation2 + $0x7a0] sm:$0xff] }
 0x41e   :  { %7695 = vmatpush3.msra.mxu0 %v3106_v24  ;;  %7698 = vmatprep.mubr.f32.mxu0 %v3195_v26  ;;  %v3223_v53 = vsel %vm324_vm2, %v3220_v20, %v3222_v4  ;;  %v3225_v50 = vsel %vm324_vm2, %v3222_v4, %v3224_v55  ;;  %v3227_v48 = vsel %vm324_vm2, %v3224_v55, %v3226_v11  ;;  %v3800_v5 = vld [vmem:[#allocation2 + $0x7d0] sm:$0xff]  ;;  %v3798_v24 = vld [vmem:[#allocation2 + $0x7c0] sm:$0xff]  ;;  %v3793_v26 = vld [vmem:[#allocation2 + $0x798] sm:$0xff] }
 0x41f   :  { %7696 = vmatprep.subr.mxu0 %v3105_v29  ;;  %7726 = vmatpush3.msra.mxu1 %v3821_v62  ;;  %v3812_v40 = vld [vmem:[#allocation2 + $0x830] sm:$0xff] }
 0x420   :  { %7697 = vmatpush3.msra.mxu0 %v3105_v29  ;;  %7664 = vmatmul.mubr.f32.gmra.mxu1 %v3173_v17  ;;  %v3796_v32 = vld [vmem:[#allocation2 + $0x7b0] sm:$0xff]  ;;  %v3807_v17 = vld [vmem:[#allocation2 + $0x808] sm:$0xff] }
 0x421   :  { %7699 = vmatmul.mubr.f32.vlgmr.msra.gmra.mxu0 %v3197_v14  ;;  %7727 = vmatprep.subr.mxu1 %v3820_v47  ;;  %v3808_v29 = vld [vmem:[#allocation2 + $0x810] sm:$0xff]  ;;  %v3806_v14 = vld [vmem:[#allocation2 + $0x800] sm:$0xff] }
 0x422   :  { %7701 = vmatprep.mubr.f32.mxu0 %v3199_v25  ;;  %7728 = vmatpush3.msra.mxu1 %v3820_v47  ;;  %v3790_v25 = vld [vmem:[#allocation2 + $0x780] sm:$0xff] }
 0x423   :  { %7729 = vmatprep.subr.mxu1 %v3819_v3  ;;  %7784 = vmatprep.subr.mxu0 %v3805_v12 }
 0x424   :  { %7730 = vmatpush3.msra.mxu1 %v3819_v3  ;;  %7785 = vmatpush3.msra.mxu0 %v3805_v12 }
 0x425   :  { %7702 = vmatmul.mubr.f32.gmra.mxu0 %v3201_v18  ;;  %7731 = vmatprep.subr.mxu1 %v3818_v6 }
 0x426   :  { %7704 = vmatprep.mubr.f32.mxu0 %v3203_v7  ;;  %7732 = vmatpush3.msra.mxu1 %v3818_v6  ;;  %v9395_v6 = vld [vmem:[#allocation4 + $0x4] ss:$0 sm:$0xff] }
 0x427   :  { %7786 = vmatprep.subr.mxu0 %v3804_v49  ;;  %7733 = vmatprep.subr.mxu1 %v3817_v38 }
 0x428   :  { %7787 = vmatpush3.msra.mxu0 %v3804_v49  ;;  %7734 = vmatpush3.msra.mxu1 %v3817_v38 }
 0x429   :  { %7705 = vmatmul.mubr.f32.gmra.mxu0 %v3205_v59  ;;  %7788 = vmatprep.subr.mxu0 %v3803_v60 }
 0x42a   :  { %7707 = vmatprep.mubr.f32.mxu0 %v3207_v43  ;;  %7735 = vmatprep.subr.mxu1 %v3816_v2 }
 0x42b   :  { %7789 = vmatpush3.msra.mxu0 %v3803_v60  ;;  %7736 = vmatpush3.msra.mxu1 %v3816_v2 }
 0x42c   :  { %7790 = vmatprep.subr.mxu0 %v3802_v37  ;;  %7737 = vmatprep.subr.mxu1 %v3815_v13 }
 0x42d   :  { %7708 = vmatmul.mubr.f32.gmra.mxu0 %v3209_v42  ;;  %7738 = vmatpush3.msra.mxu1 %v3815_v13 }
 0x42e   :  { %7710 = vmatprep.mubr.f32.mxu0 %v3211_v44  ;;  %7791 = vmatpush3.msra.mxu0 %v3802_v37 }
 0x42f   :  { %7792 = vmatprep.subr.mxu0 %v3801_v33  ;;  %7739 = vmatprep.subr.mxu1 %v3814_v28 }
 0x430   :  { %7793 = vmatpush3.msra.mxu0 %v3801_v33  ;;  %7740 = vmatpush3.msra.mxu1 %v3814_v28 }
 0x431   :  { %7711 = vmatmul.mubr.f32.gmra.mxu0 %v3213_v54  ;;  %7794 = vmatprep.subr.mxu0 %v3800_v5 }
 0x432   :  { %7713 = vmatprep.mubr.f32.mxu0 %v3215_v27  ;;  %7741 = vmatprep.subr.mxu1 %v3813_v8 }
 0x433   :  { %7795 = vmatpush3.msra.mxu0 %v3800_v5  ;;  %7742 = vmatpush3.msra.mxu1 %v3813_v8 }
 0x434   :  { %7796 = vmatprep.subr.mxu0 %v3799_v61  ;;  %7743 = vmatprep.subr.mxu1 %v3812_v40 }
 0x435   :  { %7714 = vmatmul.mubr.f32.gmra.mxu0 %v3217_v46  ;;  %7744 = vmatpush3.msra.mxu1 %v3812_v40 }
 0x436   :  { %7716 = vmatprep.mubr.f32.mxu0 %v3219_v52  ;;  %7797 = vmatpush3.msra.mxu0 %v3799_v61 }
 0x437   :  { %7798 = vmatprep.subr.mxu0 %v3798_v24  ;;  %7745 = vmatprep.subr.mxu1 %v3811_v1 }
 0x438   :  { %7799 = vmatpush3.msra.mxu0 %v3798_v24  ;;  %7746 = vmatpush3.msra.mxu1 %v3811_v1 }
 0x439   :  { %7717 = vmatmul.mubr.f32.gmra.mxu0 %v3221_v56  ;;  %7800 = vmatprep.subr.mxu0 %v3797_v36 }
 0x43a   :  { %7719 = vmatprep.mubr.f32.mxu0 %v3223_v53  ;;  %7801 = vmatpush3.msra.mxu0 %v3797_v36 }
 0x43b   :  { %7747 = vmatprep.subr.mxu1 %v3810_v58  ;;  %7802 = vmatprep.subr.mxu0 %v3796_v32 }
 0x43c   :  { %7748 = vmatpush3.msra.mxu1 %v3810_v58  ;;  %7803 = vmatpush3.msra.mxu0 %v3796_v32 }
 0x43d   :  { %7720 = vmatmul.mubr.f32.gmra.mxu0 %v3225_v50  ;;  %7804 = vmatprep.subr.mxu0 %v3795_v57 }
 0x43e   :  { %7722 = vmatprep.mubr.f32.mxu0 %v3227_v48  ;;  %7749 = vmatprep.subr.mxu1 %v3809_v21 }
 0x43f   :  { %7805 = vmatpush3.msra.mxu0 %v3795_v57  ;;  %7750 = vmatpush3.msra.mxu1 %v3809_v21 }
 0x440   :  { %7806 = vmatprep.subr.mxu0 %v3794_v9  ;;  %7751 = vmatprep.subr.mxu1 %v3808_v29 }
 0x441   :  { %7723 = vmatmul.mubr.msk.f32.gmra.mxu0 %vm324_vm2, %v3226_v11  ;;  %7752 = vmatpush3.msra.mxu1 %v3808_v29 }
 0x442   :  { %7807 = vmatpush3.msra.mxu0 %v3794_v9  ;;  %7753 = vmatprep.subr.mxu1 %v3807_v17 }
 0x443   :  { %7808 = vmatprep.subr.mxu0 %v3793_v26  ;;  %7754 = vmatpush3.msra.mxu1 %v3807_v17 }
 0x444   :  { %7809 = vmatpush3.msra.mxu0 %v3793_v26  ;;  %7755 = vmatprep.subr.mxu1 %v3806_v14 }
 0x445   :  { %7810 = vmatprep.subr.mxu0 %v3792_v41  ;;  %7756 = vmatpush3.msra.mxu1 %v3806_v14 }
 0x446   :  { %7811 = vmatpush3.msra.mxu0 %v3792_v41  ;;  %7843 = vmatprep.subr.mxu1 %v9370_v16  ;;  %v3836_v41 = vld [vmem:[#allocation2 + $0x8f0] sm:$0xff] }
 0x447   :  { %7812 = vmatprep.subr.mxu0 %v3791_v31 }
 0x448   :  { %7813 = vmatpush3.msra.mxu0 %v3791_v31 }
 0x449   :  { %7814 = vmatprep.subr.mxu0 %v3790_v25 }
 0x44a   :  { %7815 = vmatpush3.msra.mxu0 %v3790_v25 }
 0x4bb   :  { %v7582_v18 = vpop.f32.mrf.mxu0 }
 0x4bd   :  { %v3313_v51 = vpop.f32.mrf.mxu0 }
 0x4be   :  { %v7641_v7 = vpop.f32.mrf.mxu1 }
 0x4bf   :  { %v7585_v30 = vpop.f32.mrf.mxu0  ;;  %v3474_v3 = vadd.f32 %v7641_v7, %v7582_v18 }
 0x4c0   :  { %v3468_v22 = vpop.f32.mrf.mxu1 }
 0x4c1   :  { %v3323_v59 = vpop.f32.mrf.mxu0  ;;  %v3469_v38 = vadd.f32 %v3468_v22, %v3313_v51 }
 0x4c3   :  { %v7644_v43 = vpop.f32.mrf.mxu1 }
 0x4c4   :  { %v7588_v63 = vpop.f32.mrf.mxu0  ;;  %v3484_v37 = vadd.f32 %v7644_v43, %v7585_v30 }
 0x4c5   :  { %v3478_v19 = vpop.f32.mrf.mxu1 }
 0x4c6   :  { %v3333_v42 = vpop.f32.mrf.mxu0  ;;  %v3479_v5 = vadd.f32 %v3478_v19, %v3323_v59 }
 0x4c7   :  { %v7647_v54 = vpop.f32.mrf.mxu1 }
 0x4c8   :  { %v7591_v44 = vpop.f32.mrf.mxu0  ;;  %v3494_v36 = vadd.f32 %v7647_v54, %v7588_v63 }
 0x4c9   :  { %v3488_v27 = vpop.f32.mrf.mxu1 }
 0x4ca   :  { %v3343_v34 = vpop.f32.mrf.mxu0  ;;  %v3489_v9 = vadd.f32 %v3488_v27, %v3333_v42 }
 0x4cb   :  { %v7650_v46 = vpop.f32.mrf.mxu1 }
 0x4cc   :  { %v3504_v7 = vadd.f32 %v7650_v46, %v7591_v44  ;;  %v3835_v44 = vld [vmem:[#allocation2 + $0x8e8] sm:$0xff] }
 0x4cd   :  { %v9373_v45 = vpop.f32.mrf.mxu0  ;;  %v3498_v55 = vpop.f32.mrf.mxu1 }
 0x4ce   :  { %v3499_v42 = vadd.f32 %v3498_v55, %v3343_v34 }
 0x4cf   :  { %v9375_v0 = vpop.f32.mrf.mxu0 }
 0x4d0   :  { %v7653_v53 = vpop.f32.mrf.mxu1 }
 0x4d1   :  { %v9377_v20 = vpop.f32.mrf.mxu0  ;;  %v3514_v34 = vadd.f32 %v7653_v53, %v9373_v45 }
 0x4d2   :  { %v9391_v62 = vpop.f32.mrf.mxu1 }
 0x4d3   :  { %v9379_v52 = vpop.f32.mrf.mxu0 }
 0x4d4   :  { %v9397_v60 = vpop.f32.mrf.mxu1 }
 0x4d5   :  { %v9381_v4 = vpop.f32.mrf.mxu0 }
 0x4d6   :  { %v9401_v40 = vpop.f32.mrf.mxu1 }
 0x4d7   :  { %v9383_v56 = vpop.f32.mrf.mxu0 }
 0x4d8   :  { %v9413_v14 = vpop.f32.mrf.mxu1 }
 0x4d9   :  { %v9385_v11 = vpop.f32.mrf.mxu0 }
 0x4da   :  { %v9429_v27 = vpop.f32.mrf.mxu1 }
 0x4db   :  { %v9387_v50 = vpop.f32.mrf.mxu0 }
 0x4dc   :  { %v7662_v45 = vpop.f32.mrf.mxu1 }
 0x4dd   :  { %v9389_v48 = vpop.f32.mrf.mxu0 }
 0x4df   :  { %v9393_v47 = vpop.f32.mrf.mxu0 }
 0x4e1   :  { %v7700_v12 = vpop.f32.mrf.mxu0 }
 0x4e2   :  { %v3713_v49 = vadd.f32 %v7700_v12, %v3474_v3 }
 0x4e3   :  { %v3623_v2 = vpop.f32.mrf.mxu0 }
 0x4e4   :  { %v3736_v13 = vadd.f32 %v9395_v6, %v3713_v49  ;;  %v3712_v33 = vadd.f32 %v3623_v2, %v3469_v38 }
 0x4e5   :  { %v7703_v28 = vpop.f32.mrf.mxu0 }
 0x4e6   :  { %v3735_v8 = vadd.f32 %v9395_v6, %v3712_v33  ;;  %v3715_v61 = vadd.f32 %v7703_v28, %v3484_v37  ;;  %v9403_v24 = vmax.f32 %v3736_v13, 0.0  ;;  %v3834_v33 = vld [vmem:[#allocation2 + $0x8e0] sm:$0xff]  ;;  %v3509_v28 = vadd.f32 %v9391_v62, %v9375_v0 }
 0x4e7   :  { %v3633_v1 = vpop.f32.mrf.mxu0  ;;  %v3524_v0 = vadd.f32 %v9397_v60, %v9377_v20 }
 0x4e8   :  { %v3753_v58 = vmax.f32 %v3735_v8, 0.0  ;;  %v3738_v32 = vadd.f32 %v9395_v6, %v3715_v61  ;;  %v3714_v57 = vadd.f32 %v3633_v1, %v3479_v5  ;;  %v3857_v31 = vrot.slane %v9403_v24, 7 }
 0x4e9   :  { %v7706_v21 = vpop.f32.mrf.mxu0 }
 0x4ea   :  { %v9408_v29 = vsel %vm77_vm3, %v3753_v58, 0.0  ;;  %v3737_v26 = vadd.f32 %v9395_v6, %v3714_v57  ;;  %v3717_v17 = vadd.f32 %v7706_v21, %v3494_v36  ;;  %7757 = vmatprep.mubr.msk.f32.mxu1 %vm77_vm3, %v3753_v58  ;;  %v9417_v18 = vmax.f32 %v3738_v32, 0.0  ;;  %v3833_v36 = vld [vmem:[#allocation2 + $0x8d8] sm:$0xff] }
 0x4eb   :  { %v3856_v25 = vrot.slane %v9408_v29, 7  ;;  %v3643_v51 = vpop.f32.mrf.mxu0  ;;  %7758 = vmatmul.mubr.f32.vlgmr.msra.gmra.mxu1 %v9403_v24 }
 0x4ec   :  { %v9420_v30 = vmax.f32 %v3737_v26, 0.0  ;;  %v3740_v22 = vadd.f32 %v9395_v6, %v3717_v17  ;;  %v3716_v59 = vadd.f32 %v3643_v51, %v3489_v9  ;;  %7844 = vmatpush3.msra.mxu1 %v9370_v16  ;;  %v3861_v46 = vrot.slane %v9417_v18, 7 }
 0x4ed   :  { %v7709_v43 = vpop.f32.mrf.mxu0  ;;  %7816 = vmatprep.mubr.msk.f32.mxu0 %vm8358_vm1, %v3856_v25  ;;  %v3858_v63 = vsel %vm269_vm0, %v3856_v25, %v3857_v31  ;;  %7845 = vmatprep.subr.mxu1 %v3836_v41  ;;  %v3519_v17 = vadd.f32 %v9401_v40, %v9379_v52  ;;  %v3538_v25 = vpop.f32.mrf.mxu1 }
 0x4ee   :  { %v3739_v19 = vadd.f32 %v9395_v6, %v3716_v59  ;;  %v3719_v54 = vadd.f32 %v7709_v43, %v3504_v7  ;;  %7760 = vmatprep.mubr.f32.mxu1 %v9420_v30  ;;  %7817 = vmatmul.mubr.f32.vlgmr.msra.gmra.mxu0 %v3858_v63  ;;  %v9432_v16 = vmax.f32 %v3740_v22, 0.0  ;;  %v3859_v12 = vrot.slane %v9420_v30, 7  ;;  %v3831_v63 = vld [vmem:[#allocation2 + $0x8c8] sm:$0xff] }
 0x4ef   :  { %v3653_v3 = vpop.f32.mrf.mxu0  ;;  %7761 = vmatmul.mubr.f32.gmra.mxu1 %v9417_v18  ;;  %v3534_v59 = vadd.f32 %v9413_v14, %v9381_v4  ;;  %v3529_v4 = vadd.f32 %v9429_v27, %v9383_v56  ;;  %v3544_v27 = vadd.f32 %v7662_v45, %v9385_v11  ;;  %v3539_v11 = vadd.f32 %v3538_v25, %v9387_v50  ;;  %v3827_v50 = vld [vmem:[#allocation2 + $0x8a8] sm:$0xff] }
 0x4f0   :  { %v9437_v55 = vmax.f32 %v3739_v19, 0.0  ;;  %v3742_v38 = vadd.f32 %v9395_v6, %v3719_v54  ;;  %v3718_v49 = vadd.f32 %v3653_v3, %v3499_v42  ;;  %7846 = vmatpush3.msra.mxu1 %v3836_v41  ;;  %v3860_v37 = vsel %vm269_vm0, %v3857_v31, %v3859_v12  ;;  %v3832_v31 = vld [vmem:[#allocation2 + $0x8d0] sm:$0xff] }
 0x4f1   :  { %7847 = vmatprep.subr.mxu1 %v3835_v44  ;;  %v7712_v2 = vpop.f32.mrf.mxu0  ;;  %v3862_v13 = vsel %vm269_vm0, %v3859_v12, %v3861_v46  ;;  %7819 = vmatprep.mubr.f32.mxu0 %v3860_v37  ;;  %v3865_v53 = vrot.slane %v9432_v16, 7  ;;  %v3830_v12 = vld [vmem:[#allocation2 + $0x8c0] sm:$0xff] }
 0x4f2   :  { %v3741_v5 = vadd.f32 %v9395_v6, %v3718_v49  ;;  %v3721_v8 = vadd.f32 %v7712_v2, %v3514_v34  ;;  %7848 = vmatpush3.msra.mxu1 %v3835_v44  ;;  %v9446_v61 = vmax.f32 %v3742_v38, 0.0  ;;  %7763 = vmatprep.mubr.f32.mxu1 %v9437_v55  ;;  %v3863_v58 = vrot.slane %v9437_v55, 7  ;;  %v7665_v34 = vpop.f32.mrf.mxu1 }
 0x4f3   :  { %7820 = vmatmul.mubr.f32.gmra.mxu0 %v3862_v13  ;;  %v3663_v1 = vpop.f32.mrf.mxu0  ;;  %7849 = vmatprep.subr.mxu1 %v3834_v33  ;;  %v3829_v13 = vld [vmem:[#allocation2 + $0x8b8] sm:$0xff] }
 0x4f4   :  { %v9452_v62 = vmax.f32 %v3741_v5, 0.0  ;;  %v3744_v32 = vadd.f32 %v9395_v6, %v3721_v8  ;;  %v3720_v57 = vadd.f32 %v3663_v1, %v3509_v28  ;;  %7764 = vmatmul.mubr.f32.gmra.mxu1 %v9432_v16  ;;  %v3864_v9 = vsel %vm269_vm0, %v3861_v46, %v3863_v58 }
 0x4f5   :  { %7850 = vmatpush3.msra.mxu1 %v3834_v33  ;;  %v7715_v21 = vpop.f32.mrf.mxu0  ;;  %v3866_v26 = vsel %vm269_vm0, %v3863_v58, %v3865_v53  ;;  %7822 = vmatprep.mubr.f32.mxu0 %v3864_v9  ;;  %v3869_v51 = vrot.slane %v9446_v61, 7  ;;  %v3548_v58 = vpop.f32.mrf.mxu1 }
 0x4f6   :  { %v3762_v41 = vmax.f32 %v3744_v32, 0.0  ;;  %v3743_v20 = vadd.f32 %v9395_v6, %v3720_v57  ;;  %7851 = vmatprep.subr.mxu1 %v3833_v36  ;;  %v3723_v60 = vadd.f32 %v7715_v21, %v3524_v0  ;;  %7766 = vmatprep.mubr.f32.mxu1 %v9452_v62  ;;  %v3867_v22 = vrot.slane %v9452_v62, 7 }
 0x4f7   :  { %7852 = vmatpush3.msra.mxu1 %v3833_v36  ;;  %v3673_v7 = vpop.f32.mrf.mxu0  ;;  %7823 = vmatmul.mubr.f32.gmra.mxu0 %v3866_v26  ;;  %v3828_v36 = vld [vmem:[#allocation2 + $0x8b0] sm:$0xff]  ;;  %v3554_v57 = vadd.f32 %v7665_v34, %v9389_v48  ;;  %v3549_v48 = vadd.f32 %v3548_v58, %v9393_v47  ;;  %v3825_v47 = vld [vmem:[#allocation2 + $0x898] sm:$0xff]  ;;  %v3919_v58 = vrot.slane %v9432_v16, 1 }
 0x4f8   :  { %v9468_v52 = vsel %vm140_vm4, %v3762_v41, 0.0  ;;  %v3761_v40 = vmax.f32 %v3743_v20, 0.0  ;;  %v3722_v43 = vadd.f32 %v3673_v7, %v3519_v17  ;;  %7767 = vmatmul.mubr.f32.gmra.mxu1 %v9446_v61  ;;  %v3746_v42 = vadd.f32 %v9395_v6, %v3723_v60  ;;  %7853 = vmatprep.subr.mxu1 %v3832_v31 }
 0x4f9   :  { %v7718_v19 = vpop.f32.mrf.mxu0  ;;  %v3868_v54 = vsel %vm269_vm0, %v3865_v53, %v3867_v22  ;;  %v3870_v44 = vsel %vm269_vm0, %v3867_v22, %v3869_v51  ;;  %7854 = vmatpush3.msra.mxu1 %v3832_v31  ;;  %v3873_v38 = vrot.slane %v9468_v52, 7  ;;  %v3927_v16 = vrot.slane %v9468_v52, 1 }
 0x4fa   :  { %v9478_v14 = vsel %vm103_vm5, %v3761_v40, 0.0  ;;  %v3745_v46 = vadd.f32 %v9395_v6, %v3722_v43  ;;  %v3725_v3 = vadd.f32 %v7718_v19, %v3534_v59  ;;  %7825 = vmatprep.mubr.f32.mxu0 %v3868_v54  ;;  %7855 = vmatprep.subr.mxu1 %v3831_v63  ;;  %v9488_v33 = vmax.f32 %v3746_v42, 0.0 }
 0x4fb   :  { %v3871_v49 = vrot.slane %v9478_v14, 7  ;;  %7769 = vmatprep.mubr.msk.f32.mxu1 %vm103_vm5, %v3761_v40  ;;  %v3683_v56 = vpop.f32.mrf.mxu0  ;;  %7826 = vmatmul.mubr.f32.gmra.mxu0 %v3870_v44 }
 0x4fc   :  { %v9486_v2 = vmax.f32 %v3745_v46, 0.0  ;;  %7856 = vmatpush3.msra.mxu1 %v3831_v63  ;;  %v3724_v37 = vadd.f32 %v3683_v56, %v3529_v4  ;;  %v3748_v28 = vadd.f32 %v9395_v6, %v3725_v3  ;;  %v3877_v26 = vrot.slane %v9488_v33, 7 }
 0x4fd   :  { %7770 = vmatmul.mubr.msk.f32.gmra.mxu1 %vm140_vm4, %v3762_v41  ;;  %7857 = vmatprep.subr.mxu1 %v3830_v12  ;;  %v7721_v5 = vpop.f32.mrf.mxu0  ;;  %v3872_v8 = vsel %vm269_vm0, %v3869_v51, %v3871_v49  ;;  %v3874_v53 = vsel %vm269_vm0, %v3871_v49, %v3873_v38  ;;  %v3826_v51 = vld [vmem:[#allocation2 + $0x8a0] sm:$0xff]  ;;  %v3910_v49 = vrot.slane %v9408_v29, 1  ;;  %v3913_v29 = vrot.slane %v9420_v30, 1 }
 0x4fe   :  { %v3747_v45 = vadd.f32 %v9395_v6, %v3724_v37  ;;  %7858 = vmatpush3.msra.mxu1 %v3830_v12  ;;  %v3727_v1 = vadd.f32 %v7721_v5, %v3544_v27  ;;  %7772 = vmatprep.mubr.f32.mxu1 %v9486_v2  ;;  %v3875_v32 = vrot.slane %v9486_v2, 7  ;;  %v9503_v17 = vmax.f32 %v3748_v28, 0.0  ;;  %v3824_v12 = vld [vmem:[#allocation2 + $0x890] sm:$0xff]  ;;  %v3823_v27 = vld [vmem:[#allocation2 + $0x888] sm:$0xff] }
 0x4ff   :  { %7859 = vmatprep.subr.mxu1 %v3829_v13  ;;  %7828 = vmatprep.mubr.f32.mxu0 %v3872_v8  ;;  %v3693_v0 = vpop.f32.mrf.mxu0  ;;  %v3911_v5 = vrot.slane %v9403_v24, 1  ;;  %v3915_v24 = vrot.slane %v9417_v18, 1  ;;  %v3917_v30 = vrot.slane %v9437_v55, 1  ;;  %v3923_v18 = vrot.slane %v9446_v61, 1 }
 0x500   :  { %v9500_v21 = vmax.f32 %v3747_v45, 0.0  ;;  %7860 = vmatpush3.msra.mxu1 %v3829_v13  ;;  %v3726_v9 = vadd.f32 %v3693_v0, %v3539_v11  ;;  %7829 = vmatmul.mubr.f32.gmra.mxu0 %v3874_v53  ;;  %v3750_v41 = vadd.f32 %v9395_v6, %v3727_v1  ;;  %v3876_v60 = vsel %vm269_vm0, %v3873_v38, %v3875_v32  ;;  %v3822_v53 = vld [vmem:[#allocation2 + $0x880] sm:$0xff] }
 0x501   :  { %7773 = vmatmul.mubr.f32.gmra.mxu1 %v9488_v33  ;;  %7861 = vmatprep.subr.mxu1 %v3828_v36  ;;  %v7724_v20 = vpop.f32.mrf.mxu0  ;;  %v3878_v22 = vsel %vm269_vm0, %v3875_v32, %v3877_v26  ;;  %v3881_v42 = vrot.slane %v9503_v17, 7  ;;  %v3912_v11 = vsel %vm324_vm2, %v3910_v49, %v3911_v5  ;;  %v3914_v1 = vsel %vm324_vm2, %v3911_v5, %v3913_v29  ;;  %v4529_v49 = vld [vmem:[#allocation2 + $0x9b0] sm:$0xff]  ;;  %v4512_v5 = vld [vmem:[#allocation2 + $0x928] sm:$0xff] }
 0x502   :  { %v3749_v31 = vadd.f32 %v9395_v6, %v3726_v9  ;;  %v3729_v25 = vadd.f32 %v7724_v20, %v3554_v57  ;;  %7831 = vmatprep.mubr.f32.mxu0 %v3876_v60  ;;  %7862 = vmatpush3.msra.mxu1 %v3828_v36  ;;  %v3879_v59 = vrot.slane %v9500_v21, 7  ;;  %v9517_v19 = vmax.f32 %v3750_v41, 0.0 }
 0x503   :  { %7775 = vmatprep.mubr.f32.mxu1 %v9500_v21  ;;  %7863 = vmatprep.subr.mxu1 %v3827_v50  ;;  %v3703_v7 = vpop.f32.mrf.mxu0  ;;  %v3916_v36 = vsel %vm324_vm2, %v3913_v29, %v3915_v24  ;;  %v3921_v0 = vrot.slane %v9452_v62, 1  ;;  %v3918_v32 = vsel %vm324_vm2, %v3915_v24, %v3917_v30  ;;  %v3920_v57 = vsel %vm324_vm2, %v3917_v30, %v3919_v58  ;;  %v4526_v29 = vld [vmem:[#allocation2 + $0x998] sm:$0xff]  ;;  %v4509_v24 = vld [vmem:[#allocation2 + $0x910] sm:$0xff]  ;;  %v4523_v30 = vld [vmem:[#allocation2 + $0x980] sm:$0xff] }
 0x504   :  { %v9513_v40 = vmax.f32 %v3749_v31, 0.0  ;;  %v3752_v43 = vadd.f32 %v9395_v6, %v3729_v25  ;;  %v3728_v63 = vadd.f32 %v3703_v7, %v3549_v48  ;;  %7832 = vmatmul.mubr.f32.gmra.mxu0 %v3878_v22  ;;  %7864 = vmatpush3.msra.mxu1 %v3827_v50  ;;  %v3880_v54 = vsel %vm269_vm0, %v3877_v26, %v3879_v59 }
 0x505   :  { %7776 = vmatmul.mubr.f32.gmra.mxu1 %v9503_v17  ;;  %7865 = vmatprep.subr.mxu1 %v3826_v51  ;;  %v3882_v3 = vsel %vm269_vm0, %v3879_v59, %v3881_v42  ;;  %v3885_v56 = vrot.slane %v9517_v19, 7  ;;  %v3925_v55 = vrot.slane %v9478_v14, 1  ;;  %v3922_v9 = vsel %vm324_vm2, %v3919_v58, %v3921_v0  ;;  %v4538_v59 = vld [vmem:[#allocation2 + $0x9f8] sm:$0xff] }
 0x506   :  { %v3770_v44 = vmax.f32 %v3752_v43, 0.0  ;;  %v3751_v4 = vadd.f32 %v9395_v6, %v3728_v63  ;;  %7834 = vmatprep.mubr.f32.mxu0 %v3880_v54  ;;  %7866 = vmatpush3.msra.mxu1 %v3826_v51  ;;  %v3883_v46 = vrot.slane %v9513_v40, 7  ;;  %v3924_v50 = vsel %vm324_vm2, %v3921_v0, %v3923_v18  ;;  %v4536_v43 = vld [vmem:[#allocation2 + $0x9e8] sm:$0xff]  ;;  %v4522_v63 = vld [vmem:[#allocation2 + $0x978] sm:$0xff] }
 0x507   :  { %7778 = vmatprep.mubr.f32.mxu1 %v9513_v40  ;;  %7867 = vmatprep.subr.mxu1 %v3825_v47  ;;  %v3929_v62 = vrot.slane %v9486_v2, 1  ;;  %v3926_v26 = vsel %vm324_vm2, %v3923_v18, %v3925_v55  ;;  %v3928_v41 = vsel %vm324_vm2, %v3925_v55, %v3927_v16  ;;  %v3931_v61 = vrot.slane %v9488_v33, 1  ;;  %v4520_v54 = vld [vmem:[#allocation2 + $0x968] sm:$0xff]  ;;  %v9578_v58 = vld [vmem:[#allocation2 + $0xa78] sm:$0xff] }
 0x508   :  { %v9527_v34 = vsel %vm166_vm6, %v3770_v44, 0.0  ;;  %v9529_v38 = vmax.f32 %v3751_v4, 0.0  ;;  %7835 = vmatmul.mubr.f32.gmra.mxu0 %v3882_v3  ;;  %7868 = vmatpush3.msra.mxu1 %v3825_v47  ;;  %v3884_v6 = vsel %vm269_vm0, %v3881_v42, %v3883_v46  ;;  %v3886_v28 = vsel %vm269_vm0, %v3883_v46, %v3885_v56  ;;  %v4535_v47 = vld [vmem:[#allocation2 + $0x9e0] sm:$0xff]  ;;  %v4534_v42 = vld [vmem:[#allocation2 + $0x9d8] sm:$0xff]  ;;  %v4532_v46 = vld [vmem:[#allocation2 + $0x9c8] sm:$0xff] }
 0x509   :  { %7779 = vmatmul.mubr.f32.gmra.mxu1 %v9517_v19  ;;  %7837 = vmatprep.mubr.f32.mxu0 %v3884_v6  ;;  %v3889_v13 = vrot.slane %v9527_v34, 7  ;;  %v3933_v14 = vrot.slane %v9500_v21, 1  ;;  %v3930_v20 = vsel %vm324_vm2, %v3927_v16, %v3929_v62  ;;  %v3932_v60 = vsel %vm324_vm2, %v3929_v62, %v3931_v61  ;;  %v4519_v4 = vld [vmem:[#allocation2 + $0x960] sm:$0xff]  ;;  %v4518_v3 = vld [vmem:[#allocation2 + $0x958] sm:$0xff]  ;;  %v4516_v6 = vld [vmem:[#allocation2 + $0x948] sm:$0xff] }
 0x50a   :  { %7869 = vmatprep.subr.mxu1 %v3824_v12  ;;  %7781 = vmatprep.mubr.f32.mxu1 %v9529_v38  ;;  %v3887_v37 = vrot.slane %v9529_v38, 7  ;;  %v3935_v52 = vrot.slane %v9503_v17, 1  ;;  %v3937_v2 = vrot.slane %v9513_v40, 1  ;;  %v3939_v33 = vrot.slane %v9517_v19, 1  ;;  %v4537_v40 = vld [vmem:[#allocation2 + $0x9f0] sm:$0xff] }
 0x50b   :  { %7870 = vmatpush3.msra.mxu1 %v3824_v12  ;;  %v3934_v48 = vsel %vm324_vm2, %v3931_v61, %v3933_v14  ;;  %v3941_v21 = vrot.slane %v9529_v38, 1  ;;  %v3943_v51 = vrot.slane %v9527_v34, 1  ;;  %7902 = vmatprep.subr.mxu0 %v4538_v59  ;;  %v4521_v19 = vld [vmem:[#allocation2 + $0x970] sm:$0xff]  ;;  %v4531_v12 = vld [vmem:[#allocation2 + $0x9c0] sm:$0xff]  ;;  %v4530_v38 = vld [vmem:[#allocation2 + $0x9b8] sm:$0xff] }
 0x50c   :  { %7838 = vmatmul.mubr.f32.gmra.mxu0 %v3886_v28  ;;  %7871 = vmatprep.subr.mxu1 %v3823_v27  ;;  %v3888_v8 = vsel %vm269_vm0, %v3885_v56, %v3887_v37  ;;  %v3890_v45 = vsel %vm269_vm0, %v3887_v37, %v3889_v13  ;;  %v3936_v31 = vsel %vm324_vm2, %v3933_v14, %v3935_v52  ;;  %v4517_v34 = vld [vmem:[#allocation2 + $0x950] sm:$0xff]  ;;  %v4515_v56 = vld [vmem:[#allocation2 + $0x940] sm:$0xff]  ;;  %v4514_v37 = vld [vmem:[#allocation2 + $0x938] sm:$0xff] }
 0x50d   :  { %7782 = vmatmul.mubr.msk.f32.gmra.mxu1 %vm166_vm6, %v3770_v44  ;;  %7840 = vmatprep.mubr.f32.mxu0 %v3888_v8  ;;  %v3938_v25 = vsel %vm324_vm2, %v3935_v52, %v3937_v2  ;;  %v3940_v7 = vsel %vm324_vm2, %v3937_v2, %v3939_v33  ;;  %v3942_v17 = vsel %vm324_vm2, %v3939_v33, %v3941_v21  ;;  %v4533_v44 = vld [vmem:[#allocation2 + $0x9d0] sm:$0xff]  ;;  %v4527_v13 = vld [vmem:[#allocation2 + $0x9a0] sm:$0xff] }
 0x50e   :  { %7872 = vmatpush3.msra.mxu1 %v3823_v27  ;;  %7875 = vmatprep.mubr.f32.mxu1 %v3912_v11  ;;  %v3944_v22 = vsel %vm324_vm2, %v3941_v21, %v3943_v51  ;;  %v4528_v27 = vld [vmem:[#allocation2 + $0x9a8] sm:$0xff]  ;;  %v4513_v28 = vld [vmem:[#allocation2 + $0x930] sm:$0xff]  ;;  %v4511_v8 = vld [vmem:[#allocation2 + $0x920] sm:$0xff] }
 0x50f   :  { %7873 = vmatprep.subr.mxu1 %v3822_v53  ;;  %7903 = vmatpush3.msra.mxu0 %v4538_v59  ;;  %v4510_v11 = vld [vmem:[#allocation2 + $0x918] sm:$0xff] }
 0x510   :  { %7874 = vmatpush3.msra.mxu1 %v3822_v53  ;;  %7841 = vmatmul.mubr.f32.gmra.mxu0 %v3890_v45  ;;  %v4525_v53 = vld [vmem:[#allocation2 + $0x990] sm:$0xff]  ;;  %v4524_v45 = vld [vmem:[#allocation2 + $0x988] sm:$0xff] }
 0x511   :  { %7876 = vmatmul.mubr.f32.vlgmr.msra.gmra.mxu1 %v3914_v1  ;;  %7904 = vmatprep.subr.mxu0 %v4537_v40  ;;  %v4508_v1 = vld [vmem:[#allocation2 + $0x908] sm:$0xff] }
 0x512   :  { %7878 = vmatprep.mubr.f32.mxu1 %v3916_v36  ;;  %7905 = vmatpush3.msra.mxu0 %v4537_v40  ;;  %v4507_v36 = vld [vmem:[#allocation2 + $0x900] sm:$0xff] }
 0x513   :  { %7906 = vmatprep.subr.mxu0 %v4536_v43  ;;  %7961 = vmatprep.subr.mxu1 %v4522_v63 }
 0x514   :  { %7907 = vmatpush3.msra.mxu0 %v4536_v43  ;;  %7962 = vmatpush3.msra.mxu1 %v4522_v63 }
 0x515   :  { %7879 = vmatmul.mubr.f32.gmra.mxu1 %v3918_v32  ;;  %7908 = vmatprep.subr.mxu0 %v4535_v47 }
 0x516   :  { %7881 = vmatprep.mubr.f32.mxu1 %v3920_v57  ;;  %7909 = vmatpush3.msra.mxu0 %v4535_v47  ;;  %v9603_v47 = vld [vmem:[#allocation4 + $0x5] ss:$0 sm:$0xff] }
 0x517   :  { %7963 = vmatprep.subr.mxu1 %v4521_v19  ;;  %7910 = vmatprep.subr.mxu0 %v4534_v42 }
 0x518   :  { %7964 = vmatpush3.msra.mxu1 %v4521_v19  ;;  %7911 = vmatpush3.msra.mxu0 %v4534_v42 }
 0x519   :  { %7882 = vmatmul.mubr.f32.gmra.mxu1 %v3922_v9  ;;  %7965 = vmatprep.subr.mxu1 %v4520_v54 }
 0x51a   :  { %7884 = vmatprep.mubr.f32.mxu1 %v3924_v50  ;;  %7912 = vmatprep.subr.mxu0 %v4533_v44 }
 0x51b   :  { %7966 = vmatpush3.msra.mxu1 %v4520_v54  ;;  %7913 = vmatpush3.msra.mxu0 %v4533_v44 }
 0x51c   :  { %7967 = vmatprep.subr.mxu1 %v4519_v4  ;;  %7914 = vmatprep.subr.mxu0 %v4532_v46 }
 0x51d   :  { %7885 = vmatmul.mubr.f32.gmra.mxu1 %v3926_v26  ;;  %7915 = vmatpush3.msra.mxu0 %v4532_v46 }
 0x51e   :  { %7887 = vmatprep.mubr.f32.mxu1 %v3928_v41  ;;  %7968 = vmatpush3.msra.mxu1 %v4519_v4 }
 0x51f   :  { %7969 = vmatprep.subr.mxu1 %v4518_v3  ;;  %7916 = vmatprep.subr.mxu0 %v4531_v12 }
 0x520   :  { %7970 = vmatpush3.msra.mxu1 %v4518_v3  ;;  %7917 = vmatpush3.msra.mxu0 %v4531_v12 }
 0x521   :  { %7888 = vmatmul.mubr.f32.gmra.mxu1 %v3930_v20  ;;  %7971 = vmatprep.subr.mxu1 %v4517_v34 }
 0x522   :  { %7890 = vmatprep.mubr.f32.mxu1 %v3932_v60  ;;  %7918 = vmatprep.subr.mxu0 %v4530_v38 }
 0x523   :  { %7972 = vmatpush3.msra.mxu1 %v4517_v34  ;;  %7919 = vmatpush3.msra.mxu0 %v4530_v38 }
 0x524   :  { %7973 = vmatprep.subr.mxu1 %v4516_v6  ;;  %7920 = vmatprep.subr.mxu0 %v4529_v49 }
 0x525   :  { %7891 = vmatmul.mubr.f32.gmra.mxu1 %v3934_v48  ;;  %7921 = vmatpush3.msra.mxu0 %v4529_v49 }
 0x526   :  { %7893 = vmatprep.mubr.f32.mxu1 %v3936_v31  ;;  %7974 = vmatpush3.msra.mxu1 %v4516_v6 }
 0x527   :  { %7975 = vmatprep.subr.mxu1 %v4515_v56  ;;  %7922 = vmatprep.subr.mxu0 %v4528_v27 }
 0x528   :  { %7976 = vmatpush3.msra.mxu1 %v4515_v56  ;;  %7923 = vmatpush3.msra.mxu0 %v4528_v27 }
 0x529   :  { %7894 = vmatmul.mubr.f32.gmra.mxu1 %v3938_v25  ;;  %7977 = vmatprep.subr.mxu1 %v4514_v37 }
 0x52a   :  { %7896 = vmatprep.mubr.f32.mxu1 %v3940_v7  ;;  %7978 = vmatpush3.msra.mxu1 %v4514_v37 }
 0x52b   :  { %7924 = vmatprep.subr.mxu0 %v4527_v13  ;;  %7979 = vmatprep.subr.mxu1 %v4513_v28 }
 0x52c   :  { %7925 = vmatpush3.msra.mxu0 %v4527_v13  ;;  %7980 = vmatpush3.msra.mxu1 %v4513_v28 }
 0x52d   :  { %7897 = vmatmul.mubr.f32.gmra.mxu1 %v3942_v17  ;;  %7981 = vmatprep.subr.mxu1 %v4512_v5 }
 0x52e   :  { %7899 = vmatprep.mubr.f32.mxu1 %v3944_v22  ;;  %7926 = vmatprep.subr.mxu0 %v4526_v29 }
 0x52f   :  { %7982 = vmatpush3.msra.mxu1 %v4512_v5  ;;  %7927 = vmatpush3.msra.mxu0 %v4526_v29 }
 0x530   :  { %7983 = vmatprep.subr.mxu1 %v4511_v8  ;;  %7928 = vmatprep.subr.mxu0 %v4525_v53 }
 0x531   :  { %7900 = vmatmul.mubr.msk.f32.gmra.mxu1 %vm324_vm2, %v3943_v51  ;;  %7929 = vmatpush3.msra.mxu0 %v4525_v53 }
 0x532   :  { %7984 = vmatpush3.msra.mxu1 %v4511_v8  ;;  %7930 = vmatprep.subr.mxu0 %v4524_v45 }
 0x533   :  { %7985 = vmatprep.subr.mxu1 %v4510_v11  ;;  %7931 = vmatpush3.msra.mxu0 %v4524_v45 }
 0x534   :  { %7986 = vmatpush3.msra.mxu1 %v4510_v11  ;;  %7932 = vmatprep.subr.mxu0 %v4523_v30 }
 0x535   :  { %7987 = vmatprep.subr.mxu1 %v4509_v24  ;;  %7933 = vmatpush3.msra.mxu0 %v4523_v30 }
 0x536   :  { %7988 = vmatpush3.msra.mxu1 %v4509_v24  ;;  %8020 = vmatprep.subr.mxu0 %v9578_v58  ;;  %v4553_v24 = vld [vmem:[#allocation2 + $0xa70] sm:$0xff] }
 0x537   :  { %7989 = vmatprep.subr.mxu1 %v4508_v1 }
 0x538   :  { %7990 = vmatpush3.msra.mxu1 %v4508_v1 }
 0x539   :  { %7991 = vmatprep.subr.mxu1 %v4507_v36 }
 0x53a   :  { %7992 = vmatpush3.msra.mxu1 %v4507_v36 }
 0x5ab   :  { %v7759_v0 = vpop.f32.mrf.mxu1 }
 0x5ad   :  { %v4030_v32 = vpop.f32.mrf.mxu1 }
 0x5ae   :  { %v7818_v57 = vpop.f32.mrf.mxu0 }
 0x5af   :  { %v7762_v18 = vpop.f32.mrf.mxu1  ;;  %v4191_v43 = vadd.f32 %v7818_v57, %v7759_v0 }
 0x5b0   :  { %v4185_v55 = vpop.f32.mrf.mxu0 }
 0x5b1   :  { %v4040_v9 = vpop.f32.mrf.mxu1  ;;  %v4186_v42 = vadd.f32 %v4185_v55, %v4030_v32 }
 0x5b3   :  { %v7821_v50 = vpop.f32.mrf.mxu0 }
 0x5b4   :  { %v7765_v16 = vpop.f32.mrf.mxu1  ;;  %v4201_v4 = vadd.f32 %v7821_v50, %v7762_v18 }
 0x5b5   :  { %v4195_v26 = vpop.f32.mrf.mxu0 }
 0x5b6   :  { %v4050_v62 = vpop.f32.mrf.mxu1  ;;  %v4196_v34 = vadd.f32 %v4195_v26, %v4040_v9 }
 0x5b7   :  { %v7824_v14 = vpop.f32.mrf.mxu0 }
 0x5b8   :  { %v7768_v41 = vpop.f32.mrf.mxu1  ;;  %v4211_v37 = vadd.f32 %v7824_v14, %v7765_v16 }
 0x5b9   :  { %v4205_v60 = vpop.f32.mrf.mxu0 }
 0x5ba   :  { %v4060_v61 = vpop.f32.mrf.mxu1  ;;  %v4206_v8 = vadd.f32 %v4205_v60, %v4050_v62 }
 0x5bb   :  { %v7827_v48 = vpop.f32.mrf.mxu0 }
 0x5bc   :  { %v4221_v57 = vadd.f32 %v7827_v48, %v7768_v41  ;;  %v4552_v41 = vld [vmem:[#allocation2 + $0xa68] sm:$0xff] }
 0x5bd   :  { %v9581_v20 = vpop.f32.mrf.mxu1  ;;  %v4215_v21 = vpop.f32.mrf.mxu0 }
 0x5be   :  { %v4216_v62 = vadd.f32 %v4215_v21, %v4060_v61 }
 0x5bf   :  { %v9583_v52 = vpop.f32.mrf.mxu1 }
 0x5c0   :  { %v7830_v7 = vpop.f32.mrf.mxu0 }
 0x5c1   :  { %v9585_v2 = vpop.f32.mrf.mxu1  ;;  %v4231_v61 = vadd.f32 %v7830_v7, %v9581_v20 }
 0x5c2   :  { %v9599_v59 = vpop.f32.mrf.mxu0 }
 0x5c3   :  { %v9587_v31 = vpop.f32.mrf.mxu1 }
 0x5c4   :  { %v9605_v54 = vpop.f32.mrf.mxu0 }
 0x5c5   :  { %v9589_v33 = vpop.f32.mrf.mxu1 }
 0x5c6   :  { %v9609_v49 = vpop.f32.mrf.mxu0 }
 0x5c7   :  { %v9591_v25 = vpop.f32.mrf.mxu1 }
 0x5c8   :  { %v9621_v30 = vpop.f32.mrf.mxu0 }
 0x5c9   :  { %v9593_v51 = vpop.f32.mrf.mxu1 }
 0x5ca   :  { %v9637_v60 = vpop.f32.mrf.mxu0 }
 0x5cb   :  { %v9595_v17 = vpop.f32.mrf.mxu1 }
 0x5cc   :  { %v7839_v20 = vpop.f32.mrf.mxu0 }
 0x5cd   :  { %v9597_v22 = vpop.f32.mrf.mxu1 }
 0x5cf   :  { %v9601_v40 = vpop.f32.mrf.mxu1 }
 0x5d1   :  { %v7877_v63 = vpop.f32.mrf.mxu1 }
 0x5d2   :  { %v4430_v19 = vadd.f32 %v7877_v63, %v4191_v43 }
 0x5d3   :  { %v4340_v44 = vpop.f32.mrf.mxu1 }
 0x5d4   :  { %v4453_v46 = vadd.f32 %v9603_v47, %v4430_v19  ;;  %v4429_v3 = vadd.f32 %v4340_v44, %v4186_v42 }
 0x5d5   :  { %v7880_v12 = vpop.f32.mrf.mxu1 }
 0x5d6   :  { %v4452_v38 = vadd.f32 %v9603_v47, %v4429_v3  ;;  %v4432_v6 = vadd.f32 %v7880_v12, %v4201_v4  ;;  %v9611_v56 = vmax.f32 %v4453_v46, 0.0  ;;  %v4551_v3 = vld [vmem:[#allocation2 + $0xa60] sm:$0xff]  ;;  %v4226_v12 = vadd.f32 %v9599_v59, %v9583_v52 }
 0x5d7   :  { %v4350_v27 = vpop.f32.mrf.mxu1  ;;  %v4241_v52 = vadd.f32 %v9605_v54, %v9585_v2 }
 0x5d8   :  { %v4470_v13 = vmax.f32 %v4452_v38, 0.0  ;;  %v4455_v28 = vadd.f32 %v9603_v47, %v4432_v6  ;;  %v4431_v5 = vadd.f32 %v4350_v27, %v4196_v34  ;;  %v4574_v1 = vrot.slane %v9611_v56, 7 }
 0x5d9   :  { %v7883_v29 = vpop.f32.mrf.mxu1 }
 0x5da   :  { %v9616_v53 = vsel %vm77_vm3, %v4470_v13, 0.0  ;;  %v4454_v11 = vadd.f32 %v9603_v47, %v4431_v5  ;;  %v4434_v45 = vadd.f32 %v7883_v29, %v4211_v37  ;;  %7934 = vmatprep.mubr.msk.f32.mxu0 %vm77_vm3, %v4470_v13  ;;  %v9625_v0 = vmax.f32 %v4455_v28, 0.0  ;;  %v4550_v37 = vld [vmem:[#allocation2 + $0xa58] sm:$0xff] }
 0x5db   :  { %v4573_v36 = vrot.slane %v9616_v53, 7  ;;  %v4360_v32 = vpop.f32.mrf.mxu1  ;;  %7935 = vmatmul.mubr.f32.vlgmr.msra.gmra.mxu0 %v9611_v56 }
 0x5dc   :  { %v9628_v18 = vmax.f32 %v4454_v11, 0.0  ;;  %v4457_v55 = vadd.f32 %v9603_v47, %v4434_v45  ;;  %v4433_v9 = vadd.f32 %v4360_v32, %v4206_v8  ;;  %8021 = vmatpush3.msra.mxu0 %v9578_v58  ;;  %v4578_v48 = vrot.slane %v9625_v0, 7 }
 0x5dd   :  { %v7886_v50 = vpop.f32.mrf.mxu1  ;;  %7993 = vmatprep.mubr.msk.f32.mxu1 %vm8358_vm1, %v4573_v36  ;;  %v4575_v16 = vsel %vm269_vm0, %v4573_v36, %v4574_v1  ;;  %8022 = vmatprep.subr.mxu0 %v4553_v24  ;;  %v4236_v45 = vadd.f32 %v9609_v49, %v9587_v31  ;;  %v4255_v36 = vpop.f32.mrf.mxu0 }
 0x5de   :  { %v4456_v26 = vadd.f32 %v9603_v47, %v4433_v9  ;;  %v4436_v14 = vadd.f32 %v7886_v50, %v4221_v57  ;;  %7937 = vmatprep.mubr.f32.mxu0 %v9628_v18  ;;  %7994 = vmatmul.mubr.f32.vlgmr.msra.gmra.mxu1 %v4575_v16  ;;  %v9640_v58 = vmax.f32 %v4457_v55, 0.0  ;;  %v4576_v63 = vrot.slane %v9628_v18, 7  ;;  %v4548_v16 = vld [vmem:[#allocation2 + $0xa48] sm:$0xff] }
 0x5df   :  { %v4370_v43 = vpop.f32.mrf.mxu1  ;;  %7938 = vmatmul.mubr.f32.gmra.mxu0 %v9625_v0  ;;  %v4251_v9 = vadd.f32 %v9621_v30, %v9589_v33  ;;  %v4246_v33 = vadd.f32 %v9637_v60, %v9591_v25  ;;  %v4261_v60 = vadd.f32 %v7839_v20, %v9593_v51  ;;  %v4256_v51 = vadd.f32 %v4255_v36, %v9595_v17  ;;  %v4544_v17 = vld [vmem:[#allocation2 + $0xa28] sm:$0xff] }
 0x5e0   :  { %v9645_v21 = vmax.f32 %v4456_v26, 0.0  ;;  %v4459_v42 = vadd.f32 %v9603_v47, %v4436_v14  ;;  %v4435_v19 = vadd.f32 %v4370_v43, %v4216_v62  ;;  %8023 = vmatpush3.msra.mxu0 %v4553_v24  ;;  %v4577_v4 = vsel %vm269_vm0, %v4574_v1, %v4576_v63  ;;  %v4549_v1 = vld [vmem:[#allocation2 + $0xa50] sm:$0xff] }
 0x5e1   :  { %8024 = vmatprep.subr.mxu0 %v4552_v41  ;;  %v7889_v44 = vpop.f32.mrf.mxu1  ;;  %v4579_v46 = vsel %vm269_vm0, %v4576_v63, %v4578_v48  ;;  %7996 = vmatprep.mubr.f32.mxu1 %v4577_v4  ;;  %v4582_v7 = vrot.slane %v9640_v58, 7  ;;  %v4547_v63 = vld [vmem:[#allocation2 + $0xa40] sm:$0xff] }
 0x5e2   :  { %v4458_v34 = vadd.f32 %v9603_v47, %v4435_v19  ;;  %v4438_v38 = vadd.f32 %v7889_v44, %v4231_v61  ;;  %8025 = vmatpush3.msra.mxu0 %v4552_v41  ;;  %v9654_v6 = vmax.f32 %v4459_v42, 0.0  ;;  %7940 = vmatprep.mubr.f32.mxu0 %v9645_v21  ;;  %v4580_v13 = vrot.slane %v9645_v21, 7  ;;  %v7842_v61 = vpop.f32.mrf.mxu0 }
 0x5e3   :  { %7997 = vmatmul.mubr.f32.gmra.mxu1 %v4579_v46  ;;  %v4380_v27 = vpop.f32.mrf.mxu1  ;;  %8026 = vmatprep.subr.mxu0 %v4551_v3  ;;  %v4546_v46 = vld [vmem:[#allocation2 + $0xa38] sm:$0xff] }
 0x5e4   :  { %v9660_v59 = vmax.f32 %v4458_v34, 0.0  ;;  %v4461_v28 = vadd.f32 %v9603_v47, %v4438_v38  ;;  %v4437_v5 = vadd.f32 %v4380_v27, %v4226_v12  ;;  %7941 = vmatmul.mubr.f32.gmra.mxu0 %v9640_v58  ;;  %v4581_v8 = vsel %vm269_vm0, %v4578_v48, %v4580_v13 }
 0x5e5   :  { %8027 = vmatpush3.msra.mxu0 %v4551_v3  ;;  %v7892_v29 = vpop.f32.mrf.mxu1  ;;  %v4583_v11 = vsel %vm269_vm0, %v4580_v13, %v4582_v7  ;;  %7999 = vmatprep.mubr.f32.mxu1 %v4581_v8  ;;  %v4586_v32 = vrot.slane %v9654_v6, 7  ;;  %v4265_v13 = vpop.f32.mrf.mxu0 }
 0x5e6   :  { %v4479_v24 = vmax.f32 %v4461_v28, 0.0  ;;  %v4460_v2 = vadd.f32 %v9603_v47, %v4437_v5  ;;  %8028 = vmatprep.subr.mxu0 %v4550_v37  ;;  %v4440_v54 = vadd.f32 %v7892_v29, %v4241_v52  ;;  %7943 = vmatprep.mubr.f32.mxu0 %v9660_v59  ;;  %v4584_v55 = vrot.slane %v9660_v59, 7 }
 0x5e7   :  { %8029 = vmatpush3.msra.mxu0 %v4550_v37  ;;  %v4390_v57 = vpop.f32.mrf.mxu1  ;;  %8000 = vmatmul.mubr.f32.gmra.mxu1 %v4583_v11  ;;  %v4545_v37 = vld [vmem:[#allocation2 + $0xa30] sm:$0xff]  ;;  %v4271_v5 = vadd.f32 %v7842_v61, %v9597_v22  ;;  %v4266_v22 = vadd.f32 %v4265_v13, %v9601_v40  ;;  %v4542_v40 = vld [vmem:[#allocation2 + $0xa18] sm:$0xff]  ;;  %v4636_v13 = vrot.slane %v9640_v58, 1 }
 0x5e8   :  { %v9676_v31 = vsel %vm140_vm4, %v4479_v24, 0.0  ;;  %v4478_v49 = vmax.f32 %v4460_v2, 0.0  ;;  %v4439_v50 = vadd.f32 %v4390_v57, %v4236_v45  ;;  %7944 = vmatmul.mubr.f32.gmra.mxu0 %v9654_v6  ;;  %v4463_v62 = vadd.f32 %v9603_v47, %v4440_v54  ;;  %8030 = vmatprep.subr.mxu0 %v4549_v1 }
 0x5e9   :  { %v7895_v26 = vpop.f32.mrf.mxu1  ;;  %v4585_v14 = vsel %vm269_vm0, %v4582_v7, %v4584_v55  ;;  %v4587_v41 = vsel %vm269_vm0, %v4584_v55, %v4586_v32  ;;  %8031 = vmatpush3.msra.mxu0 %v4549_v1  ;;  %v4590_v42 = vrot.slane %v9676_v31, 7  ;;  %v4644_v58 = vrot.slane %v9676_v31, 1 }
 0x5ea   :  { %v9686_v30 = vsel %vm103_vm5, %v4478_v49, 0.0  ;;  %v4462_v48 = vadd.f32 %v9603_v47, %v4439_v50  ;;  %v4442_v43 = vadd.f32 %v7895_v26, %v4251_v9  ;;  %8002 = vmatprep.mubr.f32.mxu1 %v4585_v14  ;;  %8032 = vmatprep.subr.mxu0 %v4548_v16  ;;  %v9696_v3 = vmax.f32 %v4463_v62, 0.0 }
 0x5eb   :  { %v4588_v19 = vrot.slane %v9686_v30, 7  ;;  %7946 = vmatprep.mubr.msk.f32.mxu0 %vm103_vm5, %v4478_v49  ;;  %v4400_v25 = vpop.f32.mrf.mxu1  ;;  %8003 = vmatmul.mubr.f32.gmra.mxu1 %v4587_v41 }
 0x5ec   :  { %v9694_v44 = vmax.f32 %v4462_v48, 0.0  ;;  %8033 = vmatpush3.msra.mxu0 %v4548_v16  ;;  %v4441_v4 = vadd.f32 %v4400_v25, %v4246_v33  ;;  %v4465_v12 = vadd.f32 %v9603_v47, %v4442_v43  ;;  %v4594_v11 = vrot.slane %v9696_v3, 7 }
 0x5ed   :  { %7947 = vmatmul.mubr.msk.f32.gmra.mxu0 %vm140_vm4, %v4479_v24  ;;  %8034 = vmatprep.subr.mxu0 %v4547_v63  ;;  %v7898_v34 = vpop.f32.mrf.mxu1  ;;  %v4589_v38 = vsel %vm269_vm0, %v4586_v32, %v4588_v19  ;;  %v4591_v7 = vsel %vm269_vm0, %v4588_v19, %v4590_v42  ;;  %v4543_v32 = vld [vmem:[#allocation2 + $0xa20] sm:$0xff]  ;;  %v4627_v19 = vrot.slane %v9616_v53, 1  ;;  %v4630_v53 = vrot.slane %v9628_v18, 1 }
 0x5ee   :  { %v4464_v20 = vadd.f32 %v9603_v47, %v4441_v4  ;;  %8035 = vmatpush3.msra.mxu0 %v4547_v63  ;;  %v4444_v27 = vadd.f32 %v7898_v34, %v4261_v60  ;;  %7949 = vmatprep.mubr.f32.mxu0 %v9694_v44  ;;  %v4592_v28 = vrot.slane %v9694_v44, 7  ;;  %v9711_v45 = vmax.f32 %v4465_v12, 0.0  ;;  %v4541_v63 = vld [vmem:[#allocation2 + $0xa10] sm:$0xff]  ;;  %v4540_v60 = vld [vmem:[#allocation2 + $0xa08] sm:$0xff] }
 0x5ef   :  { %8036 = vmatprep.subr.mxu0 %v4546_v46  ;;  %8005 = vmatprep.mubr.f32.mxu1 %v4589_v38  ;;  %v4410_v52 = vpop.f32.mrf.mxu1  ;;  %v4628_v34 = vrot.slane %v9611_v56, 1  ;;  %v4632_v56 = vrot.slane %v9625_v0, 1  ;;  %v4634_v18 = vrot.slane %v9645_v21, 1  ;;  %v4640_v0 = vrot.slane %v9654_v6, 1 }
 0x5f0   :  { %v9708_v29 = vmax.f32 %v4464_v20, 0.0  ;;  %8037 = vmatpush3.msra.mxu0 %v4546_v46  ;;  %v4443_v8 = vadd.f32 %v4410_v52, %v4256_v51  ;;  %8006 = vmatmul.mubr.f32.gmra.mxu1 %v4591_v7  ;;  %v4467_v24 = vadd.f32 %v9603_v47, %v4444_v27  ;;  %v4593_v54 = vsel %vm269_vm0, %v4590_v42, %v4592_v28  ;;  %v4539_v7 = vld [vmem:[#allocation2 + $0xa00] sm:$0xff] }
 0x5f1   :  { %7950 = vmatmul.mubr.f32.gmra.mxu0 %v9696_v3  ;;  %8038 = vmatprep.subr.mxu0 %v4545_v37  ;;  %v7901_v2 = vpop.f32.mrf.mxu1  ;;  %v4595_v55 = vsel %vm269_vm0, %v4592_v28, %v4594_v11  ;;  %v4598_v62 = vrot.slane %v9711_v45, 7  ;;  %v4629_v51 = vsel %vm324_vm2, %v4627_v19, %v4628_v34  ;;  %v4631_v27 = vsel %vm324_vm2, %v4628_v34, %v4630_v53  ;;  %v5246_v19 = vld [vmem:[#allocation2 + $0xb30] sm:$0xff]  ;;  %v5229_v34 = vld [vmem:[#allocation2 + $0xaa8] sm:$0xff] }
 0x5f2   :  { %v4466_v1 = vadd.f32 %v9603_v47, %v4443_v8  ;;  %v4446_v36 = vadd.f32 %v7901_v2, %v4271_v5  ;;  %8008 = vmatprep.mubr.f32.mxu1 %v4593_v54  ;;  %8039 = vmatpush3.msra.mxu0 %v4545_v37  ;;  %v4596_v9 = vrot.slane %v9708_v29, 7  ;;  %v9725_v26 = vmax.f32 %v4467_v24, 0.0 }
 0x5f3   :  { %7952 = vmatprep.mubr.f32.mxu0 %v9708_v29  ;;  %8040 = vmatprep.subr.mxu0 %v4544_v17  ;;  %v4420_v57 = vpop.f32.mrf.mxu1  ;;  %v4633_v37 = vsel %vm324_vm2, %v4630_v53, %v4632_v56  ;;  %v4638_v52 = vrot.slane %v9660_v59, 1  ;;  %v4635_v28 = vsel %vm324_vm2, %v4632_v56, %v4634_v18  ;;  %v4637_v5 = vsel %vm324_vm2, %v4634_v18, %v4636_v13  ;;  %v5243_v53 = vld [vmem:[#allocation2 + $0xb18] sm:$0xff]  ;;  %v5226_v56 = vld [vmem:[#allocation2 + $0xa90] sm:$0xff]  ;;  %v5240_v18 = vld [vmem:[#allocation2 + $0xb00] sm:$0xff] }
 0x5f4   :  { %v9721_v49 = vmax.f32 %v4466_v1, 0.0  ;;  %v4469_v50 = vadd.f32 %v9603_v47, %v4446_v36  ;;  %v4445_v16 = vadd.f32 %v4420_v57, %v4266_v22  ;;  %8009 = vmatmul.mubr.f32.gmra.mxu1 %v4595_v55  ;;  %8041 = vmatpush3.msra.mxu0 %v4544_v17  ;;  %v4597_v14 = vsel %vm269_vm0, %v4594_v11, %v4596_v9 }
 0x5f5   :  { %7953 = vmatmul.mubr.f32.gmra.mxu0 %v9711_v45  ;;  %8042 = vmatprep.subr.mxu0 %v4543_v32  ;;  %v4599_v43 = vsel %vm269_vm0, %v4596_v9, %v4598_v62  ;;  %v4602_v25 = vrot.slane %v9725_v26, 7  ;;  %v4642_v21 = vrot.slane %v9686_v30, 1  ;;  %v4639_v8 = vsel %vm324_vm2, %v4636_v13, %v4638_v52  ;;  %v5255_v9 = vld [vmem:[#allocation2 + $0xb78] sm:$0xff] }
 0x5f6   :  { %v4487_v41 = vmax.f32 %v4469_v50, 0.0  ;;  %v4468_v33 = vadd.f32 %v9603_v47, %v4445_v16  ;;  %8011 = vmatprep.mubr.f32.mxu1 %v4597_v14  ;;  %8043 = vmatpush3.msra.mxu0 %v4543_v32  ;;  %v4600_v48 = vrot.slane %v9721_v49, 7  ;;  %v4641_v17 = vsel %vm324_vm2, %v4638_v52, %v4640_v0  ;;  %v5253_v50 = vld [vmem:[#allocation2 + $0xb68] sm:$0xff]  ;;  %v5239_v16 = vld [vmem:[#allocation2 + $0xaf8] sm:$0xff] }
 0x5f7   :  { %7955 = vmatprep.mubr.f32.mxu0 %v9721_v49  ;;  %8044 = vmatprep.subr.mxu0 %v4542_v40  ;;  %v4646_v59 = vrot.slane %v9694_v44, 1  ;;  %v4643_v11 = vsel %vm324_vm2, %v4640_v0, %v4642_v21  ;;  %v4645_v24 = vsel %vm324_vm2, %v4642_v21, %v4644_v58  ;;  %v4648_v6 = vrot.slane %v9696_v3, 1  ;;  %v5237_v14 = vld [vmem:[#allocation2 + $0xae8] sm:$0xff]  ;;  %v9786_v13 = vld [vmem:[#allocation2 + $0xbf8] sm:$0xff] }
 0x5f8   :  { %v9735_v61 = vsel %vm166_vm6, %v4487_v41, 0.0  ;;  %v9737_v42 = vmax.f32 %v4468_v33, 0.0  ;;  %8012 = vmatmul.mubr.f32.gmra.mxu1 %v4599_v43  ;;  %8045 = vmatpush3.msra.mxu0 %v4542_v40  ;;  %v4601_v47 = vsel %vm269_vm0, %v4598_v62, %v4600_v48  ;;  %v4603_v12 = vsel %vm269_vm0, %v4600_v48, %v4602_v25  ;;  %v5252_v40 = vld [vmem:[#allocation2 + $0xb60] sm:$0xff]  ;;  %v5251_v62 = vld [vmem:[#allocation2 + $0xb58] sm:$0xff]  ;;  %v5249_v48 = vld [vmem:[#allocation2 + $0xb48] sm:$0xff] }
 0x5f9   :  { %7956 = vmatmul.mubr.f32.gmra.mxu0 %v9725_v26  ;;  %8014 = vmatprep.mubr.f32.mxu1 %v4601_v47  ;;  %v4606_v46 = vrot.slane %v9735_v61, 7  ;;  %v4650_v30 = vrot.slane %v9708_v29, 1  ;;  %v4647_v2 = vsel %vm324_vm2, %v4644_v58, %v4646_v59  ;;  %v4649_v54 = vsel %vm324_vm2, %v4646_v59, %v4648_v6  ;;  %v5236_v33 = vld [vmem:[#allocation2 + $0xae0] sm:$0xff]  ;;  %v5235_v43 = vld [vmem:[#allocation2 + $0xad8] sm:$0xff]  ;;  %v5233_v47 = vld [vmem:[#allocation2 + $0xac8] sm:$0xff] }
 0x5fa   :  { %8046 = vmatprep.subr.mxu0 %v4541_v63  ;;  %7958 = vmatprep.mubr.f32.mxu0 %v9737_v42  ;;  %v4604_v4 = vrot.slane %v9737_v42, 7  ;;  %v4652_v31 = vrot.slane %v9711_v45, 1  ;;  %v4654_v44 = vrot.slane %v9721_v49, 1  ;;  %v4656_v3 = vrot.slane %v9725_v26, 1  ;;  %v5254_v49 = vld [vmem:[#allocation2 + $0xb70] sm:$0xff] }
 0x5fb   :  { %8047 = vmatpush3.msra.mxu0 %v4541_v63  ;;  %v4651_v22 = vsel %vm324_vm2, %v4648_v6, %v4650_v30  ;;  %v4658_v29 = vrot.slane %v9737_v42, 1  ;;  %v4660_v32 = vrot.slane %v9735_v61, 1  ;;  %8079 = vmatprep.subr.mxu1 %v5255_v9  ;;  %v5238_v26 = vld [vmem:[#allocation2 + $0xaf0] sm:$0xff]  ;;  %v5248_v63 = vld [vmem:[#allocation2 + $0xb40] sm:$0xff]  ;;  %v5247_v42 = vld [vmem:[#allocation2 + $0xb38] sm:$0xff] }
 0x5fc   :  { %8015 = vmatmul.mubr.f32.gmra.mxu1 %v4603_v12  ;;  %8048 = vmatprep.subr.mxu0 %v4540_v60  ;;  %v4605_v38 = vsel %vm269_vm0, %v4602_v25, %v4604_v4  ;;  %v4607_v20 = vsel %vm269_vm0, %v4604_v4, %v4606_v46  ;;  %v4653_v1 = vsel %vm324_vm2, %v4650_v30, %v4652_v31  ;;  %v5234_v61 = vld [vmem:[#allocation2 + $0xad0] sm:$0xff]  ;;  %v5232_v25 = vld [vmem:[#allocation2 + $0xac0] sm:$0xff]  ;;  %v5231_v4 = vld [vmem:[#allocation2 + $0xab8] sm:$0xff] }
 0x5fd   :  { %7959 = vmatmul.mubr.msk.f32.gmra.mxu0 %vm166_vm6, %v4487_v41  ;;  %8017 = vmatprep.mubr.f32.mxu1 %v4605_v38  ;;  %v4655_v36 = vsel %vm324_vm2, %v4652_v31, %v4654_v44  ;;  %v4657_v57 = vsel %vm324_vm2, %v4654_v44, %v4656_v3  ;;  %v4659_v45 = vsel %vm324_vm2, %v4656_v3, %v4658_v29  ;;  %v5250_v41 = vld [vmem:[#allocation2 + $0xb50] sm:$0xff]  ;;  %v5244_v46 = vld [vmem:[#allocation2 + $0xb20] sm:$0xff] }
 0x5fe   :  { %8049 = vmatpush3.msra.mxu0 %v4540_v60  ;;  %8052 = vmatprep.mubr.f32.mxu0 %v4629_v51  ;;  %v4661_v55 = vsel %vm324_vm2, %v4658_v29, %v4660_v32  ;;  %v5245_v60 = vld [vmem:[#allocation2 + $0xb28] sm:$0xff]  ;;  %v5230_v12 = vld [vmem:[#allocation2 + $0xab0] sm:$0xff]  ;;  %v5228_v38 = vld [vmem:[#allocation2 + $0xaa0] sm:$0xff] }
 0x5ff   :  { %8050 = vmatprep.subr.mxu0 %v4539_v7  ;;  %8080 = vmatpush3.msra.mxu1 %v5255_v9  ;;  %v5227_v51 = vld [vmem:[#allocation2 + $0xa98] sm:$0xff] }
 0x600   :  { %8051 = vmatpush3.msra.mxu0 %v4539_v7  ;;  %8018 = vmatmul.mubr.f32.gmra.mxu1 %v4607_v20  ;;  %v5242_v7 = vld [vmem:[#allocation2 + $0xb10] sm:$0xff]  ;;  %v5241_v20 = vld [vmem:[#allocation2 + $0xb08] sm:$0xff] }
 0x601   :  { %8053 = vmatmul.mubr.f32.vlgmr.msra.gmra.mxu0 %v4631_v27  ;;  %8081 = vmatprep.subr.mxu1 %v5254_v49  ;;  %v5225_v27 = vld [vmem:[#allocation2 + $0xa88] sm:$0xff] }
 0x602   :  { %8055 = vmatprep.mubr.f32.mxu0 %v4633_v37  ;;  %8082 = vmatpush3.msra.mxu1 %v5254_v49  ;;  %v5224_v37 = vld [vmem:[#allocation2 + $0xa80] sm:$0xff] }
 0x603   :  { %8083 = vmatprep.subr.mxu1 %v5253_v50  ;;  %8138 = vmatprep.subr.mxu0 %v5239_v16 }
 0x604   :  { %8084 = vmatpush3.msra.mxu1 %v5253_v50  ;;  %8139 = vmatpush3.msra.mxu0 %v5239_v16 }
 0x605   :  { %8056 = vmatmul.mubr.f32.gmra.mxu0 %v4635_v28  ;;  %8085 = vmatprep.subr.mxu1 %v5252_v40 }
 0x606   :  { %8058 = vmatprep.mubr.f32.mxu0 %v4637_v5  ;;  %8086 = vmatpush3.msra.mxu1 %v5252_v40  ;;  %v9811_v40 = vld [vmem:[#allocation4 + $0x6] ss:$0 sm:$0xff] }
 0x607   :  { %8140 = vmatprep.subr.mxu0 %v5238_v26  ;;  %8087 = vmatprep.subr.mxu1 %v5251_v62 }
 0x608   :  { %8141 = vmatpush3.msra.mxu0 %v5238_v26  ;;  %8088 = vmatpush3.msra.mxu1 %v5251_v62 }
 0x609   :  { %8059 = vmatmul.mubr.f32.gmra.mxu0 %v4639_v8  ;;  %8142 = vmatprep.subr.mxu0 %v5237_v14 }
 0x60a   :  { %8061 = vmatprep.mubr.f32.mxu0 %v4641_v17  ;;  %8089 = vmatprep.subr.mxu1 %v5250_v41 }
 0x60b   :  { %8143 = vmatpush3.msra.mxu0 %v5237_v14  ;;  %8090 = vmatpush3.msra.mxu1 %v5250_v41 }
 0x60c   :  { %8144 = vmatprep.subr.mxu0 %v5236_v33  ;;  %8091 = vmatprep.subr.mxu1 %v5249_v48 }
 0x60d   :  { %8062 = vmatmul.mubr.f32.gmra.mxu0 %v4643_v11  ;;  %8092 = vmatpush3.msra.mxu1 %v5249_v48 }
 0x60e   :  { %8064 = vmatprep.mubr.f32.mxu0 %v4645_v24  ;;  %8145 = vmatpush3.msra.mxu0 %v5236_v33 }
 0x60f   :  { %8146 = vmatprep.subr.mxu0 %v5235_v43  ;;  %8093 = vmatprep.subr.mxu1 %v5248_v63 }
 0x610   :  { %8147 = vmatpush3.msra.mxu0 %v5235_v43  ;;  %8094 = vmatpush3.msra.mxu1 %v5248_v63 }
 0x611   :  { %8065 = vmatmul.mubr.f32.gmra.mxu0 %v4647_v2  ;;  %8148 = vmatprep.subr.mxu0 %v5234_v61 }
 0x612   :  { %8067 = vmatprep.mubr.f32.mxu0 %v4649_v54  ;;  %8095 = vmatprep.subr.mxu1 %v5247_v42 }
 0x613   :  { %8149 = vmatpush3.msra.mxu0 %v5234_v61  ;;  %8096 = vmatpush3.msra.mxu1 %v5247_v42 }
 0x614   :  { %8150 = vmatprep.subr.mxu0 %v5233_v47  ;;  %8097 = vmatprep.subr.mxu1 %v5246_v19 }
 0x615   :  { %8068 = vmatmul.mubr.f32.gmra.mxu0 %v4651_v22  ;;  %8098 = vmatpush3.msra.mxu1 %v5246_v19 }
 0x616   :  { %8070 = vmatprep.mubr.f32.mxu0 %v4653_v1  ;;  %8151 = vmatpush3.msra.mxu0 %v5233_v47 }
 0x617   :  { %8152 = vmatprep.subr.mxu0 %v5232_v25  ;;  %8099 = vmatprep.subr.mxu1 %v5245_v60 }
 0x618   :  { %8153 = vmatpush3.msra.mxu0 %v5232_v25  ;;  %8100 = vmatpush3.msra.mxu1 %v5245_v60 }
 0x619   :  { %8071 = vmatmul.mubr.f32.gmra.mxu0 %v4655_v36  ;;  %8154 = vmatprep.subr.mxu0 %v5231_v4 }
 0x61a   :  { %8073 = vmatprep.mubr.f32.mxu0 %v4657_v57  ;;  %8155 = vmatpush3.msra.mxu0 %v5231_v4 }
 0x61b   :  { %8101 = vmatprep.subr.mxu1 %v5244_v46  ;;  %8156 = vmatprep.subr.mxu0 %v5230_v12 }
 0x61c   :  { %8102 = vmatpush3.msra.mxu1 %v5244_v46  ;;  %8157 = vmatpush3.msra.mxu0 %v5230_v12 }
 0x61d   :  { %8074 = vmatmul.mubr.f32.gmra.mxu0 %v4659_v45  ;;  %8158 = vmatprep.subr.mxu0 %v5229_v34 }
 0x61e   :  { %8076 = vmatprep.mubr.f32.mxu0 %v4661_v55  ;;  %8103 = vmatprep.subr.mxu1 %v5243_v53 }
 0x61f   :  { %8159 = vmatpush3.msra.mxu0 %v5229_v34  ;;  %8104 = vmatpush3.msra.mxu1 %v5243_v53 }
 0x620   :  { %8160 = vmatprep.subr.mxu0 %v5228_v38  ;;  %8105 = vmatprep.subr.mxu1 %v5242_v7 }
 0x621   :  { %8077 = vmatmul.mubr.msk.f32.gmra.mxu0 %vm324_vm2, %v4660_v32  ;;  %8106 = vmatpush3.msra.mxu1 %v5242_v7 }
 0x622   :  { %8161 = vmatpush3.msra.mxu0 %v5228_v38  ;;  %8107 = vmatprep.subr.mxu1 %v5241_v20 }
 0x623   :  { %8162 = vmatprep.subr.mxu0 %v5227_v51  ;;  %8108 = vmatpush3.msra.mxu1 %v5241_v20 }
 0x624   :  { %8163 = vmatpush3.msra.mxu0 %v5227_v51  ;;  %8109 = vmatprep.subr.mxu1 %v5240_v18 }
 0x625   :  { %8164 = vmatprep.subr.mxu0 %v5226_v56  ;;  %8110 = vmatpush3.msra.mxu1 %v5240_v18 }
 0x626   :  { %8165 = vmatpush3.msra.mxu0 %v5226_v56  ;;  %8197 = vmatprep.subr.mxu1 %v9786_v13  ;;  %v5270_v56 = vld [vmem:[#allocation2 + $0xbf0] sm:$0xff] }
 0x627   :  { %8166 = vmatprep.subr.mxu0 %v5225_v27 }
 0x628   :  { %8167 = vmatpush3.msra.mxu0 %v5225_v27 }
 0x629   :  { %8168 = vmatprep.subr.mxu0 %v5224_v37 }
 0x62a   :  { %8169 = vmatpush3.msra.mxu0 %v5224_v37 }
 0x69b   :  { %v7936_v52 = vpop.f32.mrf.mxu0 }
 0x69d   :  { %v4747_v28 = vpop.f32.mrf.mxu0 }
 0x69e   :  { %v7995_v5 = vpop.f32.mrf.mxu1 }
 0x69f   :  { %v7939_v0 = vpop.f32.mrf.mxu0  ;;  %v4908_v50 = vadd.f32 %v7995_v5, %v7936_v52 }
 0x6a0   :  { %v4902_v21 = vpop.f32.mrf.mxu1 }
 0x6a1   :  { %v4757_v8 = vpop.f32.mrf.mxu0  ;;  %v4903_v62 = vadd.f32 %v4902_v21, %v4747_v28 }
 0x6a3   :  { %v7998_v17 = vpop.f32.mrf.mxu1 }
 0x6a4   :  { %v7942_v58 = vpop.f32.mrf.mxu0  ;;  %v4918_v33 = vadd.f32 %v7998_v17, %v7939_v0 }
 0x6a5   :  { %v4912_v11 = vpop.f32.mrf.mxu1 }
 0x6a6   :  { %v4767_v59 = vpop.f32.mrf.mxu0  ;;  %v4913_v61 = vadd.f32 %v4912_v11, %v4757_v8 }
 0x6a7   :  { %v8001_v30 = vpop.f32.mrf.mxu1 }
 0x6a8   :  { %v7945_v24 = vpop.f32.mrf.mxu0  ;;  %v4928_v4 = vadd.f32 %v8001_v30, %v7942_v58 }
 0x6a9   :  { %v4922_v54 = vpop.f32.mrf.mxu1 }
 0x6aa   :  { %v4777_v6 = vpop.f32.mrf.mxu0  ;;  %v4923_v38 = vadd.f32 %v4922_v54, %v4767_v59 }
 0x6ab   :  { %v8004_v22 = vpop.f32.mrf.mxu1 }
 0x6ac   :  { %v4938_v5 = vadd.f32 %v8004_v22, %v7945_v24  ;;  %v5269_v24 = vld [vmem:[#allocation2 + $0xbe8] sm:$0xff] }
 0x6ad   :  { %v9789_v2 = vpop.f32.mrf.mxu0  ;;  %v4932_v29 = vpop.f32.mrf.mxu1 }
 0x6ae   :  { %v4933_v59 = vadd.f32 %v4932_v29, %v4777_v6 }
 0x6af   :  { %v9791_v31 = vpop.f32.mrf.mxu0 }
 0x6b0   :  { %v8007_v57 = vpop.f32.mrf.mxu1 }
 0x6b1   :  { %v9793_v44 = vpop.f32.mrf.mxu0  ;;  %v4948_v6 = vadd.f32 %v8007_v57, %v9789_v2 }
 0x6b2   :  { %v9807_v9 = vpop.f32.mrf.mxu1 }
 0x6b3   :  { %v9795_v1 = vpop.f32.mrf.mxu0 }
 0x6b4   :  { %v9813_v14 = vpop.f32.mrf.mxu1 }
 0x6b5   :  { %v9797_v3 = vpop.f32.mrf.mxu0 }
 0x6b6   :  { %v9817_v19 = vpop.f32.mrf.mxu1 }
 0x6b7   :  { %v9799_v36 = vpop.f32.mrf.mxu0 }
 0x6b8   :  { %v9829_v18 = vpop.f32.mrf.mxu1 }
 0x6b9   :  { %v9801_v32 = vpop.f32.mrf.mxu0 }
 0x6ba   :  { %v9845_v54 = vpop.f32.mrf.mxu1 }
 0x6bb   :  { %v9803_v45 = vpop.f32.mrf.mxu0 }
 0x6bc   :  { %v8016_v2 = vpop.f32.mrf.mxu1 }
 0x6bd   :  { %v9805_v55 = vpop.f32.mrf.mxu0 }
 0x6bf   :  { %v9809_v49 = vpop.f32.mrf.mxu0 }
 0x6c1   :  { %v8054_v16 = vpop.f32.mrf.mxu0 }
 0x6c2   :  { %v5147_v26 = vadd.f32 %v8054_v16, %v4908_v50 }
 0x6c3   :  { %v5057_v41 = vpop.f32.mrf.mxu0 }
 0x6c4   :  { %v5170_v48 = vadd.f32 %v9811_v40, %v5147_v26  ;;  %v5146_v43 = vadd.f32 %v5057_v41, %v4903_v62 }
 0x6c5   :  { %v8057_v63 = vpop.f32.mrf.mxu0 }
 0x6c6   :  { %v5169_v42 = vadd.f32 %v9811_v40, %v5146_v43  ;;  %v5149_v47 = vadd.f32 %v8057_v63, %v4918_v33  ;;  %v9819_v25 = vmax.f32 %v5170_v48, 0.0  ;;  %v5268_v48 = vld [vmem:[#allocation2 + $0xbe0] sm:$0xff]  ;;  %v4943_v43 = vadd.f32 %v9807_v9, %v9791_v31 }
 0x6c7   :  { %v5067_v60 = vpop.f32.mrf.mxu0  ;;  %v4958_v31 = vadd.f32 %v9813_v14, %v9793_v44 }
 0x6c8   :  { %v5187_v46 = vmax.f32 %v5169_v42, 0.0  ;;  %v5172_v12 = vadd.f32 %v9811_v40, %v5149_v47  ;;  %v5148_v34 = vadd.f32 %v5067_v60, %v4913_v61  ;;  %v5291_v27 = vrot.slane %v9819_v25, 7  ;;  %v5267_v60 = vld [vmem:[#allocation2 + $0xbd8] sm:$0xff] }
 0x6c9   :  { %v8060_v53 = vpop.f32.mrf.mxu0 }
 0x6ca   :  { %v9824_v7 = vsel %vm77_vm3, %v5187_v46, 0.0  ;;  %v5171_v51 = vadd.f32 %v9811_v40, %v5148_v34  ;;  %v5151_v20 = vadd.f32 %v8060_v53, %v4928_v4  ;;  %8111 = vmatprep.mubr.msk.f32.mxu1 %vm77_vm3, %v5187_v46  ;;  %v9833_v52 = vmax.f32 %v5172_v12, 0.0 }
 0x6cb   :  { %v5290_v37 = vrot.slane %v9824_v7, 7  ;;  %v5077_v28 = vpop.f32.mrf.mxu0  ;;  %8112 = vmatmul.mubr.f32.vlgmr.msra.gmra.mxu1 %v9819_v25 }
 0x6cc   :  { %v9836_v0 = vmax.f32 %v5171_v51, 0.0  ;;  %v5174_v21 = vadd.f32 %v9811_v40, %v5151_v20  ;;  %v5150_v8 = vadd.f32 %v5077_v28, %v4923_v38  ;;  %8198 = vmatpush3.msra.mxu1 %v9786_v13  ;;  %v5295_v22 = vrot.slane %v9833_v52, 7 }
 0x6cd   :  { %v8063_v17 = vpop.f32.mrf.mxu0  ;;  %8170 = vmatprep.mubr.msk.f32.mxu0 %vm8358_vm1, %v5290_v37  ;;  %v5292_v58 = vsel %vm269_vm0, %v5290_v37, %v5291_v27  ;;  %8199 = vmatprep.subr.mxu1 %v5270_v56  ;;  %v4953_v51 = vadd.f32 %v9817_v19, %v9795_v1 }
 0x6ce   :  { %v5173_v11 = vadd.f32 %v9811_v40, %v5150_v8  ;;  %v5153_v30 = vadd.f32 %v8063_v17, %v4938_v5  ;;  %8114 = vmatprep.mubr.f32.mxu1 %v9836_v0  ;;  %8171 = vmatmul.mubr.f32.vlgmr.msra.gmra.mxu0 %v5292_v58  ;;  %v9848_v13 = vmax.f32 %v5174_v21, 0.0  ;;  %v5293_v39 = vrot.slane %v9836_v0, 7  ;;  %v5265_v17 = vld [vmem:[#allocation2 + $0xbc8] sm:$0xff] }
 0x6cf   :  { %v5087_v50 = vpop.f32.mrf.mxu0  ;;  %8115 = vmatmul.mubr.f32.gmra.mxu1 %v9833_v52  ;;  %v4968_v21 = vadd.f32 %v9829_v18, %v9797_v3  ;;  %v4963_v3 = vadd.f32 %v9845_v54, %v9799_v36  ;;  %v4978_v54 = vadd.f32 %v8016_v2, %v9801_v32 }
 0x6d0   :  { %v9853_v29 = vmax.f32 %v5173_v11, 0.0  ;;  %v5176_v16 = vadd.f32 %v9811_v40, %v5153_v30  ;;  %v5152_v62 = vadd.f32 %v5087_v50, %v4933_v59  ;;  %8200 = vmatpush3.msra.mxu1 %v5270_v56  ;;  %v5294_v41 = vsel %vm269_vm0, %v5291_v27, %v5293_v39  ;;  %v5266_v56 = vld [vmem:[#allocation2 + $0xbd0] sm:$0xff]  ;;  %v4972_v27 = vpop.f32.mrf.mxu1  ;;  %v5264_v50 = vld [vmem:[#allocation2 + $0xbc0] sm:$0xff] }
 0x6d1   :  { %8201 = vmatprep.subr.mxu1 %v5269_v24  ;;  %v8066_v26 = vpop.f32.mrf.mxu0  ;;  %v5296_v33 = vsel %vm269_vm0, %v5293_v39, %v5295_v22  ;;  %8173 = vmatprep.mubr.f32.mxu0 %v5294_v41  ;;  %v5299_v57 = vrot.slane %v9848_v13, 7  ;;  %v5263_v41 = vld [vmem:[#allocation2 + $0xbb8] sm:$0xff]  ;;  %v4973_v32 = vadd.f32 %v4972_v27, %v9803_v45  ;;  %v5261_v45 = vld [vmem:[#allocation2 + $0xba8] sm:$0xff]  ;;  %v5260_v27 = vld [vmem:[#allocation2 + $0xba0] sm:$0xff] }
 0x6d2   :  { %v5175_v63 = vadd.f32 %v9811_v40, %v5152_v62  ;;  %v5155_v61 = vadd.f32 %v8066_v26, %v4948_v6  ;;  %8202 = vmatpush3.msra.mxu1 %v5269_v24  ;;  %v9862_v42 = vmax.f32 %v5176_v16, 0.0  ;;  %8117 = vmatprep.mubr.f32.mxu1 %v9853_v29  ;;  %v5297_v4 = vrot.slane %v9853_v29, 7  ;;  %v8019_v39 = vpop.f32.mrf.mxu1 }
 0x6d3   :  { %8174 = vmatmul.mubr.f32.gmra.mxu0 %v5296_v33  ;;  %v5097_v47 = vpop.f32.mrf.mxu0  ;;  %8203 = vmatprep.subr.mxu1 %v5268_v48 }
 0x6d4   :  { %v9868_v9 = vmax.f32 %v5175_v63, 0.0  ;;  %v5178_v46 = vadd.f32 %v9811_v40, %v5155_v61  ;;  %v5154_v12 = vadd.f32 %v5097_v47, %v4943_v43  ;;  %8118 = vmatmul.mubr.f32.gmra.mxu1 %v9848_v13  ;;  %v5298_v53 = vsel %vm269_vm0, %v5295_v22, %v5297_v4  ;;  %v5262_v47 = vld [vmem:[#allocation2 + $0xbb0] sm:$0xff] }
 0x6d5   :  { %8204 = vmatpush3.msra.mxu1 %v5268_v48  ;;  %v8069_v34 = vpop.f32.mrf.mxu0  ;;  %v5300_v38 = vsel %vm269_vm0, %v5297_v4, %v5299_v57  ;;  %8176 = vmatprep.mubr.f32.mxu0 %v5298_v53  ;;  %v5303_v37 = vrot.slane %v9862_v42, 7 }
 0x6d6   :  { %v5196_v20 = vmax.f32 %v5178_v46, 0.0  ;;  %v5177_v44 = vadd.f32 %v9811_v40, %v5154_v12  ;;  %8205 = vmatprep.subr.mxu1 %v5267_v60  ;;  %v5157_v14 = vadd.f32 %v8069_v34, %v4958_v31  ;;  %8120 = vmatprep.mubr.f32.mxu1 %v9868_v9  ;;  %v5301_v5 = vrot.slane %v9868_v9, 7 }
 0x6d7   :  { %8206 = vmatpush3.msra.mxu1 %v5267_v60  ;;  %v5107_v28 = vpop.f32.mrf.mxu0  ;;  %8177 = vmatmul.mubr.f32.gmra.mxu0 %v5300_v38  ;;  %v4982_v60 = vpop.f32.mrf.mxu1  ;;  %v4988_v46 = vadd.f32 %v8019_v39, %v9805_v55 }
 0x6d8   :  { %v9884_v1 = vsel %vm140_vm4, %v5196_v20, 0.0  ;;  %v5195_v19 = vmax.f32 %v5177_v44, 0.0  ;;  %v5156_v8 = vadd.f32 %v5107_v28, %v4953_v51  ;;  %8121 = vmatmul.mubr.f32.gmra.mxu1 %v9862_v42  ;;  %v5180_v58 = vadd.f32 %v9811_v40, %v5157_v14  ;;  %8207 = vmatprep.subr.mxu1 %v5266_v56 }
 0x6d9   :  { %v8072_v59 = vpop.f32.mrf.mxu0  ;;  %v5302_v11 = vsel %vm269_vm0, %v5299_v57, %v5301_v5  ;;  %v5304_v30 = vsel %vm269_vm0, %v5301_v5, %v5303_v37  ;;  %8208 = vmatpush3.msra.mxu1 %v5266_v56  ;;  %v5307_v6 = vrot.slane %v9884_v1, 7  ;;  %v4983_v55 = vadd.f32 %v4982_v60, %v9809_v49  ;;  %v5259_v49 = vld [vmem:[#allocation2 + $0xb98] sm:$0xff] }
 0x6da   :  { %v9894_v18 = vsel %vm103_vm5, %v5195_v19, 0.0  ;;  %v5179_v24 = vadd.f32 %v9811_v40, %v5156_v8  ;;  %v5159_v22 = vadd.f32 %v8072_v59, %v4968_v21  ;;  %8179 = vmatprep.mubr.f32.mxu0 %v5302_v11  ;;  %8209 = vmatprep.subr.mxu1 %v5265_v17  ;;  %v9904_v33 = vmax.f32 %v5180_v58, 0.0 }
 0x6db   :  { %v5305_v16 = vrot.slane %v9894_v18, 7  ;;  %8123 = vmatprep.mubr.msk.f32.mxu1 %vm103_vm5, %v5195_v19  ;;  %v5117_v36 = vpop.f32.mrf.mxu0  ;;  %8180 = vmatmul.mubr.f32.gmra.mxu0 %v5304_v30  ;;  %v5355_v60 = vrot.slane %v9868_v9, 1 }
 0x6dc   :  { %v9902_v62 = vmax.f32 %v5179_v24, 0.0  ;;  %8210 = vmatpush3.msra.mxu1 %v5265_v17  ;;  %v5158_v26 = vadd.f32 %v5117_v36, %v4963_v3  ;;  %v5182_v48 = vadd.f32 %v9811_v40, %v5159_v22  ;;  %v5311_v53 = vrot.slane %v9904_v33, 7  ;;  %v5258_v22 = vld [vmem:[#allocation2 + $0xb90] sm:$0xff]  ;;  %v5257_v36 = vld [vmem:[#allocation2 + $0xb88] sm:$0xff] }
 0x6dd   :  { %8124 = vmatmul.mubr.msk.f32.gmra.mxu1 %vm140_vm4, %v5196_v20  ;;  %8211 = vmatprep.subr.mxu1 %v5264_v50  ;;  %v8075_v43 = vpop.f32.mrf.mxu0  ;;  %v5306_v63 = vsel %vm269_vm0, %v5303_v37, %v5305_v16  ;;  %v5308_v61 = vsel %vm269_vm0, %v5305_v16, %v5307_v6 }
 0x6de   :  { %v5181_v2 = vadd.f32 %v9811_v40, %v5158_v26  ;;  %8212 = vmatpush3.msra.mxu1 %v5264_v50  ;;  %v5161_v57 = vadd.f32 %v8075_v43, %v4978_v54  ;;  %8126 = vmatprep.mubr.f32.mxu1 %v9902_v62  ;;  %v5309_v31 = vrot.slane %v9902_v62, 7  ;;  %v9919_v38 = vmax.f32 %v5182_v48, 0.0 }
 0x6df   :  { %8213 = vmatprep.subr.mxu1 %v5263_v41  ;;  %8182 = vmatprep.mubr.f32.mxu0 %v5306_v63  ;;  %v5127_v4 = vpop.f32.mrf.mxu0  ;;  %v5345_v48 = vrot.slane %v9819_v25, 1  ;;  %v5256_v63 = vld [vmem:[#allocation2 + $0xb80] sm:$0xff]  ;;  %v5349_v25 = vrot.slane %v9833_v52, 1  ;;  %v5357_v52 = vrot.slane %v9862_v42, 1  ;;  %v5363_v9 = vrot.slane %v9902_v62, 1 }
 0x6e0   :  { %v9916_v12 = vmax.f32 %v5181_v2, 0.0  ;;  %8214 = vmatpush3.msra.mxu1 %v5263_v41  ;;  %v5160_v34 = vadd.f32 %v5127_v4, %v4973_v32  ;;  %8183 = vmatmul.mubr.f32.gmra.mxu0 %v5308_v61  ;;  %v5184_v51 = vadd.f32 %v9811_v40, %v5161_v57  ;;  %v5310_v44 = vsel %vm269_vm0, %v5307_v6, %v5309_v31 }
 0x6e1   :  { %8127 = vmatmul.mubr.f32.gmra.mxu1 %v9904_v33  ;;  %8215 = vmatprep.subr.mxu1 %v5262_v47  ;;  %v8078_v20 = vpop.f32.mrf.mxu0  ;;  %v5312_v28 = vsel %vm269_vm0, %v5309_v31, %v5311_v53  ;;  %v5315_v17 = vrot.slane %v9919_v38, 7  ;;  %v5344_v6 = vrot.slane %v9824_v7, 1  ;;  %v5347_v7 = vrot.slane %v9836_v0, 1 }
 0x6e2   :  { %v5183_v14 = vadd.f32 %v9811_v40, %v5160_v34  ;;  %v5163_v56 = vadd.f32 %v8078_v20, %v4988_v46  ;;  %8185 = vmatprep.mubr.f32.mxu0 %v5310_v44  ;;  %8216 = vmatpush3.msra.mxu1 %v5262_v47  ;;  %v5313_v5 = vrot.slane %v9916_v12, 7  ;;  %v9933_v58 = vmax.f32 %v5184_v51, 0.0 }
 0x6e3   :  { %8129 = vmatprep.mubr.f32.mxu1 %v9916_v12  ;;  %8217 = vmatprep.subr.mxu1 %v5261_v45  ;;  %v5137_v37 = vpop.f32.mrf.mxu0  ;;  %v5346_v61 = vsel %vm324_vm2, %v5344_v6, %v5345_v48  ;;  %v5351_v0 = vrot.slane %v9853_v29, 1  ;;  %v5348_v2 = vsel %vm324_vm2, %v5345_v48, %v5347_v7  ;;  %v5350_v57 = vsel %vm324_vm2, %v5347_v7, %v5349_v25 }
 0x6e4   :  { %v9929_v21 = vmax.f32 %v5183_v14, 0.0  ;;  %v5186_v19 = vadd.f32 %v9811_v40, %v5163_v56  ;;  %v5162_v8 = vadd.f32 %v5137_v37, %v4983_v55  ;;  %8186 = vmatmul.mubr.f32.gmra.mxu0 %v5312_v28  ;;  %8218 = vmatpush3.msra.mxu1 %v5261_v45  ;;  %v5314_v59 = vsel %vm269_vm0, %v5311_v53, %v5313_v5 }
 0x6e5   :  { %8130 = vmatmul.mubr.f32.gmra.mxu1 %v9919_v38  ;;  %8219 = vmatprep.subr.mxu1 %v5260_v27  ;;  %v5316_v24 = vsel %vm269_vm0, %v5313_v5, %v5315_v17  ;;  %v5319_v16 = vrot.slane %v9933_v58, 7  ;;  %v5353_v47 = vrot.slane %v9848_v13, 1  ;;  %v5352_v4 = vsel %vm324_vm2, %v5349_v25, %v5351_v0 }
 0x6e6   :  { %v5204_v11 = vmax.f32 %v5186_v19, 0.0  ;;  %v5185_v30 = vadd.f32 %v9811_v40, %v5162_v8  ;;  %8188 = vmatprep.mubr.f32.mxu0 %v5314_v59  ;;  %8220 = vmatpush3.msra.mxu1 %v5260_v27  ;;  %v5317_v3 = vrot.slane %v9929_v21, 7  ;;  %v5359_v29 = vrot.slane %v9894_v18, 1 }
 0x6e7   :  { %8132 = vmatprep.mubr.f32.mxu1 %v9929_v21  ;;  %8221 = vmatprep.subr.mxu1 %v5259_v49  ;;  %v5354_v31 = vsel %vm324_vm2, %v5351_v0, %v5353_v47  ;;  %v5356_v46 = vsel %vm324_vm2, %v5353_v47, %v5355_v60  ;;  %v5358_v34 = vsel %vm324_vm2, %v5355_v60, %v5357_v52  ;;  %v5361_v13 = vrot.slane %v9884_v1, 1  ;;  %v10012_v0 = vld [vmem:[#allocation4 + $0x7] ss:$0 sm:$0xff] }
 0x6e8   :  { %v9943_v50 = vsel %vm166_vm6, %v5204_v11, 0.0  ;;  %v9945_v39 = vmax.f32 %v5185_v30, 0.0  ;;  %8189 = vmatmul.mubr.f32.gmra.mxu0 %v5316_v24  ;;  %8222 = vmatpush3.msra.mxu1 %v5259_v49  ;;  %v5318_v40 = vsel %vm269_vm0, %v5315_v17, %v5317_v3  ;;  %v5320_v41 = vsel %vm269_vm0, %v5317_v3, %v5319_v16 }
 0x6e9   :  { %8133 = vmatmul.mubr.f32.gmra.mxu1 %v9933_v58  ;;  %8191 = vmatprep.mubr.f32.mxu0 %v5318_v40  ;;  %v5323_v26 = vrot.slane %v9943_v50, 7  ;;  %v5360_v45 = vsel %vm324_vm2, %v5357_v52, %v5359_v29  ;;  %v5362_v53 = vsel %vm324_vm2, %v5359_v29, %v5361_v13  ;;  %v5365_v42 = vrot.slane %v9904_v33, 1 }
 0x6ea   :  { %8223 = vmatprep.subr.mxu1 %v5258_v22  ;;  %8135 = vmatprep.mubr.f32.mxu1 %v9945_v39  ;;  %v5321_v54 = vrot.slane %v9945_v39, 7  ;;  %v5367_v18 = vrot.slane %v9916_v12, 1  ;;  %v5364_v51 = vsel %vm324_vm2, %v5361_v13, %v5363_v9  ;;  %v5369_v1 = vrot.slane %v9919_v38, 1 }
 0x6eb   :  { %8224 = vmatpush3.msra.mxu1 %v5258_v22  ;;  %v5366_v20 = vsel %vm324_vm2, %v5363_v9, %v5365_v42  ;;  %v5371_v62 = vrot.slane %v9929_v21, 1  ;;  %v5373_v33 = vrot.slane %v9933_v58, 1  ;;  %v5375_v12 = vrot.slane %v9945_v39, 1 }
 0x6ec   :  { %8192 = vmatmul.mubr.f32.gmra.mxu0 %v5320_v41  ;;  %8225 = vmatprep.subr.mxu1 %v5257_v36  ;;  %v5322_v43 = vsel %vm269_vm0, %v5319_v16, %v5321_v54  ;;  %v5324_v32 = vsel %vm269_vm0, %v5321_v54, %v5323_v26  ;;  %v5368_v44 = vsel %vm324_vm2, %v5365_v42, %v5367_v18  ;;  %v5377_v56 = vrot.slane %v9943_v50, 1 }
 0x6ed   :  { %8136 = vmatmul.mubr.msk.f32.gmra.mxu1 %vm166_vm6, %v5204_v11  ;;  %8194 = vmatprep.mubr.f32.mxu0 %v5322_v43  ;;  %v5370_v55 = vsel %vm324_vm2, %v5367_v18, %v5369_v1  ;;  %v5372_v14 = vsel %vm324_vm2, %v5369_v1, %v5371_v62  ;;  %v5374_v27 = vsel %vm324_vm2, %v5371_v62, %v5373_v33 }
 0x6ee   :  { %8226 = vmatpush3.msra.mxu1 %v5257_v36  ;;  %8229 = vmatprep.mubr.f32.mxu1 %v5346_v61  ;;  %v5376_v38 = vsel %vm324_vm2, %v5373_v33, %v5375_v12  ;;  %v5378_v37 = vsel %vm324_vm2, %v5375_v12, %v5377_v56 }
 0x6ef   :  { %8227 = vmatprep.subr.mxu1 %v5256_v63 }
 0x6f0   :  { %8228 = vmatpush3.msra.mxu1 %v5256_v63  ;;  %8195 = vmatmul.mubr.f32.gmra.mxu0 %v5324_v32 }
 0x6f1   :  { %8230 = vmatmul.mubr.f32.vlgmr.msra.gmra.mxu1 %v5348_v2 }
 0x6f2   :  { %8232 = vmatprep.mubr.f32.mxu1 %v5350_v57 }
 0x6f5   :  { %8233 = vmatmul.mubr.f32.gmra.mxu1 %v5352_v4 }
 0x6f6   :  { %8235 = vmatprep.mubr.f32.mxu1 %v5354_v31 }
 0x6f9   :  { %8236 = vmatmul.mubr.f32.gmra.mxu1 %v5356_v46 }
 0x6fa   :  { %8238 = vmatprep.mubr.f32.mxu1 %v5358_v34 }
 0x6fd   :  { %8239 = vmatmul.mubr.f32.gmra.mxu1 %v5360_v45 }
 0x6fe   :  { %8241 = vmatprep.mubr.f32.mxu1 %v5362_v53 }
 0x701   :  { %8242 = vmatmul.mubr.f32.gmra.mxu1 %v5364_v51 }
 0x702   :  { %8244 = vmatprep.mubr.f32.mxu1 %v5366_v20 }
 0x705   :  { %8245 = vmatmul.mubr.f32.gmra.mxu1 %v5368_v44 }
 0x706   :  { %8247 = vmatprep.mubr.f32.mxu1 %v5370_v55 }
 0x709   :  { %8248 = vmatmul.mubr.f32.gmra.mxu1 %v5372_v14 }
 0x70a   :  { %8250 = vmatprep.mubr.f32.mxu1 %v5374_v27 }
 0x70d   :  { %8251 = vmatmul.mubr.f32.gmra.mxu1 %v5376_v38 }
 0x70e   :  { %8253 = vmatprep.mubr.f32.mxu1 %v5378_v37 }
 0x711   :  { %8254 = vmatmul.mubr.msk.f32.gmra.mxu1 %vm324_vm2, %v5377_v56 }
 0x78b   :  { %v8113_v28 = vpop.f32.mrf.mxu1 }
 0x78d   :  { %v5464_v5 = vpop.f32.mrf.mxu1 }
 0x78e   :  { %v8172_v21 = vpop.f32.mrf.mxu0 }
 0x78f   :  { %v8116_v19 = vpop.f32.mrf.mxu1  ;;  %v5625_v32 = vadd.f32 %v8172_v21, %v8113_v28 }
 0x790   :  { %v5619_v8 = vpop.f32.mrf.mxu0 }
 0x791   :  { %v5474_v49 = vpop.f32.mrf.mxu1  ;;  %v5620_v2 = vadd.f32 %v5619_v8, %v5464_v5 }
 0x793   :  { %v8175_v17 = vpop.f32.mrf.mxu0 }
 0x794   :  { %v8119_v58 = vpop.f32.mrf.mxu1  ;;  %v5635_v4 = vadd.f32 %v8175_v17, %v8116_v19 }
 0x795   :  { %v5629_v11 = vpop.f32.mrf.mxu0 }
 0x796   :  { %v5484_v59 = vpop.f32.mrf.mxu1  ;;  %v5630_v46 = vadd.f32 %v5629_v11, %v5474_v49 }
 0x797   :  { %v8178_v24 = vpop.f32.mrf.mxu0 }
 0x798   :  { %v8122_v30 = vpop.f32.mrf.mxu1  ;;  %v5645_v42 = vadd.f32 %v8178_v24, %v8119_v58 }
 0x799   :  { %v5639_v50 = vpop.f32.mrf.mxu0 }
 0x79a   :  { %v5494_v3 = vpop.f32.mrf.mxu1  ;;  %v5640_v1 = vadd.f32 %v5639_v50, %v5484_v59 }
 0x79b   :  { %v8181_v6 = vpop.f32.mrf.mxu0 }
 0x79c   :  { %v5655_v27 = vadd.f32 %v8181_v6, %v8122_v30 }
 0x79d   :  { %v8125_v22 = vpop.f32.mrf.mxu1  ;;  %v5649_v54 = vpop.f32.mrf.mxu0 }
 0x79e   :  { %v5650_v5 = vadd.f32 %v5649_v54, %v5494_v3 }
 0x79f   :  { %v9994_v39 = vpop.f32.mrf.mxu1 }
 0x7a0   :  { %v8184_v48 = vpop.f32.mrf.mxu0 }
 0x7a1   :  { %v9996_v40 = vpop.f32.mrf.mxu1  ;;  %v5665_v58 = vadd.f32 %v8184_v48, %v8125_v22 }
 0x7a2   :  { %v5659_v63 = vpop.f32.mrf.mxu0 }
 0x7a3   :  { %v9998_v16 = vpop.f32.mrf.mxu1  ;;  %v5660_v24 = vadd.f32 %v5659_v63, %v9994_v39 }
 0x7a4   :  { %v8187_v47 = vpop.f32.mrf.mxu0 }
 0x7a5   :  { %v10000_v36 = vpop.f32.mrf.mxu1 }
 0x7a6   :  { %v5669_v45 = vpop.f32.mrf.mxu0 }
 0x7a7   :  { %v10002_v26 = vpop.f32.mrf.mxu1 }
 0x7a8   :  { %v8190_v14 = vpop.f32.mrf.mxu0 }
 0x7a9   :  { %v10004_v41 = vpop.f32.mrf.mxu1 }
 0x7aa   :  { %v5679_v49 = vpop.f32.mrf.mxu0 }
 0x7ab   :  { %v10006_v7 = vpop.f32.mrf.mxu1 }
 0x7ac   :  { %v8193_v22 = vpop.f32.mrf.mxu0 }
 0x7ad   :  { %v10008_v43 = vpop.f32.mrf.mxu1 }
 0x7af   :  { %v10010_v61 = vpop.f32.mrf.mxu1 }
 0x7b1   :  { %v8231_v25 = vpop.f32.mrf.mxu1 }
 0x7b2   :  { %v5864_v57 = vadd.f32 %v8231_v25, %v5625_v32  ;;  %v5675_v32 = vadd.f32 %v8187_v47, %v9996_v40  ;;  %v5685_v40 = vadd.f32 %v8190_v14, %v10000_v36  ;;  %v5689_v47 = vpop.f32.mrf.mxu0 }
 0x7b3   :  { %v5774_v60 = vpop.f32.mrf.mxu1 }
 0x7b4   :  { %v5887_v31 = vadd.f32 %v10012_v0, %v5864_v57  ;;  %v5863_v52 = vadd.f32 %v5774_v60, %v5620_v2  ;;  %v5670_v57 = vadd.f32 %v5669_v45, %v9998_v16  ;;  %v5680_v16 = vadd.f32 %v5679_v49, %v10002_v26  ;;  %v8196_v10 = vpop.f32.mrf.mxu0 }
 0x7b5   :  { %v8234_v29 = vpop.f32.mrf.mxu1  ;;  %v5695_v26 = vadd.f32 %v8193_v22, %v10004_v41  ;;  %v5705_v14 = vadd.f32 %v8196_v10, %v10008_v43 }
 0x7b6   :  { %v5905_v34 = vmax.f32 %v5887_v31, 0.0  ;;  %v5886_v13 = vadd.f32 %v10012_v0, %v5863_v52  ;;  %v5866_v9 = vadd.f32 %v8234_v29, %v5635_v4  ;;  %v5699_v41 = vpop.f32.mrf.mxu0 }
 0x7b7   :  { %v5784_v53 = vpop.f32.mrf.mxu1 }
 0x7b8   :  { %5941 = vst [vmem:[%s10106_s3 + $0x8] sm:$0xff] %v5905_v34  ;;  %v5904_v18 = vmax.f32 %v5886_v13, 0.0  ;;  %v5889_v51 = vadd.f32 %v10012_v0, %v5866_v9  ;;  %v5865_v20 = vadd.f32 %v5784_v53, %v5630_v46 }
 0x7b9   :  { %v8237_v62 = vpop.f32.mrf.mxu1 }
 0x7ba   :  { %v5922_v44 = vsel %vm77_vm3, %v5904_v18, 0.0  ;;  %v5907_v55 = vmax.f32 %v5889_v51, 0.0  ;;  %v5888_v33 = vadd.f32 %v10012_v0, %v5865_v20  ;;  %v5868_v12 = vadd.f32 %v8237_v62, %v5645_v42 }
 0x7bb   :  { %5940 = vst [vmem:[%s10106_s3] sm:$0xff] %v5922_v44  ;;  %v5794_v56 = vpop.f32.mrf.mxu1  ;;  %v5690_v62 = vadd.f32 %v5689_v47, %v10006_v7 }
 0x7bc   :  { %5943 = vst [vmem:[%s10106_s3 + $0x18] sm:$0xff] %v5907_v55  ;;  %v5906_v38 = vmax.f32 %v5888_v33, 0.0  ;;  %v5891_v37 = vadd.f32 %v10012_v0, %v5868_v12  ;;  %v5867_v15 = vadd.f32 %v5794_v56, %v5640_v1 }
 0x7bd   :  { %v8240_v28 = vpop.f32.mrf.mxu1 }
 0x7be   :  { %5942 = vst [vmem:[%s10106_s3 + $0x10] sm:$0xff] %v5906_v38  ;;  %v5909_v21 = vmax.f32 %v5891_v37, 0.0  ;;  %v5890_v19 = vadd.f32 %v10012_v0, %v5867_v15  ;;  %v5870_v8 = vadd.f32 %v8240_v28, %v5655_v27  ;;  %v5700_v37 = vadd.f32 %v5699_v41, %v10010_v61 }
 0x7bf   :  { %v5804_v17 = vpop.f32.mrf.mxu1 }
 0x7c0   :  { %5945 = vst [vmem:[%s10106_s3 + $0x28] sm:$0xff] %v5909_v21  ;;  %v5908_v59 = vmax.f32 %v5890_v19, 0.0  ;;  %v5893_v11 = vadd.f32 %v10012_v0, %v5870_v8  ;;  %v5869_v30 = vadd.f32 %v5804_v17, %v5650_v5 }
 0x7c1   :  { %v8243_v3 = vpop.f32.mrf.mxu1 }
 0x7c2   :  { %5944 = vst [vmem:[%s10106_s3 + $0x20] sm:$0xff] %v5908_v59  ;;  %v5911_v50 = vmax.f32 %v5893_v11, 0.0  ;;  %v5892_v6 = vadd.f32 %v10012_v0, %v5869_v30  ;;  %v5872_v54 = vadd.f32 %v8243_v3, %v5665_v58 }
 0x7c3   :  { %v5814_v48 = vpop.f32.mrf.mxu1 }
 0x7c4   :  { %5947 = vst [vmem:[%s10106_s3 + $0x38] sm:$0xff] %v5911_v50  ;;  %v5910_v25 = vmax.f32 %v5892_v6, 0.0  ;;  %v5895_v2 = vadd.f32 %v10012_v0, %v5872_v54  ;;  %v5871_v39 = vadd.f32 %v5814_v48, %v5660_v24 }
 0x7c5   :  { %v8246_v63 = vpop.f32.mrf.mxu1 }
 0x7c6   :  { %5946 = vst [vmem:[%s10106_s3 + $0x30] sm:$0xff] %v5910_v25  ;;  %v5913_v60 = vmax.f32 %v5895_v2, 0.0  ;;  %v5894_v4 = vadd.f32 %v10012_v0, %v5871_v39  ;;  %v5874_v31 = vadd.f32 %v8246_v63, %v5675_v32 }
 0x7c7   :  { %v5824_v52 = vpop.f32.mrf.mxu1 }
 0x7c8   :  { %v5931_v29 = vsel %vm140_vm4, %v5913_v60, 0.0  ;;  %v5912_v46 = vmax.f32 %v5894_v4, 0.0  ;;  %v5897_v34 = vadd.f32 %v10012_v0, %v5874_v31  ;;  %v5873_v13 = vadd.f32 %v5824_v52, %v5670_v57 }
 0x7c9   :  { %5949 = vst [vmem:[%s10106_s3 + $0x48] sm:$0xff] %v5931_v29  ;;  %v8249_v9 = vpop.f32.mrf.mxu1 }
 0x7ca   :  { %v5930_v45 = vsel %vm103_vm5, %v5912_v46, 0.0  ;;  %v5915_v36 = vmax.f32 %v5897_v34, 0.0  ;;  %v5896_v53 = vadd.f32 %v10012_v0, %v5873_v13  ;;  %v5876_v42 = vadd.f32 %v8249_v9, %v5685_v40 }
 0x7cb   :  { %5948 = vst [vmem:[%s10106_s3 + $0x40] sm:$0xff] %v5930_v45  ;;  %v5834_v18 = vpop.f32.mrf.mxu1 }
 0x7cc   :  { %5951 = vst [vmem:[%s10106_s3 + $0x58] sm:$0xff] %v5915_v36  ;;  %v5914_v51 = vmax.f32 %v5896_v53, 0.0  ;;  %v5899_v23 = vadd.f32 %v10012_v0, %v5876_v42  ;;  %v5875_v20 = vadd.f32 %v5834_v18, %v5680_v16 }
 0x7cd   :  { %v8252_v1 = vpop.f32.mrf.mxu1 }
 0x7ce   :  { %5950 = vst [vmem:[%s10106_s3 + $0x50] sm:$0xff] %v5914_v51  ;;  %v5917_v44 = vmax.f32 %v5899_v23, 0.0  ;;  %v5898_v55 = vadd.f32 %v10012_v0, %v5875_v20  ;;  %v5878_v33 = vadd.f32 %v8252_v1, %v5695_v26 }
 0x7cf   :  { %v5844_v12 = vpop.f32.mrf.mxu1 }
 0x7d0   :  { %5953 = vst [vmem:[%s10106_s3 + $0x68] sm:$0xff] %v5917_v44  ;;  %v5916_v56 = vmax.f32 %v5898_v55, 0.0  ;;  %v5901_v27 = vadd.f32 %v10012_v0, %v5878_v33  ;;  %v5877_v7 = vadd.f32 %v5844_v12, %v5690_v62 }
 0x7d1   :  { %v8255_v38 = vpop.f32.mrf.mxu1 }
 0x7d2   :  { %5952 = vst [vmem:[%s10106_s3 + $0x60] sm:$0xff] %v5916_v56  ;;  %v5919_v15 = vmax.f32 %v5901_v27, 0.0  ;;  %v5900_v28 = vadd.f32 %v10012_v0, %v5877_v7  ;;  %v5880_v5 = vadd.f32 %v8255_v38, %v5705_v14 }
 0x7d3   :  { %v5854_v43 = vpop.f32.mrf.mxu1 }
 0x7d4   :  { %5955 = vst [vmem:[%s10106_s3 + $0x78] sm:$0xff] %v5919_v15  ;;  %v5918_v21 = vmax.f32 %v5900_v28, 0.0  ;;  %v5903_v19 = vadd.f32 %v10012_v0, %v5880_v5  ;;  %v5879_v8 = vadd.f32 %v5854_v43, %v5700_v37 }
 0x7d6   :  { %5954 = vst [vmem:[%s10106_s3 + $0x70] sm:$0xff] %v5918_v21  ;;  %v5921_v61 = vmax.f32 %v5903_v19, 0.0  ;;  %v5902_v49 = vadd.f32 %v10012_v0, %v5879_v8 }
 0x7d8   :  { %v5939_v17 = vsel %vm166_vm6, %v5921_v61, 0.0  ;;  %v5920_v58 = vmax.f32 %v5902_v49, 0.0 }
 0x7d9   :  { %5957 = vst [vmem:[%s10106_s3 + $0x88] sm:$0xff] %v5939_v17 }
 0x7da   :  { %5956 = vst [vmem:[%s10106_s3 + $0x80] sm:$0xff] %v5920_v58 }
 0x7db   :  { %5962 = vsyncpa [#allocation3], 1 }
 0x7dc   :  { %5963 = vsyncpa [#allocation5], 1 }

</bundles_post_ra>
